<compile_context>
chip_gen: v6e
topology: v6e:2x2x1
jax: 0.10.0
libtpu: 0.0.40
codegen_flags: <defaults>
</compile_context>

<pallas_src>
import functools

import jax
import jax.numpy as jnp
from jax import lax
from jax.experimental import pallas as pl
from jax.experimental.pallas import tpu as pltpu

LRELU_SLOPE = 0.2
BN_EPS = 1e-5


def _round_up(x, m):
    return (x + m - 1) // m * m


@functools.lru_cache(maxsize=None)
def _device_kind():
    try:
        return jax.devices()[0].device_kind.lower()
    except Exception:
        return ""


@functools.lru_cache(maxsize=None)
def _vmem_limit():
    # v7x has 64 MiB physical VMEM -> stay well under; v5e/v6e have 128 MiB.
    if "v7" in _device_kind():
        return 40 * 1024 * 1024
    return 64 * 1024 * 1024


def _pick_tco(cout_pad):
    # 256-wide MXU N-dim on v6e/v7x; 128 on v5e (and as safe default).
    kind = _device_kind()
    if cout_pad % 256 == 0 and ("v6" in kind or "v7" in kind):
        return 256
    return 128 if cout_pad >= 128 else cout_pad


# ---------------------------------------------------------------------------
# Fused 3x3 conv kernel: shifted matmuls (3 dw-packed taps or 9 plain taps)
# + bias (+ optional LeakyReLU) + optional masked BatchNorm partial stats.
# ---------------------------------------------------------------------------
def _make_conv_kernel(taps, m_pad, fuse_lrelu, want_stats):
    def body(a_ref, w_ref, b_ref, mask_ref, y_ref, sum_ref, sq_ref):
        # Local (vreg-backed) accumulation: first tap initialises, the rest add.
        ph0, off0 = taps[0]
        acc = jnp.dot(a_ref[0, ph0, off0:off0 + m_pad, :], w_ref[0],
                      preferred_element_type=jnp.float32)
        for k in range(1, len(taps)):
            ph, off = taps[k]
            acc = acc + jnp.dot(a_ref[0, ph, off:off + m_pad, :], w_ref[k],
                                preferred_element_type=jnp.float32)
        y = acc + b_ref[...]
        if fuse_lrelu:
            y = jnp.where(y > 0, y, LRELU_SLOPE * y)
        y_ref[0] = y.astype(y_ref.dtype)
        if want_stats:
            # BatchNorm partial statistics over the *valid* pixels only
            # (mask zeroes the garbage padded-width columns / pad rows).
            ym = y * mask_ref[...]
            sum_ref[0] = jnp.sum(ym, axis=0, keepdims=True)
            sq_ref[0] = jnp.sum(ym * y, axis=0, keepdims=True)

    if want_stats:
        def kernel(a_ref, w_ref, b_ref, mask_ref, y_ref, sum_ref, sq_ref):
            body(a_ref, w_ref, b_ref, mask_ref, y_ref, sum_ref, sq_ref)
    else:
        def kernel(a_ref, w_ref, b_ref, y_ref):
            body(a_ref, w_ref, b_ref, None, y_ref, None, None)
    return kernel


# ---------------------------------------------------------------------------
# JAX-side layout prep: zero pad + stride-phase split (+ optional dw packing).
# Output is bf16; XLA fuses any preceding elementwise (BN apply / LReLU) into
# this single copy.
# ---------------------------------------------------------------------------
def build_activation(x_nhwc, p):
    N, H, W, Cin = x_nhwc.shape
    s = int(p["stride"])
    cin_pad = p["cin_pad"]
    pack = p["pack_dw"]

    Ho = (H - 1) // s + 1
    Wo = (W - 1) // s + 1
    Hp = _round_up(H + 2, s)
    Wp = _round_up(W + 2, s)
    Hq, Wq = Hp // s, Wp // s
    m_real = Ho * Wq
    m_pad = _round_up(m_real, 16)

    if pack:
        # Pack the 3 kw taps along channels: K = 3*cin_pad, only 3 row-shifted
        # matmuls in the kernel (one per kh).
        need_w = (Wq - 1) * s + 3
        xp = jnp.pad(x_nhwc, ((0, 0), (1, Hp - H - 1),
                              (1, need_w - W - 1), (0, cin_pad - Cin)))
        parts = [xp[:, :, dw:dw + (Wq - 1) * s + 1:s, :] for dw in range(3)]
        ap = jnp.concatenate(parts, axis=-1)          # (N, Hp, Wq, 3*cin_pad)
        a = ap.reshape(N, Hq, s, Wq, 3 * cin_pad).transpose(0, 2, 1, 3, 4)
        a = a.reshape(N, s, Hq * Wq, 3 * cin_pad)
        d_max = (2 // s) * Wq
        taps = tuple((dh % s, (dh // s) * Wq) for dh in range(3))
        nphase = s
        K = 3 * cin_pad
    else:
        xp = jnp.pad(x_nhwc, ((0, 0), (1, Hp - H - 1),
                              (1, Wp - W - 1), (0, cin_pad - Cin)))
        a = xp.reshape(N, Hq, s, Wq, s, cin_pad).transpose(0, 2, 4, 1, 3, 5)
        a = a.reshape(N, s * s, Hq * Wq, cin_pad)
        d_max = (2 // s) * Wq + (2 // s)
        taps = tuple(((dh % s) * s + (dw % s), (dh // s) * Wq + (dw // s))
                     for dh in range(3) for dw in range(3))
        nphase = s * s
        K = cin_pad

    r_pad = _round_up(m_pad + d_max, 16)
    a = jnp.pad(a, ((0, 0), (0, 0), (0, r_pad - Hq * Wq), (0, 0)))
    a = a.astype(jnp.bfloat16)

    geom = dict(m_pad=m_pad, m_real=m_real, r_pad=r_pad, Wq=Wq, Ho=Ho, Wo=Wo,
                taps=taps, nphase=nphase, K=K, count=N * Ho * Wo)
    return a, geom


def run_conv(a, geom, p, fuse_lrelu, want_stats):
    """One fused conv layer on the pre-built phase-split activation."""
    N = a.shape[0]
    ntaps, K, cout_pad = p["w_taps"].shape
    m_pad, r_pad, nphase = geom["m_pad"], geom["r_pad"], geom["nphase"]
    taps = geom["taps"]
    assert K == geom["K"] and ntaps == len(taps)

    tco = _pick_tco(cout_pad)
    assert cout_pad % tco == 0
    grid = (N, cout_pad // tco)

    in_specs = [
        pl.BlockSpec((1, nphase, r_pad, K), lambda n, j: (n, 0, 0, 0)),
        pl.BlockSpec((ntaps, K, tco), lambda n, j: (0, 0, j)),
        pl.BlockSpec((1, tco), lambda n, j: (0, j)),
    ]
    args = [a, p["w_taps"], p["bias"]]

    y_sds = jax.ShapeDtypeStruct((N, m_pad, cout_pad), jnp.bfloat16)
    y_spec = pl.BlockSpec((1, m_pad, tco), lambda n, j: (n, 0, j))

    if want_stats:
        rows = jnp.arange(m_pad)
        mask = ((rows < geom["m_real"]) & ((rows % geom["Wq"]) < geom["Wo"]))
        mask = mask.astype(jnp.float32).reshape(m_pad, 1)
        in_specs.append(pl.BlockSpec((m_pad, 1), lambda n, j: (0, 0)))
        args.append(mask)
        s_sds = jax.ShapeDtypeStruct((N, 1, cout_pad), jnp.float32)
        s_spec = pl.BlockSpec((1, 1, tco), lambda n, j: (n, 0, j))
        out_shape = (y_sds, s_sds, s_sds)
        out_specs = (y_spec, s_spec, s_spec)
    else:
        out_shape = y_sds
        out_specs = y_spec

    res = pl.pallas_call(
        _make_conv_kernel(taps, m_pad, fuse_lrelu, want_stats),
        out_shape=out_shape,
        grid=grid,
        in_specs=in_specs,
        out_specs=out_specs,
        compiler_params=pltpu.CompilerParams(
            # batch axis is the megacore-parallel one (keeps each image's
            # activation resident in exactly one core); cout tiles sequential.
            dimension_semantics=("parallel", "arbitrary"),
            vmem_limit_bytes=_vmem_limit()),
    )(*args)

    if want_stats:
        y, ssum, ssq = res
        return y, ssum, ssq
    return res, None, None


def _raster_to_nhwc(y, geom, cout):
    N = y.shape[0]
    Ho, Wo, Wq, m_real = geom["Ho"], geom["Wo"], geom["Wq"], geom["m_real"]
    return y[:, :m_real, :cout].reshape(N, Ho, Wq, cout)[:, :, :Wo, :]


# ---------------------------------------------------------------------------
# Fused classifier head: (pooled @ W1 + b1) -> LReLU -> (@ W2 + b2) -> sigmoid
# ---------------------------------------------------------------------------
def _head_kernel(x_ref, w1_ref, b1_ref, w2_ref, b2_ref, o_ref):
    h = jnp.dot(x_ref[...], w1_ref[...],
                preferred_element_type=jnp.float32) + b1_ref[...]
    h = jnp.where(h > 0, h, LRELU_SLOPE * h)
    o = jnp.dot(h.astype(jnp.bfloat16), w2_ref[...],
                preferred_element_type=jnp.float32) + b2_ref[...]
    # sigmoid via exp (EUP) + approx reciprocal (EUP) -- no fp32 VALU divide
    o_ref[...] = pl.reciprocal(1.0 + jnp.exp(-o), approx=True)


def classifier_head(pooled, hp):
    N, C = pooled.shape
    cpad = hp["w1"].shape[0]
    rows = _round_up(max(N, 1), 8)
    x = jnp.zeros((rows, cpad), jnp.bfloat16).at[:N, :C].set(
        pooled.astype(jnp.bfloat16))
    out = pl.pallas_call(
        _head_kernel,
        out_shape=jax.ShapeDtypeStruct((rows, hp["w2"].shape[1]), jnp.float32),
        grid=(1,),
        in_specs=[
            pl.BlockSpec((rows, cpad), lambda i: (0, 0)),
            pl.BlockSpec(hp["w1"].shape, lambda i: (0, 0)),
            pl.BlockSpec(hp["b1"].shape, lambda i: (0, 0)),
            pl.BlockSpec(hp["w2"].shape, lambda i: (0, 0)),
            pl.BlockSpec(hp["b2"].shape, lambda i: (0, 0)),
        ],
        out_specs=pl.BlockSpec((rows, hp["w2"].shape[1]), lambda i: (0, 0)),
        compiler_params=pltpu.CompilerParams(vmem_limit_bytes=_vmem_limit()),
    )(x, hp["w1"], hp["b1"], hp["w2"], hp["b2"])
    return out[:N, :1]


# ---------------------------------------------------------------------------
# Full forward pass
# ---------------------------------------------------------------------------
def discriminator_forward(x_nchw, prep):
    x_nhwc = jnp.transpose(x_nchw, (0, 2, 3, 1)).astype(jnp.float32)
    layers = [prep["conv1"]] + list(prep["blocks"])
    nl = len(layers)

    a, geom = build_activation(x_nhwc.astype(jnp.bfloat16), layers[0])
    pooled = None
    for li, p in enumerate(layers):
        has_bn = li > 0
        y, ssum, ssq = run_conv(a, geom, p,
                                fuse_lrelu=not has_bn, want_stats=has_bn)
        cout = p["cout"]
        x_nhwc = _raster_to_nhwc(y, geom, cout)

        if has_bn:
            # Tiny per-channel BN finalisation (training-mode batch stats).
            cnt = float(geom["count"])
            mean = jnp.sum(ssum, axis=(0, 1)) / cnt
            ex2 = jnp.sum(ssq, axis=(0, 1)) / cnt
            var = jnp.maximum(ex2 - mean * mean, 0.0)
            scale = p["gamma_pad"] * lax.rsqrt(var + BN_EPS)
            shift = p["beta_pad"] - mean * scale
            v = x_nhwc.astype(jnp.float32) * scale[:cout] + shift[:cout]
            x_nhwc = jnp.where(v > 0, v, LRELU_SLOPE * v)

        if li + 1 < nl:
            # BN/LReLU (above) + crop + pad + phase-split fuse into one XLA
            # copy that directly emits the next layer's bf16 kernel input.
            a, geom = build_activation(x_nhwc.astype(jnp.bfloat16),
                                       layers[li + 1])
        else:
            pooled = jnp.mean(x_nhwc.astype(jnp.float32), axis=(1, 2))

    o = classifier_head(pooled, prep["head"])
    return o.reshape(-1, 1, 1, 1)


# ---------------------------------------------------------------------------
# Parameter init (torch-equivalent shapes) and one-time prepare step
# ---------------------------------------------------------------------------
def init_params(key, in_channels, channels):
    def conv_init(k, cout, cin, ksz):
        fan_in = cin * ksz * ksz
        bound = 1.0 / (fan_in ** 0.5)
        kw, kb = jax.random.split(k)
        w = jax.random.uniform(kw, (cout, cin, ksz, ksz), jnp.float32, -bound, bound)
        b = jax.random.uniform(kb, (cout,), jnp.float32, -bound, bound)
        return w, b

    keys = iter(jax.random.split(key, 64))
    params = {}
    params["conv1_w"], params["conv1_b"] = conv_init(next(keys), channels[0], in_channels, 3)

    cfg = [(channels[0], channels[0], 2)]
    cin = channels[0]
    for cout in channels[1:]:
        cfg.append((cin, cout, 1))
        cfg.append((cout, cout, 2))
        cin = cout

    blocks = []
    for (ci, co, s) in cfg:
        w, b = conv_init(next(keys), co, ci, 3)
        blocks.append({
            "w": w, "b": b, "stride": s,
            "gamma": jnp.ones((co,), jnp.float32),
            "beta": jnp.zeros((co,), jnp.float32),
        })
    params["blocks"] = blocks

    clast = channels[-1]
    w1, b1 = conv_init(next(keys), 2 * clast, clast, 1)
    w2, b2 = conv_init(next(keys), 1, 2 * clast, 1)
    params["cls"] = {
        "w1": w1.reshape(2 * clast, clast).T, "b1": b1,   # (Cin, Cout) matmul form
        "w2": w2.reshape(1, 2 * clast).T, "b2": b2,
    }
    return params


def prepare_params(params):
    """One-time conversion: tap-major bf16 conv weights (dw-packed for small
    Cin), padded biases / BN params / bf16 classifier head."""
    def prep_conv(w, b, stride):
        cout, cin, _, _ = w.shape
        cin_pad = _round_up(cin, 8)
        cout_pad = _round_up(cout, 128)
        pack = (3 * cin_pad) <= 128        # K = 3*cin_pad still fits MXU depth
        wt = jnp.transpose(w, (2, 3, 1, 0))                     # (3,3,cin,cout)
        wt = jnp.pad(wt, ((0, 0), (0, 0), (0, cin_pad - cin),
                          (0, cout_pad - cout)))
        if pack:
            wt = wt.reshape(3, 3 * cin_pad, cout_pad)           # tap = kh
        else:
            wt = wt.reshape(9, cin_pad, cout_pad)               # tap = kh*3+kw
        return {
            "w_taps": wt.astype(jnp.bfloat16),
            "bias": jnp.pad(b, (0, cout_pad - cout)).reshape(1, cout_pad),
            "stride": stride, "cout": cout, "cin": cin,
            "cin_pad": cin_pad, "pack_dw": pack,
        }

    prep = {"conv1": prep_conv(params["conv1_w"], params["conv1_b"], 1)}

    blocks = []
    for bp in params["blocks"]:
        d = prep_conv(bp["w"], bp["b"], bp["stride"])
        cpad = d["w_taps"].shape[2]
        co = bp["gamma"].shape[0]
        d["gamma_pad"] = jnp.pad(bp["gamma"], (0, cpad - co), constant_values=1.0)
        d["beta_pad"] = jnp.pad(bp["beta"], (0, cpad - co))
        blocks.append(d)
    prep["blocks"] = blocks

    c = params["cls"]
    C, C2 = c["w1"].shape
    cpad = _round_up(C, 128)
    c2pad = _round_up(C2, 128)
    prep["head"] = {
        "w1": jnp.pad(c["w1"], ((0, cpad - C), (0, c2pad - C2))).astype(jnp.bfloat16),
        "b1": jnp.pad(c["b1"], (0, c2pad - C2)).reshape(1, c2pad),
        "w2": jnp.pad(c["w2"], ((0, c2pad - C2),
                                (0, 128 - c["w2"].shape[1]))).astype(jnp.bfloat16),
        "b2": jnp.pad(c["b2"], (0, 128 - c["b2"].shape[0])).reshape(1, 128),
    }
    return prep


# ---------------------------------------------------------------------------
# Pure-JAX reference (fp32 HIGHEST) for correctness check only
# ---------------------------------------------------------------------------
def ref_forward(x_nchw, params):
    hi = lax.Precision.HIGHEST

    def conv(x, w, b, stride):
        y = lax.conv_general_dilated(x, w, (stride, stride), ((1, 1), (1, 1)),
                                     dimension_numbers=("NCHW", "OIHW", "NCHW"),
                                     precision=hi)
        return y + b[None, :, None, None]

    def lrelu(v):
        return jnp.where(v > 0, v, LRELU_SLOPE * v)

    x = lrelu(conv(x_nchw, params["conv1_w"], params["conv1_b"], 1))
    for bp in params["blocks"]:
        y = conv(x, bp["w"], bp["b"], bp["stride"])
        mean = jnp.mean(y, axis=(0, 2, 3), keepdims=True)
        var = jnp.mean((y - mean) ** 2, axis=(0, 2, 3), keepdims=True)
        y = (y - mean) / jnp.sqrt(var + BN_EPS)
        y = y * bp["gamma"][None, :, None, None] + bp["beta"][None, :, None, None]
        x = lrelu(y)
    pooled = jnp.mean(x, axis=(2, 3))
    c = params["cls"]
    h = lrelu(jnp.dot(pooled, c["w1"], precision=hi) + c["b1"])
    o = jax.nn.sigmoid(jnp.dot(h, c["w2"], precision=hi) + c["b2"])
    return o.reshape(-1, 1, 1, 1)


if __name__ == "__main__":
    key = jax.random.PRNGKey(0)
    k_param, k_x = jax.random.split(key)

    in_channels = 3
    channels = [16, 32]
    x = jax.random.normal(k_x, (2, in_channels, 16, 16), jnp.float32)   # NCHW

    params = init_params(k_param, in_channels, channels)
    prep = prepare_params(params)

    fwd = jax.jit(lambda inp: discriminator_forward(inp, prep))
    out = jax.block_until_ready(fwd(x))
    assert out.shape == (2, 1, 1, 1), out.shape

    ref = jax.block_until_ready(ref_forward(x, params))
    # bf16 activations + bf16 MXU operands vs fp32-HIGHEST reference.
    assert jnp.allclose(out, ref, atol=4e-2, rtol=4e-2), (out, ref)

    print("KERNEL_OK")
</pallas_src>

<mosaic_0001>
module attributes {stable_mosaic.version = 11 : i64} {
  func.func @kernel(%arg0: i32, %arg1: i32, %arg2: memref<1x1x336x24xbf16, #tpu.memory_space<vmem>>, %arg3: memref<3x24x128xbf16, #tpu.memory_space<vmem>>, %arg4: memref<1x128xf32, #tpu.memory_space<vmem>>, %arg5: memref<1x288x128xbf16, #tpu.memory_space<vmem>>) attributes {dimension_semantics = [#tpu.dimension_semantics<parallel>, #tpu.dimension_semantics<arbitrary>], iteration_bounds = array<i64: 2, 1>, scalar_prefetch = 0 : i64, scratch_operands = 0 : i64, tpu.core_type = #tpu.core_type<tc>, window_params = [{transform_indices = @transform_0, window_bounds = array<i64: 1, 1, 336, 24>}, {transform_indices = @transform_1, window_bounds = array<i64: 3, 24, 128>}, {transform_indices = @transform_2, window_bounds = array<i64: 1, 128>}, {transform_indices = @transform_3, window_bounds = array<i64: 1, 288, 128>}]} {
    %c0 = arith.constant 0 : index
    %c0_0 = arith.constant 0 : index
    %c0_1 = arith.constant 0 : index
    %c0_2 = arith.constant 0 : index
    %0 = vector.load %arg2[%c0, %c0_0, %c0_1, %c0_2] : memref<1x1x336x24xbf16, #tpu.memory_space<vmem>>, vector<1x1x288x24xbf16>
    %1 = vector.shape_cast %0 : vector<1x1x288x24xbf16> to vector<288x24xbf16>
    %c0_3 = arith.constant 0 : index
    %c0_4 = arith.constant 0 : index
    %c0_5 = arith.constant 0 : index
    %2 = vector.load %arg3[%c0_3, %c0_4, %c0_5] : memref<3x24x128xbf16, #tpu.memory_space<vmem>>, vector<1x24x128xbf16>
    %3 = vector.shape_cast %2 : vector<1x24x128xbf16> to vector<24x128xbf16>
    %cst = arith.constant dense<0.000000e+00> : vector<288x128xf32>
    %4 = tpu.matmul %1, %3, %cst {dimension_numbers = #tpu.dot_dimension_numbers<[1], [0], [0], [1], [0, 0, 1, 1], [], []>} : vector<288x24xbf16>, vector<24x128xbf16>, vector<288x128xf32> -> vector<288x128xf32>
    %c0_6 = arith.constant 0 : index
    %c0_7 = arith.constant 0 : index
    %c18 = arith.constant 18 : index
    %c0_8 = arith.constant 0 : index
    %5 = vector.load %arg2[%c0_6, %c0_7, %c18, %c0_8] : memref<1x1x336x24xbf16, #tpu.memory_space<vmem>>, vector<1x1x288x24xbf16>
    %6 = vector.shape_cast %5 : vector<1x1x288x24xbf16> to vector<288x24xbf16>
    %c1 = arith.constant 1 : index
    %c0_9 = arith.constant 0 : index
    %c0_10 = arith.constant 0 : index
    %7 = vector.load %arg3[%c1, %c0_9, %c0_10] : memref<3x24x128xbf16, #tpu.memory_space<vmem>>, vector<1x24x128xbf16>
    %8 = vector.shape_cast %7 : vector<1x24x128xbf16> to vector<24x128xbf16>
    %cst_11 = arith.constant dense<0.000000e+00> : vector<288x128xf32>
    %9 = tpu.matmul %6, %8, %cst_11 {dimension_numbers = #tpu.dot_dimension_numbers<[1], [0], [0], [1], [0, 0, 1, 1], [], []>} : vector<288x24xbf16>, vector<24x128xbf16>, vector<288x128xf32> -> vector<288x128xf32>
    %10 = arith.addf %4, %9 : vector<288x128xf32>
    %c0_12 = arith.constant 0 : index
    %c0_13 = arith.constant 0 : index
    %c36 = arith.constant 36 : index
    %c0_14 = arith.constant 0 : index
    %11 = vector.load %arg2[%c0_12, %c0_13, %c36, %c0_14] : memref<1x1x336x24xbf16, #tpu.memory_space<vmem>>, vector<1x1x288x24xbf16>
    %12 = vector.shape_cast %11 : vector<1x1x288x24xbf16> to vector<288x24xbf16>
    %c2 = arith.constant 2 : index
    %c0_15 = arith.constant 0 : index
    %c0_16 = arith.constant 0 : index
    %13 = vector.load %arg3[%c2, %c0_15, %c0_16] : memref<3x24x128xbf16, #tpu.memory_space<vmem>>, vector<1x24x128xbf16>
    %14 = vector.shape_cast %13 : vector<1x24x128xbf16> to vector<24x128xbf16>
    %cst_17 = arith.constant dense<0.000000e+00> : vector<288x128xf32>
    %15 = tpu.matmul %12, %14, %cst_17 {dimension_numbers = #tpu.dot_dimension_numbers<[1], [0], [0], [1], [0, 0, 1, 1], [], []>} : vector<288x24xbf16>, vector<24x128xbf16>, vector<288x128xf32> -> vector<288x128xf32>
    %16 = arith.addf %10, %15 : vector<288x128xf32>
    %c0_18 = arith.constant 0 : index
    %c0_19 = arith.constant 0 : index
    %17 = vector.load %arg4[%c0_18, %c0_19] : memref<1x128xf32, #tpu.memory_space<vmem>>, vector<1x128xf32>
    %18 = vector.broadcast %17 : vector<1x128xf32> to vector<288x128xf32>
    %19 = arith.addf %16, %18 : vector<288x128xf32>
    %cst_20 = arith.constant 0.000000e+00 : f32
    %20 = vector.broadcast %cst_20 : f32 to vector<288x128xf32>
    %21 = arith.cmpf ogt, %19, %20 : vector<288x128xf32>
    %cst_21 = arith.constant 2.000000e-01 : f32
    %22 = vector.broadcast %cst_21 : f32 to vector<288x128xf32>
    %23 = arith.mulf %22, %19 : vector<288x128xf32>
    %24 = arith.select %21, %19, %23 : vector<288x128xi1>, vector<288x128xf32>
    %25 = arith.truncf %24 : vector<288x128xf32> to vector<288x128xbf16>
    %c0_22 = arith.constant 0 : index
    %c0_23 = arith.constant 0 : index
    %c0_24 = arith.constant 0 : index
    %26 = vector.load %arg5[%c0_22, %c0_23, %c0_24] : memref<1x288x128xbf16, #tpu.memory_space<vmem>>, vector<1x288x128xbf16>
    %27 = vector.shape_cast %26 : vector<1x288x128xbf16> to vector<288x128xbf16>
    %28 = vector.shape_cast %25 : vector<288x128xbf16> to vector<1x288x128xbf16>
    tpu.vector_store %arg5[%c0_22, %c0_23, %c0_24], %28 {strides = array<i32>} : memref<1x288x128xbf16, #tpu.memory_space<vmem>>, vector<1x288x128xbf16>,
    return
  }
  func.func @transform_0(%arg0: i32, %arg1: i32) -> (i32, i32, i32, i32) {
    %c0_i32 = arith.constant 0 : i32
    %c0_i32_0 = arith.constant 0 : i32
    %c0_i32_1 = arith.constant 0 : i32
    %c0_i32_2 = arith.constant 0 : i32
    return %arg0, %c0_i32, %c0_i32_0, %c0_i32_1 : i32, i32, i32, i32
  }
  func.func @transform_1(%arg0: i32, %arg1: i32) -> (i32, i32, i32) {
    %c0_i32 = arith.constant 0 : i32
    %c0_i32_0 = arith.constant 0 : i32
    %c0_i32_1 = arith.constant 0 : i32
    return %c0_i32, %c0_i32_0, %arg1 : i32, i32, i32
  }
  func.func @transform_2(%arg0: i32, %arg1: i32) -> (i32, i32) {
    %c0_i32 = arith.constant 0 : i32
    %c0_i32_0 = arith.constant 0 : i32
    return %c0_i32, %arg1 : i32, i32
  }
  func.func @transform_3(%arg0: i32, %arg1: i32) -> (i32, i32, i32) {
    %c0_i32 = arith.constant 0 : i32
    %c0_i32_0 = arith.constant 0 : i32
    return %arg0, %c0_i32, %arg1 : i32, i32, i32
  }
}

module attributes {stable_mosaic.version = 11 : i64} {
  func.func @kernel(%arg0: i32, %arg1: i32, %arg2: memref<1x2x96x48xbf16, #tpu.memory_space<vmem>>, %arg3: memref<3x48x128xbf16, #tpu.memory_space<vmem>>, %arg4: memref<1x128xf32, #tpu.memory_space<vmem>>, %arg5: memref<80x1xf32, #tpu.memory_space<vmem>>, %arg6: memref<1x80x128xbf16, #tpu.memory_space<vmem>>, %arg7: memref<1x1x128xf32, #tpu.memory_space<vmem>>, %arg8: memref<1x1x128xf32, #tpu.memory_space<vmem>>) attributes {dimension_semantics = [#tpu.dimension_semantics<parallel>, #tpu.dimension_semantics<arbitrary>], iteration_bounds = array<i64: 2, 1>, scalar_prefetch = 0 : i64, scratch_operands = 0 : i64, tpu.core_type = #tpu.core_type<tc>, window_params = [{transform_indices = @transform_0, window_bounds = array<i64: 1, 2, 96, 48>}, {transform_indices = @transform_1, window_bounds = array<i64: 3, 48, 128>}, {transform_indices = @transform_2, window_bounds = array<i64: 1, 128>}, {pipeline_mode = #tpu.pipeline_mode<synchronous>, transform_indices = @transform_3, window_bounds = array<i64: 80, 1>}, {transform_indices = @transform_4, window_bounds = array<i64: 1, 80, 128>}, {transform_indices = @transform_5, window_bounds = array<i64: 1, 1, 128>}, {transform_indices = @transform_6, window_bounds = array<i64: 1, 1, 128>}]} {
    %c0 = arith.constant 0 : index
    %c0_0 = arith.constant 0 : index
    %c0_1 = arith.constant 0 : index
    %c0_2 = arith.constant 0 : index
    %0 = vector.load %arg2[%c0, %c0_0, %c0_1, %c0_2] : memref<1x2x96x48xbf16, #tpu.memory_space<vmem>>, vector<1x1x80x48xbf16>
    %1 = vector.shape_cast %0 : vector<1x1x80x48xbf16> to vector<80x48xbf16>
    %c0_3 = arith.constant 0 : index
    %c0_4 = arith.constant 0 : index
    %c0_5 = arith.constant 0 : index
    %2 = vector.load %arg3[%c0_3, %c0_4, %c0_5] : memref<3x48x128xbf16, #tpu.memory_space<vmem>>, vector<1x48x128xbf16>
    %3 = vector.shape_cast %2 : vector<1x48x128xbf16> to vector<48x128xbf16>
    %cst = arith.constant dense<0.000000e+00> : vector<80x128xf32>
    %4 = tpu.matmul %1, %3, %cst {dimension_numbers = #tpu.dot_dimension_numbers<[1], [0], [0], [1], [0, 0, 1, 1], [], []>} : vector<80x48xbf16>, vector<48x128xbf16>, vector<80x128xf32> -> vector<80x128xf32>
    %c0_6 = arith.constant 0 : index
    %c1 = arith.constant 1 : index
    %c0_7 = arith.constant 0 : index
    %c0_8 = arith.constant 0 : index
    %5 = vector.load %arg2[%c0_6, %c1, %c0_7, %c0_8] : memref<1x2x96x48xbf16, #tpu.memory_space<vmem>>, vector<1x1x80x48xbf16>
    %6 = vector.shape_cast %5 : vector<1x1x80x48xbf16> to vector<80x48xbf16>
    %c1_9 = arith.constant 1 : index
    %c0_10 = arith.constant 0 : index
    %c0_11 = arith.constant 0 : index
    %7 = vector.load %arg3[%c1_9, %c0_10, %c0_11] : memref<3x48x128xbf16, #tpu.memory_space<vmem>>, vector<1x48x128xbf16>
    %8 = vector.shape_cast %7 : vector<1x48x128xbf16> to vector<48x128xbf16>
    %cst_12 = arith.constant dense<0.000000e+00> : vector<80x128xf32>
    %9 = tpu.matmul %6, %8, %cst_12 {dimension_numbers = #tpu.dot_dimension_numbers<[1], [0], [0], [1], [0, 0, 1, 1], [], []>} : vector<80x48xbf16>, vector<48x128xbf16>, vector<80x128xf32> -> vector<80x128xf32>
    %10 = arith.addf %4, %9 : vector<80x128xf32>
    %c0_13 = arith.constant 0 : index
    %c0_14 = arith.constant 0 : index
    %c9 = arith.constant 9 : index
    %c0_15 = arith.constant 0 : index
    %11 = vector.load %arg2[%c0_13, %c0_14, %c9, %c0_15] : memref<1x2x96x48xbf16, #tpu.memory_space<vmem>>, vector<1x1x80x48xbf16>
    %12 = vector.shape_cast %11 : vector<1x1x80x48xbf16> to vector<80x48xbf16>
    %c2 = arith.constant 2 : index
    %c0_16 = arith.constant 0 : index
    %c0_17 = arith.constant 0 : index
    %13 = vector.load %arg3[%c2, %c0_16, %c0_17] : memref<3x48x128xbf16, #tpu.memory_space<vmem>>, vector<1x48x128xbf16>
    %14 = vector.shape_cast %13 : vector<1x48x128xbf16> to vector<48x128xbf16>
    %cst_18 = arith.constant dense<0.000000e+00> : vector<80x128xf32>
    %15 = tpu.matmul %12, %14, %cst_18 {dimension_numbers = #tpu.dot_dimension_numbers<[1], [0], [0], [1], [0, 0, 1, 1], [], []>} : vector<80x48xbf16>, vector<48x128xbf16>, vector<80x128xf32> -> vector<80x128xf32>
    %16 = arith.addf %10, %15 : vector<80x128xf32>
    %c0_19 = arith.constant 0 : index
    %c0_20 = arith.constant 0 : index
    %17 = vector.load %arg4[%c0_19, %c0_20] : memref<1x128xf32, #tpu.memory_space<vmem>>, vector<1x128xf32>
    %18 = vector.broadcast %17 : vector<1x128xf32> to vector<80x128xf32>
    %19 = arith.addf %16, %18 : vector<80x128xf32>
    %20 = arith.truncf %19 : vector<80x128xf32> to vector<80x128xbf16>
    %c0_21 = arith.constant 0 : index
    %c0_22 = arith.constant 0 : index
    %c0_23 = arith.constant 0 : index
    %21 = vector.load %arg6[%c0_21, %c0_22, %c0_23] : memref<1x80x128xbf16, #tpu.memory_space<vmem>>, vector<1x80x128xbf16>
    %22 = vector.shape_cast %21 : vector<1x80x128xbf16> to vector<80x128xbf16>
    %23 = vector.shape_cast %20 : vector<80x128xbf16> to vector<1x80x128xbf16>
    tpu.vector_store %arg6[%c0_21, %c0_22, %c0_23], %23 {strides = array<i32>} : memref<1x80x128xbf16, #tpu.memory_space<vmem>>, vector<1x80x128xbf16>,
    %c0_24 = arith.constant 0 : index
    %c0_25 = arith.constant 0 : index
    %24 = vector.load %arg5[%c0_24, %c0_25] : memref<80x1xf32, #tpu.memory_space<vmem>>, vector<80x1xf32>
    %25 = vector.broadcast %24 : vector<80x1xf32> to vector<80x128xf32>
    %26 = arith.mulf %19, %25 : vector<80x128xf32>
    %cst_26 = arith.constant dense<0.000000e+00> : vector<128xf32>
    %27 = vector.multi_reduction <add>, %26, %cst_26 [0] : vector<80x128xf32> to vector<128xf32>
    %28 = vector.shape_cast %27 : vector<128xf32> to vector<1x128xf32>
    %c0_27 = arith.constant 0 : index
    %c0_28 = arith.constant 0 : index
    %c0_29 = arith.constant 0 : index
    %29 = vector.load %arg7[%c0_27, %c0_28, %c0_29] : memref<1x1x128xf32, #tpu.memory_space<vmem>>, vector<1x1x128xf32>
    %30 = vector.shape_cast %29 : vector<1x1x128xf32> to vector<1x128xf32>
    %31 = vector.shape_cast %28 : vector<1x128xf32> to vector<1x1x128xf32>
    tpu.vector_store %arg7[%c0_27, %c0_28, %c0_29], %31 {strides = array<i32>} : memref<1x1x128xf32, #tpu.memory_space<vmem>>, vector<1x1x128xf32>,
    %32 = arith.mulf %26, %19 : vector<80x128xf32>
    %cst_30 = arith.constant dense<0.000000e+00> : vector<128xf32>
    %33 = vector.multi_reduction <add>, %32, %cst_30 [0] : vector<80x128xf32> to vector<128xf32>
    %34 = vector.shape_cast %33 : vector<128xf32> to vector<1x128xf32>
    %c0_31 = arith.constant 0 : index
    %c0_32 = arith.constant 0 : index
    %c0_33 = arith.constant 0 : index
    %35 = vector.load %arg8[%c0_31, %c0_32, %c0_33] : memref<1x1x128xf32, #tpu.memory_space<vmem>>, vector<1x1x128xf32>
    %36 = vector.shape_cast %35 : vector<1x1x128xf32> to vector<1x128xf32>
    %37 = vector.shape_cast %34 : vector<1x128xf32> to vector<1x1x128xf32>
    tpu.vector_store %arg8[%c0_31, %c0_32, %c0_33], %37 {strides = array<i32>} : memref<1x1x128xf32, #tpu.memory_space<vmem>>, vector<1x1x128xf32>,
    return
  }
  func.func @transform_0(%arg0: i32, %arg1: i32) -> (i32, i32, i32, i32) {
    %c0_i32 = arith.constant 0 : i32
    %c0_i32_0 = arith.constant 0 : i32
    %c0_i32_1 = arith.constant 0 : i32
    %c0_i32_2 = arith.constant 0 : i32
    return %arg0, %c0_i32, %c0_i32_0, %c0_i32_1 : i32, i32, i32, i32
  }
  func.func @transform_1(%arg0: i32, %arg1: i32) -> (i32, i32, i32) {
    %c0_i32 = arith.constant 0 : i32
    %c0_i32_0 = arith.constant 0 : i32
    %c0_i32_1 = arith.constant 0 : i32
    return %c0_i32, %c0_i32_0, %arg1 : i32, i32, i32
  }
  func.func @transform_2(%arg0: i32, %arg1: i32) -> (i32, i32) {
    %c0_i32 = arith.constant 0 : i32
    %c0_i32_0 = arith.constant 0 : i32
    return %c0_i32, %arg1 : i32, i32
  }
  func.func @transform_3(%arg0: i32, %arg1: i32) -> (i32, i32) {
    %c0_i32 = arith.constant 0 : i32
    %c0_i32_0 = arith.constant 0 : i32
    %c0_i32_1 = arith.constant 0 : i32
    return %c0_i32, %c0_i32_0 : i32, i32
  }
  func.func @transform_4(%arg0: i32, %arg1: i32) -> (i32, i32, i32) {
    %c0_i32 = arith.constant 0 : i32
    %c0_i32_0 = arith.constant 0 : i32
    return %arg0, %c0_i32, %arg1 : i32, i32, i32
  }
  func.func @transform_5(%arg0: i32, %arg1: i32) -> (i32, i32, i32) {
    %c0_i32 = arith.constant 0 : i32
    %c0_i32_0 = arith.constant 0 : i32
    return %arg0, %c0_i32, %arg1 : i32, i32, i32
  }
  func.func @transform_6(%arg0: i32, %arg1: i32) -> (i32, i32, i32) {
    %c0_i32 = arith.constant 0 : i32
    %c0_i32_0 = arith.constant 0 : i32
    return %arg0, %c0_i32, %arg1 : i32, i32, i32
  }
}

module attributes {stable_mosaic.version = 11 : i64} {
  func.func @kernel(%arg0: i32, %arg1: i32, %arg2: memref<1x1x112x48xbf16, #tpu.memory_space<vmem>>, %arg3: memref<3x48x128xbf16, #tpu.memory_space<vmem>>, %arg4: memref<1x128xf32, #tpu.memory_space<vmem>>, %arg5: memref<80x1xf32, #tpu.memory_space<vmem>>, %arg6: memref<1x80x128xbf16, #tpu.memory_space<vmem>>, %arg7: memref<1x1x128xf32, #tpu.memory_space<vmem>>, %arg8: memref<1x1x128xf32, #tpu.memory_space<vmem>>) attributes {dimension_semantics = [#tpu.dimension_semantics<parallel>, #tpu.dimension_semantics<arbitrary>], iteration_bounds = array<i64: 2, 1>, scalar_prefetch = 0 : i64, scratch_operands = 0 : i64, tpu.core_type = #tpu.core_type<tc>, window_params = [{transform_indices = @transform_0, window_bounds = array<i64: 1, 1, 112, 48>}, {transform_indices = @transform_1, window_bounds = array<i64: 3, 48, 128>}, {transform_indices = @transform_2, window_bounds = array<i64: 1, 128>}, {pipeline_mode = #tpu.pipeline_mode<synchronous>, transform_indices = @transform_3, window_bounds = array<i64: 80, 1>}, {transform_indices = @transform_4, window_bounds = array<i64: 1, 80, 128>}, {transform_indices = @transform_5, window_bounds = array<i64: 1, 1, 128>}, {transform_indices = @transform_6, window_bounds = array<i64: 1, 1, 128>}]} {
    %c0 = arith.constant 0 : index
    %c0_0 = arith.constant 0 : index
    %c0_1 = arith.constant 0 : index
    %c0_2 = arith.constant 0 : index
    %0 = vector.load %arg2[%c0, %c0_0, %c0_1, %c0_2] : memref<1x1x112x48xbf16, #tpu.memory_space<vmem>>, vector<1x1x80x48xbf16>
    %1 = vector.shape_cast %0 : vector<1x1x80x48xbf16> to vector<80x48xbf16>
    %c0_3 = arith.constant 0 : index
    %c0_4 = arith.constant 0 : index
    %c0_5 = arith.constant 0 : index
    %2 = vector.load %arg3[%c0_3, %c0_4, %c0_5] : memref<3x48x128xbf16, #tpu.memory_space<vmem>>, vector<1x48x128xbf16>
    %3 = vector.shape_cast %2 : vector<1x48x128xbf16> to vector<48x128xbf16>
    %cst = arith.constant dense<0.000000e+00> : vector<80x128xf32>
    %4 = tpu.matmul %1, %3, %cst {dimension_numbers = #tpu.dot_dimension_numbers<[1], [0], [0], [1], [0, 0, 1, 1], [], []>} : vector<80x48xbf16>, vector<48x128xbf16>, vector<80x128xf32> -> vector<80x128xf32>
    %c0_6 = arith.constant 0 : index
    %c0_7 = arith.constant 0 : index
    %c10 = arith.constant 10 : index
    %c0_8 = arith.constant 0 : index
    %5 = vector.load %arg2[%c0_6, %c0_7, %c10, %c0_8] : memref<1x1x112x48xbf16, #tpu.memory_space<vmem>>, vector<1x1x80x48xbf16>
    %6 = vector.shape_cast %5 : vector<1x1x80x48xbf16> to vector<80x48xbf16>
    %c1 = arith.constant 1 : index
    %c0_9 = arith.constant 0 : index
    %c0_10 = arith.constant 0 : index
    %7 = vector.load %arg3[%c1, %c0_9, %c0_10] : memref<3x48x128xbf16, #tpu.memory_space<vmem>>, vector<1x48x128xbf16>
    %8 = vector.shape_cast %7 : vector<1x48x128xbf16> to vector<48x128xbf16>
    %cst_11 = arith.constant dense<0.000000e+00> : vector<80x128xf32>
    %9 = tpu.matmul %6, %8, %cst_11 {dimension_numbers = #tpu.dot_dimension_numbers<[1], [0], [0], [1], [0, 0, 1, 1], [], []>} : vector<80x48xbf16>, vector<48x128xbf16>, vector<80x128xf32> -> vector<80x128xf32>
    %10 = arith.addf %4, %9 : vector<80x128xf32>
    %c0_12 = arith.constant 0 : index
    %c0_13 = arith.constant 0 : index
    %c20 = arith.constant 20 : index
    %c0_14 = arith.constant 0 : index
    %11 = vector.load %arg2[%c0_12, %c0_13, %c20, %c0_14] : memref<1x1x112x48xbf16, #tpu.memory_space<vmem>>, vector<1x1x80x48xbf16>
    %12 = vector.shape_cast %11 : vector<1x1x80x48xbf16> to vector<80x48xbf16>
    %c2 = arith.constant 2 : index
    %c0_15 = arith.constant 0 : index
    %c0_16 = arith.constant 0 : index
    %13 = vector.load %arg3[%c2, %c0_15, %c0_16] : memref<3x48x128xbf16, #tpu.memory_space<vmem>>, vector<1x48x128xbf16>
    %14 = vector.shape_cast %13 : vector<1x48x128xbf16> to vector<48x128xbf16>
    %cst_17 = arith.constant dense<0.000000e+00> : vector<80x128xf32>
    %15 = tpu.matmul %12, %14, %cst_17 {dimension_numbers = #tpu.dot_dimension_numbers<[1], [0], [0], [1], [0, 0, 1, 1], [], []>} : vector<80x48xbf16>, vector<48x128xbf16>, vector<80x128xf32> -> vector<80x128xf32>
    %16 = arith.addf %10, %15 : vector<80x128xf32>
    %c0_18 = arith.constant 0 : index
    %c0_19 = arith.constant 0 : index
    %17 = vector.load %arg4[%c0_18, %c0_19] : memref<1x128xf32, #tpu.memory_space<vmem>>, vector<1x128xf32>
    %18 = vector.broadcast %17 : vector<1x128xf32> to vector<80x128xf32>
    %19 = arith.addf %16, %18 : vector<80x128xf32>
    %20 = arith.truncf %19 : vector<80x128xf32> to vector<80x128xbf16>
    %c0_20 = arith.constant 0 : index
    %c0_21 = arith.constant 0 : index
    %c0_22 = arith.constant 0 : index
    %21 = vector.load %arg6[%c0_20, %c0_21, %c0_22] : memref<1x80x128xbf16, #tpu.memory_space<vmem>>, vector<1x80x128xbf16>
    %22 = vector.shape_cast %21 : vector<1x80x128xbf16> to vector<80x128xbf16>
    %23 = vector.shape_cast %20 : vector<80x128xbf16> to vector<1x80x128xbf16>
    tpu.vector_store %arg6[%c0_20, %c0_21, %c0_22], %23 {strides = array<i32>} : memref<1x80x128xbf16, #tpu.memory_space<vmem>>, vector<1x80x128xbf16>,
    %c0_23 = arith.constant 0 : index
    %c0_24 = arith.constant 0 : index
    %24 = vector.load %arg5[%c0_23, %c0_24] : memref<80x1xf32, #tpu.memory_space<vmem>>, vector<80x1xf32>
    %25 = vector.broadcast %24 : vector<80x1xf32> to vector<80x128xf32>
    %26 = arith.mulf %19, %25 : vector<80x128xf32>
    %cst_25 = arith.constant dense<0.000000e+00> : vector<128xf32>
    %27 = vector.multi_reduction <add>, %26, %cst_25 [0] : vector<80x128xf32> to vector<128xf32>
    %28 = vector.shape_cast %27 : vector<128xf32> to vector<1x128xf32>
    %c0_26 = arith.constant 0 : index
    %c0_27 = arith.constant 0 : index
    %c0_28 = arith.constant 0 : index
    %29 = vector.load %arg7[%c0_26, %c0_27, %c0_28] : memref<1x1x128xf32, #tpu.memory_space<vmem>>, vector<1x1x128xf32>
    %30 = vector.shape_cast %29 : vector<1x1x128xf32> to vector<1x128xf32>
    %31 = vector.shape_cast %28 : vector<1x128xf32> to vector<1x1x128xf32>
    tpu.vector_store %arg7[%c0_26, %c0_27, %c0_28], %31 {strides = array<i32>} : memref<1x1x128xf32, #tpu.memory_space<vmem>>, vector<1x1x128xf32>,
    %32 = arith.mulf %26, %19 : vector<80x128xf32>
    %cst_29 = arith.constant dense<0.000000e+00> : vector<128xf32>
    %33 = vector.multi_reduction <add>, %32, %cst_29 [0] : vector<80x128xf32> to vector<128xf32>
    %34 = vector.shape_cast %33 : vector<128xf32> to vector<1x128xf32>
    %c0_30 = arith.constant 0 : index
    %c0_31 = arith.constant 0 : index
    %c0_32 = arith.constant 0 : index
    %35 = vector.load %arg8[%c0_30, %c0_31, %c0_32] : memref<1x1x128xf32, #tpu.memory_space<vmem>>, vector<1x1x128xf32>
    %36 = vector.shape_cast %35 : vector<1x1x128xf32> to vector<1x128xf32>
    %37 = vector.shape_cast %34 : vector<1x128xf32> to vector<1x1x128xf32>
    tpu.vector_store %arg8[%c0_30, %c0_31, %c0_32], %37 {strides = array<i32>} : memref<1x1x128xf32, #tpu.memory_space<vmem>>, vector<1x1x128xf32>,
    return
  }
  func.func @transform_0(%arg0: i32, %arg1: i32) -> (i32, i32, i32, i32) {
    %c0_i32 = arith.constant 0 : i32
    %c0_i32_0 = arith.constant 0 : i32
    %c0_i32_1 = arith.constant 0 : i32
    %c0_i32_2 = arith.constant 0 : i32
    return %arg0, %c0_i32, %c0_i32_0, %c0_i32_1 : i32, i32, i32, i32
  }
  func.func @transform_1(%arg0: i32, %arg1: i32) -> (i32, i32, i32) {
    %c0_i32 = arith.constant 0 : i32
    %c0_i32_0 = arith.constant 0 : i32
    %c0_i32_1 = arith.constant 0 : i32
    return %c0_i32, %c0_i32_0, %arg1 : i32, i32, i32
  }
  func.func @transform_2(%arg0: i32, %arg1: i32) -> (i32, i32) {
    %c0_i32 = arith.constant 0 : i32
    %c0_i32_0 = arith.constant 0 : i32
    return %c0_i32, %arg1 : i32, i32
  }
  func.func @transform_3(%arg0: i32, %arg1: i32) -> (i32, i32) {
    %c0_i32 = arith.constant 0 : i32
    %c0_i32_0 = arith.constant 0 : i32
    %c0_i32_1 = arith.constant 0 : i32
    return %c0_i32, %c0_i32_0 : i32, i32
  }
  func.func @transform_4(%arg0: i32, %arg1: i32) -> (i32, i32, i32) {
    %c0_i32 = arith.constant 0 : i32
    %c0_i32_0 = arith.constant 0 : i32
    return %arg0, %c0_i32, %arg1 : i32, i32, i32
  }
  func.func @transform_5(%arg0: i32, %arg1: i32) -> (i32, i32, i32) {
    %c0_i32 = arith.constant 0 : i32
    %c0_i32_0 = arith.constant 0 : i32
    return %arg0, %c0_i32, %arg1 : i32, i32, i32
  }
  func.func @transform_6(%arg0: i32, %arg1: i32) -> (i32, i32, i32) {
    %c0_i32 = arith.constant 0 : i32
    %c0_i32_0 = arith.constant 0 : i32
    return %arg0, %c0_i32, %arg1 : i32, i32, i32
  }
}

module attributes {stable_mosaic.version = 11 : i64} {
  func.func @kernel(%arg0: i32, %arg1: i32, %arg2: memref<1x2x48x96xbf16, #tpu.memory_space<vmem>>, %arg3: memref<3x96x128xbf16, #tpu.memory_space<vmem>>, %arg4: memref<1x128xf32, #tpu.memory_space<vmem>>, %arg5: memref<32x1xf32, #tpu.memory_space<vmem>>, %arg6: memref<1x32x128xbf16, #tpu.memory_space<vmem>>, %arg7: memref<1x1x128xf32, #tpu.memory_space<vmem>>, %arg8: memref<1x1x128xf32, #tpu.memory_space<vmem>>) attributes {dimension_semantics = [#tpu.dimension_semantics<parallel>, #tpu.dimension_semantics<arbitrary>], iteration_bounds = array<i64: 2, 1>, scalar_prefetch = 0 : i64, scratch_operands = 0 : i64, tpu.core_type = #tpu.core_type<tc>, window_params = [{transform_indices = @transform_0, window_bounds = array<i64: 1, 2, 48, 96>}, {transform_indices = @transform_1, window_bounds = array<i64: 3, 96, 128>}, {transform_indices = @transform_2, window_bounds = array<i64: 1, 128>}, {pipeline_mode = #tpu.pipeline_mode<synchronous>, transform_indices = @transform_3, window_bounds = array<i64: 32, 1>}, {transform_indices = @transform_4, window_bounds = array<i64: 1, 32, 128>}, {transform_indices = @transform_5, window_bounds = array<i64: 1, 1, 128>}, {transform_indices = @transform_6, window_bounds = array<i64: 1, 1, 128>}]} {
    %c0 = arith.constant 0 : index
    %c0_0 = arith.constant 0 : index
    %c0_1 = arith.constant 0 : index
    %c0_2 = arith.constant 0 : index
    %0 = vector.load %arg2[%c0, %c0_0, %c0_1, %c0_2] : memref<1x2x48x96xbf16, #tpu.memory_space<vmem>>, vector<1x1x32x96xbf16>
    %1 = vector.shape_cast %0 : vector<1x1x32x96xbf16> to vector<32x96xbf16>
    %c0_3 = arith.constant 0 : index
    %c0_4 = arith.constant 0 : index
    %c0_5 = arith.constant 0 : index
    %2 = vector.load %arg3[%c0_3, %c0_4, %c0_5] : memref<3x96x128xbf16, #tpu.memory_space<vmem>>, vector<1x96x128xbf16>
    %3 = vector.shape_cast %2 : vector<1x96x128xbf16> to vector<96x128xbf16>
    %cst = arith.constant dense<0.000000e+00> : vector<32x128xf32>
    %4 = tpu.matmul %1, %3, %cst {dimension_numbers = #tpu.dot_dimension_numbers<[1], [0], [0], [1], [0, 0, 1, 1], [], []>} : vector<32x96xbf16>, vector<96x128xbf16>, vector<32x128xf32> -> vector<32x128xf32>
    %c0_6 = arith.constant 0 : index
    %c1 = arith.constant 1 : index
    %c0_7 = arith.constant 0 : index
    %c0_8 = arith.constant 0 : index
    %5 = vector.load %arg2[%c0_6, %c1, %c0_7, %c0_8] : memref<1x2x48x96xbf16, #tpu.memory_space<vmem>>, vector<1x1x32x96xbf16>
    %6 = vector.shape_cast %5 : vector<1x1x32x96xbf16> to vector<32x96xbf16>
    %c1_9 = arith.constant 1 : index
    %c0_10 = arith.constant 0 : index
    %c0_11 = arith.constant 0 : index
    %7 = vector.load %arg3[%c1_9, %c0_10, %c0_11] : memref<3x96x128xbf16, #tpu.memory_space<vmem>>, vector<1x96x128xbf16>
    %8 = vector.shape_cast %7 : vector<1x96x128xbf16> to vector<96x128xbf16>
    %cst_12 = arith.constant dense<0.000000e+00> : vector<32x128xf32>
    %9 = tpu.matmul %6, %8, %cst_12 {dimension_numbers = #tpu.dot_dimension_numbers<[1], [0], [0], [1], [0, 0, 1, 1], [], []>} : vector<32x96xbf16>, vector<96x128xbf16>, vector<32x128xf32> -> vector<32x128xf32>
    %10 = arith.addf %4, %9 : vector<32x128xf32>
    %c0_13 = arith.constant 0 : index
    %c0_14 = arith.constant 0 : index
    %c5 = arith.constant 5 : index
    %c0_15 = arith.constant 0 : index
    %11 = vector.load %arg2[%c0_13, %c0_14, %c5, %c0_15] : memref<1x2x48x96xbf16, #tpu.memory_space<vmem>>, vector<1x1x32x96xbf16>
    %12 = vector.shape_cast %11 : vector<1x1x32x96xbf16> to vector<32x96xbf16>
    %c2 = arith.constant 2 : index
    %c0_16 = arith.constant 0 : index
    %c0_17 = arith.constant 0 : index
    %13 = vector.load %arg3[%c2, %c0_16, %c0_17] : memref<3x96x128xbf16, #tpu.memory_space<vmem>>, vector<1x96x128xbf16>
    %14 = vector.shape_cast %13 : vector<1x96x128xbf16> to vector<96x128xbf16>
    %cst_18 = arith.constant dense<0.000000e+00> : vector<32x128xf32>
    %15 = tpu.matmul %12, %14, %cst_18 {dimension_numbers = #tpu.dot_dimension_numbers<[1], [0], [0], [1], [0, 0, 1, 1], [], []>} : vector<32x96xbf16>, vector<96x128xbf16>, vector<32x128xf32> -> vector<32x128xf32>
    %16 = arith.addf %10, %15 : vector<32x128xf32>
    %c0_19 = arith.constant 0 : index
    %c0_20 = arith.constant 0 : index
    %17 = vector.load %arg4[%c0_19, %c0_20] : memref<1x128xf32, #tpu.memory_space<vmem>>, vector<1x128xf32>
    %18 = vector.broadcast %17 : vector<1x128xf32> to vector<32x128xf32>
    %19 = arith.addf %16, %18 : vector<32x128xf32>
    %20 = arith.truncf %19 : vector<32x128xf32> to vector<32x128xbf16>
    %c0_21 = arith.constant 0 : index
    %c0_22 = arith.constant 0 : index
    %c0_23 = arith.constant 0 : index
    %21 = vector.load %arg6[%c0_21, %c0_22, %c0_23] : memref<1x32x128xbf16, #tpu.memory_space<vmem>>, vector<1x32x128xbf16>
    %22 = vector.shape_cast %21 : vector<1x32x128xbf16> to vector<32x128xbf16>
    %23 = vector.shape_cast %20 : vector<32x128xbf16> to vector<1x32x128xbf16>
    tpu.vector_store %arg6[%c0_21, %c0_22, %c0_23], %23 {strides = array<i32>} : memref<1x32x128xbf16, #tpu.memory_space<vmem>>, vector<1x32x128xbf16>,
    %c0_24 = arith.constant 0 : index
    %c0_25 = arith.constant 0 : index
    %24 = vector.load %arg5[%c0_24, %c0_25] : memref<32x1xf32, #tpu.memory_space<vmem>>, vector<32x1xf32>
    %25 = vector.broadcast %24 : vector<32x1xf32> to vector<32x128xf32>
    %26 = arith.mulf %19, %25 : vector<32x128xf32>
    %cst_26 = arith.constant dense<0.000000e+00> : vector<128xf32>
    %27 = vector.multi_reduction <add>, %26, %cst_26 [0] : vector<32x128xf32> to vector<128xf32>
    %28 = vector.shape_cast %27 : vector<128xf32> to vector<1x128xf32>
    %c0_27 = arith.constant 0 : index
    %c0_28 = arith.constant 0 : index
    %c0_29 = arith.constant 0 : index
    %29 = vector.load %arg7[%c0_27, %c0_28, %c0_29] : memref<1x1x128xf32, #tpu.memory_space<vmem>>, vector<1x1x128xf32>
    %30 = vector.shape_cast %29 : vector<1x1x128xf32> to vector<1x128xf32>
    %31 = vector.shape_cast %28 : vector<1x128xf32> to vector<1x1x128xf32>
    tpu.vector_store %arg7[%c0_27, %c0_28, %c0_29], %31 {strides = array<i32>} : memref<1x1x128xf32, #tpu.memory_space<vmem>>, vector<1x1x128xf32>,
    %32 = arith.mulf %26, %19 : vector<32x128xf32>
    %cst_30 = arith.constant dense<0.000000e+00> : vector<128xf32>
    %33 = vector.multi_reduction <add>, %32, %cst_30 [0] : vector<32x128xf32> to vector<128xf32>
    %34 = vector.shape_cast %33 : vector<128xf32> to vector<1x128xf32>
    %c0_31 = arith.constant 0 : index
    %c0_32 = arith.constant 0 : index
    %c0_33 = arith.constant 0 : index
    %35 = vector.load %arg8[%c0_31, %c0_32, %c0_33] : memref<1x1x128xf32, #tpu.memory_space<vmem>>, vector<1x1x128xf32>
    %36 = vector.shape_cast %35 : vector<1x1x128xf32> to vector<1x128xf32>
    %37 = vector.shape_cast %34 : vector<1x128xf32> to vector<1x1x128xf32>
    tpu.vector_store %arg8[%c0_31, %c0_32, %c0_33], %37 {strides = array<i32>} : memref<1x1x128xf32, #tpu.memory_space<vmem>>, vector<1x1x128xf32>,
    return
  }
  func.func @transform_0(%arg0: i32, %arg1: i32) -> (i32, i32, i32, i32) {
    %c0_i32 = arith.constant 0 : i32
    %c0_i32_0 = arith.constant 0 : i32
    %c0_i32_1 = arith.constant 0 : i32
    %c0_i32_2 = arith.constant 0 : i32
    return %arg0, %c0_i32, %c0_i32_0, %c0_i32_1 : i32, i32, i32, i32
  }
  func.func @transform_1(%arg0: i32, %arg1: i32) -> (i32, i32, i32) {
    %c0_i32 = arith.constant 0 : i32
    %c0_i32_0 = arith.constant 0 : i32
    %c0_i32_1 = arith.constant 0 : i32
    return %c0_i32, %c0_i32_0, %arg1 : i32, i32, i32
  }
  func.func @transform_2(%arg0: i32, %arg1: i32) -> (i32, i32) {
    %c0_i32 = arith.constant 0 : i32
    %c0_i32_0 = arith.constant 0 : i32
    return %c0_i32, %arg1 : i32, i32
  }
  func.func @transform_3(%arg0: i32, %arg1: i32) -> (i32, i32) {
    %c0_i32 = arith.constant 0 : i32
    %c0_i32_0 = arith.constant 0 : i32
    %c0_i32_1 = arith.constant 0 : i32
    return %c0_i32, %c0_i32_0 : i32, i32
  }
  func.func @transform_4(%arg0: i32, %arg1: i32) -> (i32, i32, i32) {
    %c0_i32 = arith.constant 0 : i32
    %c0_i32_0 = arith.constant 0 : i32
    return %arg0, %c0_i32, %arg1 : i32, i32, i32
  }
  func.func @transform_5(%arg0: i32, %arg1: i32) -> (i32, i32, i32) {
    %c0_i32 = arith.constant 0 : i32
    %c0_i32_0 = arith.constant 0 : i32
    return %arg0, %c0_i32, %arg1 : i32, i32, i32
  }
  func.func @transform_6(%arg0: i32, %arg1: i32) -> (i32, i32, i32) {
    %c0_i32 = arith.constant 0 : i32
    %c0_i32_0 = arith.constant 0 : i32
    return %arg0, %c0_i32, %arg1 : i32, i32, i32
  }
}

module attributes {stable_mosaic.version = 11 : i64} {
  func.func @_head_kernel(%arg0: i32, %arg1: memref<8x128xbf16, #tpu.memory_space<vmem>>, %arg2: memref<128x128xbf16, #tpu.memory_space<vmem>>, %arg3: memref<1x128xf32, #tpu.memory_space<vmem>>, %arg4: memref<128x128xbf16, #tpu.memory_space<vmem>>, %arg5: memref<1x128xf32, #tpu.memory_space<vmem>>, %arg6: memref<8x128xf32, #tpu.memory_space<vmem>>) attributes {dimension_semantics = [#tpu.dimension_semantics<arbitrary>], iteration_bounds = array<i64: 1>, scalar_prefetch = 0 : i64, scratch_operands = 0 : i64, tpu.core_type = #tpu.core_type<tc>, window_params = [{pipeline_mode = #tpu.pipeline_mode<synchronous>, transform_indices = @transform_0, window_bounds = array<i64: 8, 128>}, {pipeline_mode = #tpu.pipeline_mode<synchronous>, transform_indices = @transform_1, window_bounds = array<i64: 128, 128>}, {pipeline_mode = #tpu.pipeline_mode<synchronous>, transform_indices = @transform_2, window_bounds = array<i64: 1, 128>}, {pipeline_mode = #tpu.pipeline_mode<synchronous>, transform_indices = @transform_3, window_bounds = array<i64: 128, 128>}, {pipeline_mode = #tpu.pipeline_mode<synchronous>, transform_indices = @transform_4, window_bounds = array<i64: 1, 128>}, {pipeline_mode = #tpu.pipeline_mode<synchronous>, transform_indices = @transform_5, window_bounds = array<i64: 8, 128>}]} {
    %c0 = arith.constant 0 : index
    %c0_0 = arith.constant 0 : index
    %0 = vector.load %arg1[%c0, %c0_0] : memref<8x128xbf16, #tpu.memory_space<vmem>>, vector<8x128xbf16>
    %c0_1 = arith.constant 0 : index
    %c0_2 = arith.constant 0 : index
    %1 = vector.load %arg2[%c0_1, %c0_2] : memref<128x128xbf16, #tpu.memory_space<vmem>>, vector<128x128xbf16>
    %cst = arith.constant dense<0.000000e+00> : vector<8x128xf32>
    %2 = tpu.matmul %0, %1, %cst {dimension_numbers = #tpu.dot_dimension_numbers<[1], [0], [0], [1], [0, 0, 1, 1], [], []>} : vector<8x128xbf16>, vector<128x128xbf16>, vector<8x128xf32> -> vector<8x128xf32>
    %c0_3 = arith.constant 0 : index
    %c0_4 = arith.constant 0 : index
    %3 = vector.load %arg3[%c0_3, %c0_4] : memref<1x128xf32, #tpu.memory_space<vmem>>, vector<1x128xf32>
    %4 = vector.broadcast %3 : vector<1x128xf32> to vector<8x128xf32>
    %5 = arith.addf %2, %4 : vector<8x128xf32>
    %cst_5 = arith.constant 0.000000e+00 : f32
    %6 = vector.broadcast %cst_5 : f32 to vector<8x128xf32>
    %7 = arith.cmpf ogt, %5, %6 : vector<8x128xf32>
    %cst_6 = arith.constant 2.000000e-01 : f32
    %8 = vector.broadcast %cst_6 : f32 to vector<8x128xf32>
    %9 = arith.mulf %8, %5 : vector<8x128xf32>
    %10 = arith.select %7, %5, %9 : vector<8x128xi1>, vector<8x128xf32>
    %11 = arith.truncf %10 : vector<8x128xf32> to vector<8x128xbf16>
    %c0_7 = arith.constant 0 : index
    %c0_8 = arith.constant 0 : index
    %12 = vector.load %arg4[%c0_7, %c0_8] : memref<128x128xbf16, #tpu.memory_space<vmem>>, vector<128x128xbf16>
    %cst_9 = arith.constant dense<0.000000e+00> : vector<8x128xf32>
    %13 = tpu.matmul %11, %12, %cst_9 {dimension_numbers = #tpu.dot_dimension_numbers<[1], [0], [0], [1], [0, 0, 1, 1], [], []>} : vector<8x128xbf16>, vector<128x128xbf16>, vector<8x128xf32> -> vector<8x128xf32>
    %c0_10 = arith.constant 0 : index
    %c0_11 = arith.constant 0 : index
    %14 = vector.load %arg5[%c0_10, %c0_11] : memref<1x128xf32, #tpu.memory_space<vmem>>, vector<1x128xf32>
    %15 = vector.broadcast %14 : vector<1x128xf32> to vector<8x128xf32>
    %16 = arith.addf %13, %15 : vector<8x128xf32>
    %cst_12 = arith.constant 0.000000e+00 : f32
    %17 = vector.broadcast %cst_12 : f32 to vector<8x128xf32>
    %18 = arith.subf %17, %16 : vector<8x128xf32>
    %19 = math.exp %18 : vector<8x128xf32>
    %cst_13 = arith.constant 1.000000e+00 : f32
    %20 = vector.broadcast %cst_13 : f32 to vector<8x128xf32>
    %21 = arith.addf %20, %19 : vector<8x128xf32>
    %22 = tpu.reciprocal %21 {approx = true} : vector<8x128xf32> -> vector<8x128xf32>
    %c0_14 = arith.constant 0 : index
    %c0_15 = arith.constant 0 : index
    %23 = vector.load %arg6[%c0_14, %c0_15] : memref<8x128xf32, #tpu.memory_space<vmem>>, vector<8x128xf32>
    tpu.vector_store %arg6[%c0_14, %c0_15], %22 {strides = array<i32>} : memref<8x128xf32, #tpu.memory_space<vmem>>, vector<8x128xf32>,
    return
  }
  func.func @transform_0(%arg0: i32) -> (i32, i32) {
    %c0_i32 = arith.constant 0 : i32
    %c0_i32_0 = arith.constant 0 : i32
    %c0_i32_1 = arith.constant 0 : i32
    return %c0_i32, %c0_i32_0 : i32, i32
  }
  func.func @transform_1(%arg0: i32) -> (i32, i32) {
    %c0_i32 = arith.constant 0 : i32
    %c0_i32_0 = arith.constant 0 : i32
    %c0_i32_1 = arith.constant 0 : i32
    return %c0_i32, %c0_i32_0 : i32, i32
  }
  func.func @transform_2(%arg0: i32) -> (i32, i32) {
    %c0_i32 = arith.constant 0 : i32
    %c0_i32_0 = arith.constant 0 : i32
    %c0_i32_1 = arith.constant 0 : i32
    return %c0_i32, %c0_i32_0 : i32, i32
  }
  func.func @transform_3(%arg0: i32) -> (i32, i32) {
    %c0_i32 = arith.constant 0 : i32
    %c0_i32_0 = arith.constant 0 : i32
    %c0_i32_1 = arith.constant 0 : i32
    return %c0_i32, %c0_i32_0 : i32, i32
  }
  func.func @transform_4(%arg0: i32) -> (i32, i32) {
    %c0_i32 = arith.constant 0 : i32
    %c0_i32_0 = arith.constant 0 : i32
    %c0_i32_1 = arith.constant 0 : i32
    return %c0_i32, %c0_i32_0 : i32, i32
  }
  func.func @transform_5(%arg0: i32) -> (i32, i32) {
    %c0_i32 = arith.constant 0 : i32
    %c0_i32_0 = arith.constant 0 : i32
    %c0_i32_1 = arith.constant 0 : i32
    return %c0_i32, %c0_i32_0 : i32, i32
  }
}

</mosaic_0001>

<bundles_post_ra>
// kernel: _lambda_.5
= control target key start
LH: loop header
LB: loop body
LE: loop exit
PB: predicated region body
PF: predicated region fallthrough
CT: control target
= control target key end

     0   :  { %s2385_s12 = smov 0   ;;  %s2387_s13 = smov 0   ;;  %s2817_s0 = inlined_call_operand.vmem [shape: bf16[2,1,336,24], index: 0, kind: input, shape index: {}]   ;;  %s2818_s1 = inlined_call_operand.vmem [shape: bf16[3,24,128], index: 1, kind: input, shape index: {}]   ;;  %s2819_s2 = inlined_call_operand.vmem [shape: f32[1,128], index: 2, kind: input, shape index: {}]   ;;  %s2820_s3 = inlined_call_operand.vmem [shape: bf16[2,288,128], index: 3, kind: output, shape index: {}]  }
   0x1   :  { %s2389_s14 = smov 0  }
   0x2 LB: > { %s25_s15 = sadd.s32 1, %s2359_s13  ;;  %p1790_p0 = scmp.ge.s32.totalorder %s2363_s14, 1  ;;  %s2363_s14 = sphi %s2389_s14, %s13_s14   ;;  %s2359_s13 = sphi %s2387_s13, %s2822_s13   ;;  %s2355_s12 = sphi %s2385_s12, %s2821_s12  }
   0x3   : > { %p27_p1 = scmp.ge.s32.totalorder %s25_s15, 2  ;;  %p168_p2 = scmp.lt.s32.totalorder %s2363_s14, 3 }
   0x5   : > { %s2824_s15 = smov (%p27_p1, %s25_s15), 0  ;;  %p169_p3 = pnand %p1790_p0, %p168_p2 }
   0x6   : > { %p202_p4 = scmp.lt.s32.totalorder (!%p169_p3), %s2355_s12, 1 }
   0x7   : > { %172 = sbr.rel (%p169_p3) target bundleno = 336 (0x150), region = 32 }
   0xc   : > { %v2295_v0 = vld [vmem:[%s2818_s1 + $0x14] ss:$0 sps:$4 sm:$0xff]   ;;  %vm465_vm0 = vcmask 1043456   ;;  %v2296_v1 = vld [vmem:[%s2818_s1 + $0xc] sm:$0xff]   ;;  %s2826_s12 = smov (!%p202_p4, %s2355_s12), 1  ;;  %vm363_vm1 = vcmask 1046528  }
   0xd   : > { %2265 = vmatprep.subr.msk.bf16.mxu0 %vm465_vm0, %v2295_v0  ;;  %2266 = vmatprep.subr.msk.bf16.mxu1 %vm465_vm0, %v2295_v0  ;;  %v467_v2 = vsel %vm465_vm0, %v2295_v0, 0  ;;  %v2302_v3 = vld [vmem:[%s2818_s1 + $0x20] ss:$0 sps:$4 sm:$0xff]   ;;  %v2305_v4 = vld [vmem:[%s2818_s1 + $0x8] ss:$0 sps:$4 sm:$0xff]   ;;  %s2269_s24 = smul.u32 168, %s2826_s12 }
   0xe   : > { %2142 = vmatpush3.bf16.msra.mxu0 %v467_v2  ;;  %2263 = vmatpush3.bf16.msra.mxu1 %v467_v2  ;;  %vm410_vm2 = vcmask 195584   ;;  %v1133_v12 = vsel %vm465_vm0, %v2302_v3, 0  ;;  %v2314_v17 = vld [vmem:[%s2818_s1 + $0x18] sm:$0xff]   ;;  %v718_v22 = vsel %vm465_vm0, %v2305_v4, 0  ;;  %v2315_v24 = vld [vmem:[%s2818_s1] sm:$0xff]   ;;  %vm1031_vm3 = vcmask 1045504  }
   0xf   : > { %2143 = vmatprep.subr.bf16.mxu0 %v2296_v1  ;;  %2262 = vmatprep.subr.bf16.mxu1 %v2296_v1  ;;  %s2424_s27 = scalar_lea.vmem %s2817_s0, %s2269_s24  ;;  %s2270_s7 = smul.u32 144, %s2826_s12 }
  0x10   : > { %v2427_v5 = vld [vmem:[%s2424_s27 + $0xc] sm:$0xf]  ;;  %v262_v6 = vld [vmem:[%s2424_s27 + $0x8] sm:$0xe]  ;;  %v2433_v7 = vld [vmem:[%s2424_s27 + $0x10] sm:$0xff]  }
  0x11   : > { %v1796_v8 = vcombine.low %v262_v6, %v2427_v5  ;;  %v365_v9 = vrot.slane %v2433_v7, 1  ;;  %v2438_v10 = vld [vmem:[%s2424_s27 + $0x58] sm:$0xff]   ;;  %v2441_v11 = vld [vmem:[%s2424_s27 + $0x60] sm:$0xff]   ;;  %v2455_v20 = vld [vmem:[%s2424_s27 + $0x68] sm:$0xff]   ;;  %s2726_s10 = scalar_lea.vmem %s2820_s3, %s2270_s7 }
  0x12   : > { %2144 = vmatpush3.bf16.msra.mxu0 %v2296_v1  ;;  %2264 = vmatpush3.bf16.msra.mxu1 %v2296_v1  ;;  %v2445_v14 = vld [vmem:[%s2424_s27 + $0x18] sm:$0xff]   ;;  %v383_v15 = vrot.slane %v2438_v10, 1  ;;  %v385_v16 = vrot.slane %v2441_v11, 1  ;;  %v2463_v23 = vld [vmem:[%s2424_s27 + $0x20] sm:$0xff]   ;;  %v387_v26 = vrot.slane %v2455_v20, 1  ;;  %v2472_v27 = vld [vmem:[%s2424_s27 + $0x70] sm:$0xff]  }
  0x13   : > { %2268 = vmatprep.subr.msk.bf16.mxu0 %vm465_vm0, %v2302_v3  ;;  %2267 = vmatprep.subr.msk.bf16.mxu1 %vm465_vm0, %v2305_v4  ;;  %v364_v13 = vrot.slane %v1796_v8, 1  ;;  %v367_v19 = vrot.slane %v2445_v14, 1  ;;  %v369_v28 = vrot.slane %v2463_v23, 1  ;;  %v2477_v29 = vld [vmem:[%s2424_s27 + $0x28] sm:$0xff]   ;;  %v389_v31 = vrot.slane %v2472_v27, 1  ;;  %v2482_v32 = vld [vmem:[%s2424_s27 + $0x78] sm:$0xff]  }
  0x14   : > { %v386_v21 = vsel %vm363_vm1, %v383_v15, %v385_v16  ;;  %v388_v30 = vsel %vm363_vm1, %v385_v16, %v387_v26  ;;  %v371_v34 = vrot.slane %v2477_v29, 1  ;;  %v2488_v35 = vld [vmem:[%s2424_s27 + $0x30] sm:$0xff]   ;;  %v391_v37 = vrot.slane %v2482_v32, 1  ;;  %v2494_v38 = vld [vmem:[%s2424_s27 + $0x80] sm:$0xff]   ;;  %v2501_v42 = vld [vmem:[%s2424_s27 + $0x38] sm:$0xff]  }
  0x15   : > { %v366_v18 = vsel %vm363_vm1, %v364_v13, %v365_v9  ;;  %2165 = vmatprep.mubr.msk.bf16.mxu1 %vm410_vm2, %v386_v21  ;;  %v368_v25 = vsel %vm363_vm1, %v365_v9, %v367_v19  ;;  %v370_v33 = vsel %vm363_vm1, %v367_v19, %v369_v28  ;;  %v390_v36 = vsel %vm363_vm1, %v387_v26, %v389_v31  ;;  %v2505_v44 = vld [vmem:[%s2424_s27 + $0x40] sm:$0xff]   ;;  %v2509_v46 = vld [vmem:[%s2424_s27 + $0x88] sm:$0xff]   ;;  %v2317_v48 = vld [vmem:[%s2424_s27 + $0x90] sm:$0xff]  }
  0x16   : > { %2145 = vmatprep.mubr.msk.bf16.mxu0 %vm410_vm2, %v366_v18  ;;  %2166 = vmatmul.mubr.msk.bf16.vlgmr.msra.gmra.mxu1 %vm410_vm2, %v388_v30  ;;  %v373_v39 = vrot.slane %v2488_v35, 1  ;;  %v372_v40 = vsel %vm363_vm1, %v369_v28, %v371_v34  ;;  %v393_v41 = vrot.slane %v2494_v38, 1  ;;  %v392_v45 = vsel %vm363_vm1, %v389_v31, %v391_v37  ;;  %v2522_v54 = vld [vmem:[%s2424_s27 + $0x48] sm:$0xff]   ;;  %v2319_v55 = vld [vmem:[%s2424_s27 + $0x98] ss:$0 sps:$4 sm:$0x11]  }
  0x17   : > { %2146 = vmatmul.mubr.msk.bf16.vlgmr.msra.gmra.mxu0 %vm410_vm2, %v368_v25  ;;  %2182 = vmatpush3.bf16.msra.mxu1 %v718_v22  ;;  %v375_v49 = vrot.slane %v2501_v42, 1  ;;  %v377_v50 = vrot.slane %v2505_v44, 1  ;;  %v395_v51 = vrot.slane %v2509_v46, 1  ;;  %v397_v52 = vrot.slane %v2317_v48, 1  ;;  %v2527_v57 = vld [vmem:[%s2424_s27 + $0x50] sm:$0xff]   ;;  %v2323_v0 = vld [vmem:[%s2424_s27 + $0x18] sm:$0xff]  }
  0x18   : > { %2222 = vmatpush3.bf16.msra.mxu0 %v1133_v12  ;;  %2149 = vmatprep.mubr.msk.bf16.mxu0 %vm410_vm2, %v370_v33  ;;  %v374_v43 = vsel %vm363_vm1, %v371_v34, %v373_v39  ;;  %v394_v47 = vsel %vm363_vm1, %v391_v37, %v393_v41  ;;  %v379_v60 = vrot.slane %v2522_v54, 1  ;;  %v381_v61 = vrot.slane %v2527_v57, 1  ;;  %v2322_v2 = vld [vmem:[%s2424_s27 + $0x10] sm:$0xfc]   ;;  %v2321_v4 = vld [vmem:[%s2424_s27] sm:$0xff]   ;;  %v2325_v21 = vld [vmem:[%s2424_s27 + $0x28] sm:$0xff]  }
  0x19   : > { %2223 = vmatprep.subr.bf16.mxu0 %v2314_v17  ;;  %2169 = vmatprep.mubr.msk.bf16.mxu1 %vm410_vm2, %v390_v36  ;;  %v376_v53 = vsel %vm363_vm1, %v373_v39, %v375_v49  ;;  %v378_v56 = vsel %vm363_vm1, %v375_v49, %v377_v50  ;;  %v396_v58 = vsel %vm363_vm1, %v393_v41, %v395_v51  ;;  %v399_v62 = vrot.slane %v2319_v55, 1  ;;  %v225_v9 = vld [vmem:[%s2424_s27 + $0x8] sm:$0xf]  ;;  %v2549_v12 = vld [vmem:[%s2424_s27 + $0x90] sm:$0xff]   ;;  %v2324_v16 = vld [vmem:[%s2424_s27 + $0x20] sm:$0xff]  }
  0x1a   : > { %2183 = vmatprep.subr.bf16.mxu1 %v2315_v24  ;;  %v398_v59 = vsel %vm363_vm1, %v395_v51, %v397_v52  ;;  %v380_v63 = vsel %vm363_vm1, %v377_v50, %v379_v60  ;;  %v382_v1 = vsel %vm363_vm1, %v379_v60, %v381_v61  ;;  %v1032_v6 = vrot.slane %v2322_v2, 2  ;;  %v2340_v22 = vld [vmem:[%s2424_s27 + $0xa0] ss:$0 sps:$4 sm:$0x33]   ;;  %v2326_v33 = vld [vmem:[%s2424_s27 + $0x30] sm:$0xff]   ;;  %v2327_v36 = vld [vmem:[%s2424_s27 + $0x38] sm:$0xff]  }
  0x1b   : > { %2184 = vmatpush3.bf16.msra.mxu1 %v2315_v24  ;;  %v400_v3 = vsel %vm363_vm1, %v397_v52, %v399_v62  ;;  %v1033_v8 = vrot.slane %v2323_v0, 2  ;;  %v384_v13 = vsel %vm363_vm1, %v381_v61, %v383_v15  ;;  %v1836_v18 = vcombine.low %v225_v9, %v2427_v5  ;;  %v2331_v49 = vld [vmem:[%s2424_s27 + $0x58] sm:$0xff]   ;;  %v2332_v51 = vld [vmem:[%s2424_s27 + $0x60] sm:$0xff]  }
  0x1c   : > { %2224 = vmatpush3.bf16.msra.mxu0 %v2314_v17  ;;  %v2339_v17 = vld [vmem:[%s2424_s27 + $0x98] sm:$0xff]   ;;  %v1063_v24 = vrot.slane %v2549_v12, 2  ;;  %v1067_v26 = vrot.slane %v2340_v22, 2  ;;  %v1035_v28 = vrot.slane %v2324_v16, 2  ;;  %v1037_v5 = vrot.slane %v2325_v21, 2  ;;  %v2336_v61 = vld [vmem:[%s2424_s27 + $0x80] sm:$0xff]  }
  0x1d   : > { %v1034_v19 = vsel %vm1031_vm3, %v1032_v6, %v1033_v8  ;;  %v1065_v25 = vrot.slane %v2339_v17, 2  ;;  %v1039_v37 = vrot.slane %v2326_v33, 2  ;;  %v1041_v39 = vrot.slane %v2327_v36, 2 }
  0x1e   : > { %2170 = vmatmul.mubr.msk.bf16.gmra.mxu1 %vm410_vm2, %v392_v45  ;;  %v1036_v31 = vsel %vm1031_vm3, %v1033_v8, %v1035_v28  ;;  %v1038_v34 = vsel %vm1031_vm3, %v1035_v28, %v1037_v5  ;;  %v1051_v55 = vrot.slane %v2332_v51, 2  ;;  %v1059_v0 = vrot.slane %v2336_v61, 2 }
  0x1f   : > { %2150 = vmatmul.mubr.msk.bf16.gmra.mxu0 %vm410_vm2, %v372_v40  ;;  %2173 = vmatprep.mubr.msk.bf16.mxu1 %vm410_vm2, %v394_v47  ;;  %v2566_v15 = vsel %vm1031_vm3, %v1063_v24, %v1065_v25  ;;  %v2570_v30 = vsel %vm1031_vm3, %v1065_v25, %v1067_v26  ;;  %v2328_v40 = vld [vmem:[%s2424_s27 + $0x40] sm:$0xff]   ;;  %v1042_v41 = vsel %vm1031_vm3, %v1039_v37, %v1041_v39  ;;  %v2330_v47 = vld [vmem:[%s2424_s27 + $0x50] sm:$0xff]  }
  0x20   : > { %2153 = vmatprep.mubr.msk.bf16.mxu0 %vm410_vm2, %v374_v43  ;;  %v2329_v43 = vld [vmem:[%s2424_s27 + $0x48] sm:$0xff]   ;;  %v1043_v45 = vrot.slane %v2328_v40, 2  ;;  %v1047_v50 = vrot.slane %v2330_v47, 2 }
  0x26   : > { %2174 = vmatmul.mubr.msk.bf16.gmra.mxu1 %vm410_vm2, %v396_v58 }
  0x27   : > { %2154 = vmatmul.mubr.msk.bf16.gmra.mxu0 %vm410_vm2, %v376_v53  ;;  %2177 = vmatprep.mubr.msk.bf16.mxu1 %vm410_vm2, %v398_v59  ;;  %v2333_v53 = vld [vmem:[%s2424_s27 + $0x68] sm:$0xff]   ;;  %v2335_v59 = vld [vmem:[%s2424_s27 + $0x78] sm:$0xff]  }
  0x28   : > { %2157 = vmatprep.mubr.msk.bf16.mxu0 %vm410_vm2, %v378_v56  ;;  %v2334_v56 = vld [vmem:[%s2424_s27 + $0x70] sm:$0xff]  }
  0x29   : > { %v1055_v60 = vrot.slane %v2334_v56, 2 }
  0x2e   : > { %2178 = vmatmul.mubr.msk.bf16.gmra.mxu1 %vm410_vm2, %v400_v3 }
  0x2f   : > { %2158 = vmatmul.mubr.msk.bf16.gmra.mxu0 %vm410_vm2, %v380_v63  ;;  %2185 = vmatprep.mubr.msk.bf16.mxu1 %vm410_vm2, %v2321_v4  ;;  %v2337_v63 = vld [vmem:[%s2424_s27 + $0x88] sm:$0xff]  }
  0x30   : > { %2161 = vmatprep.mubr.msk.bf16.mxu0 %vm410_vm2, %v382_v1  ;;  %v1061_v1 = vrot.slane %v2337_v63, 2 }
  0x36   : > { %2186 = vmatmul.mubr.msk.bf16.vlgmr.msra.gmra.mxu1 %vm410_vm2, %v1836_v18 }
  0x37   : > { %2162 = vmatmul.mubr.msk.bf16.gmra.mxu0 %vm410_vm2, %v384_v13  ;;  %2189 = vmatprep.mubr.msk.bf16.mxu1 %vm410_vm2, %v2433_v7  ;;  %v1040_v7 = vsel %vm1031_vm3, %v1037_v5, %v1039_v37 }
  0x38   : > { %2225 = vmatprep.mubr.msk.bf16.mxu0 %vm410_vm2, %v1034_v19 }
  0x3e   : > { %2190 = vmatmul.mubr.msk.bf16.gmra.mxu1 %vm410_vm2, %v2445_v14  ;;  %v1045_v14 = vrot.slane %v2329_v43, 2 }
  0x3f   : > { %2226 = vmatmul.mubr.msk.bf16.vlgmr.msra.gmra.mxu0 %vm410_vm2, %v1036_v31  ;;  %2193 = vmatprep.mubr.msk.bf16.mxu1 %vm410_vm2, %v2463_v23  ;;  %v1044_v23 = vsel %vm1031_vm3, %v1041_v39, %v1043_v45 }
  0x40   : > { %2229 = vmatprep.mubr.msk.bf16.mxu0 %vm410_vm2, %v1038_v34  ;;  %v1046_v48 = vsel %vm1031_vm3, %v1043_v45, %v1045_v14 }
  0x46   : > { %2194 = vmatmul.mubr.msk.bf16.gmra.mxu1 %vm410_vm2, %v2477_v29  ;;  %v1049_v29 = vrot.slane %v2331_v49, 2 }
  0x47   : > { %2230 = vmatmul.mubr.msk.bf16.gmra.mxu0 %vm410_vm2, %v1040_v7  ;;  %2197 = vmatprep.mubr.msk.bf16.mxu1 %vm410_vm2, %v2488_v35  ;;  %v1048_v35 = vsel %vm1031_vm3, %v1045_v14, %v1047_v50 }
  0x48   : > { %2233 = vmatprep.mubr.msk.bf16.mxu0 %vm410_vm2, %v1042_v41  ;;  %v1050_v52 = vsel %vm1031_vm3, %v1047_v50, %v1049_v29 }
  0x4e   : > { %2198 = vmatmul.mubr.msk.bf16.gmra.mxu1 %vm410_vm2, %v2501_v42  ;;  %v1053_v42 = vrot.slane %v2333_v53, 2 }
  0x4f   : > { %2234 = vmatmul.mubr.msk.bf16.gmra.mxu0 %vm410_vm2, %v1044_v23  ;;  %2201 = vmatprep.mubr.msk.bf16.mxu1 %vm410_vm2, %v2505_v44  ;;  %v1052_v44 = vsel %vm1031_vm3, %v1049_v29, %v1051_v55  ;;  %v2715_v29 = vld [vmem:[%s2819_s2] ss:$0 sm:$0xff] }
  0x50   : > { %2237 = vmatprep.mubr.msk.bf16.mxu0 %vm410_vm2, %v1046_v48  ;;  %v1054_v58 = vsel %vm1031_vm3, %v1051_v55, %v1053_v42 }
  0x56   : > { %2202 = vmatmul.mubr.msk.bf16.gmra.mxu1 %vm410_vm2, %v2522_v54  ;;  %v1057_v54 = vrot.slane %v2335_v59, 2 }
  0x57   : > { %2238 = vmatmul.mubr.msk.bf16.gmra.mxu0 %vm410_vm2, %v1048_v35  ;;  %2205 = vmatprep.mubr.msk.bf16.mxu1 %vm410_vm2, %v2527_v57  ;;  %v1056_v57 = vsel %vm1031_vm3, %v1053_v42, %v1055_v60 }
  0x58   : > { %2241 = vmatprep.mubr.msk.bf16.mxu0 %vm410_vm2, %v1050_v52  ;;  %v1058_v62 = vsel %vm1031_vm3, %v1055_v60, %v1057_v54 }
  0x5e   : > { %2206 = vmatmul.mubr.msk.bf16.gmra.mxu1 %vm410_vm2, %v2438_v10  ;;  %v1060_v10 = vsel %vm1031_vm3, %v1057_v54, %v1059_v0 }
  0x5f   : > { %2242 = vmatmul.mubr.msk.bf16.gmra.mxu0 %vm410_vm2, %v1052_v44  ;;  %2209 = vmatprep.mubr.msk.bf16.mxu1 %vm410_vm2, %v2441_v11  ;;  %v1062_v11 = vsel %vm1031_vm3, %v1059_v0, %v1061_v1 }
  0x60   : > { %2245 = vmatprep.mubr.msk.bf16.mxu0 %vm410_vm2, %v1054_v58 }
  0x66   : > { %2210 = vmatmul.mubr.msk.bf16.gmra.mxu1 %vm410_vm2, %v2455_v20  ;;  %v1064_v20 = vsel %vm1031_vm3, %v1061_v1, %v1063_v24 }
  0x67   : > { %2246 = vmatmul.mubr.msk.bf16.gmra.mxu0 %vm410_vm2, %v1056_v57  ;;  %2213 = vmatprep.mubr.msk.bf16.mxu1 %vm410_vm2, %v2472_v27 }
  0x68   : > { %2249 = vmatprep.mubr.msk.bf16.mxu0 %vm410_vm2, %v1058_v62 }
  0x6e   : > { %2214 = vmatmul.mubr.msk.bf16.gmra.mxu1 %vm410_vm2, %v2482_v32 }
  0x6f   : > { %2250 = vmatmul.mubr.msk.bf16.gmra.mxu0 %vm410_vm2, %v1060_v10  ;;  %2217 = vmatprep.mubr.msk.bf16.mxu1 %vm410_vm2, %v2494_v38 }
  0x70   : > { %2253 = vmatprep.mubr.msk.bf16.mxu0 %vm410_vm2, %v1062_v11 }
  0x76   : > { %2218 = vmatmul.mubr.msk.bf16.gmra.mxu1 %vm410_vm2, %v2509_v46 }
  0x77   : > { %2254 = vmatmul.mubr.msk.bf16.gmra.mxu0 %vm410_vm2, %v1064_v20 }
  0x78   : > { %2257 = vmatprep.mubr.msk.bf16.mxu0 %vm410_vm2, %v2566_v15 }
  0x7f   : > { %2258 = vmatmul.mubr.msk.bf16.gmra.mxu0 %vm410_vm2, %v2570_v30 }
  0xd6   : > { %v2652_v32 = vpop.f32.mrf.mxu1 }
  0xd7   : > { %v2147_v27 = vpop.f32.mrf.mxu0 }
  0xd8   : > { %v2654_v38 = vpop.f32.mrf.mxu1 }
  0xd9   : > { %v503_v2 = vpop.f32.mrf.mxu0 }
  0xda   : > { %v2656_v4 = vpop.f32.mrf.mxu1 }
  0xdb   : > { %v2148_v3 = vpop.f32.mrf.mxu0 }
  0xdc   : > { %v2658_v8 = vpop.f32.mrf.mxu1 }
  0xdd   : > { %v506_v6 = vpop.f32.mrf.mxu0 }
  0xde   : > { %v2660_v12 = vpop.f32.mrf.mxu1 }
  0xdf   : > { %v2151_v9 = vpop.f32.mrf.mxu0 }
  0xe0   : > { %v2662_v46 = vpop.f32.mrf.mxu1 }
  0xe1   : > { %v519_v13 = vpop.f32.mrf.mxu0 }
  0xe2   : > { %v2666_v17 = vpop.f32.mrf.mxu1 }
  0xe3   : > { %v2664_v16 = vpop.f32.mrf.mxu0 }
  0xe4   : > { %v2670_v19 = vpop.f32.mrf.mxu1 }
  0xe5   : > { %v2668_v18 = vpop.f32.mrf.mxu0 }
  0xe6   : > { %v2674_v22 = vpop.f32.mrf.mxu1 }
  0xe7   : > { %v2672_v21 = vpop.f32.mrf.mxu0 }
  0xe8   : > { %v2678_v25 = vpop.f32.mrf.mxu1 }
  0xe9   : > { %v2676_v24 = vpop.f32.mrf.mxu0 }
  0xea   : > { %v2682_v28 = vpop.f32.mrf.mxu1 }
  0xeb   : > { %v2680_v26 = vpop.f32.mrf.mxu0 }
  0xec   : > { %v2686_v5 = vpop.f32.mrf.mxu1 }
  0xed   : > { %v2684_v15 = vpop.f32.mrf.mxu0 }
  0xee   : > { %v2690_v31 = vpop.f32.mrf.mxu1 }
  0xef   : > { %v2688_v30 = vpop.f32.mrf.mxu0 }
  0xf0   : > { %v2694_v34 = vpop.f32.mrf.mxu1 }
  0xf1   : > { %v2692_v33 = vpop.f32.mrf.mxu0 }
  0xf2   : > { %v2698_v37 = vpop.f32.mrf.mxu1 }
  0xf3   : > { %v2696_v36 = vpop.f32.mrf.mxu0 }
  0xf4   : > { %v2702_v7 = vpop.f32.mrf.mxu1 }
  0xf5   : > { %v2700_v39 = vpop.f32.mrf.mxu0 }
  0xf6   : > { %v2187_v41 = vpop.f32.mrf.mxu1 }
  0xf7   : > { %v2704_v40 = vpop.f32.mrf.mxu0  ;;  %v763_v48 = vadd.f32 %v2187_v41, %v2147_v27 }
  0xf8   : > { %v754_v45 = vpop.f32.mrf.mxu1 }
  0xf9   : > { %v2706_v43 = vpop.f32.mrf.mxu0  ;;  %v755_v35 = vadd.f32 %v754_v45, %v503_v2 }
  0xfa   : > { %v2188_v23 = vpop.f32.mrf.mxu1 }
  0xfb   : > { %v2708_v14 = vpop.f32.mrf.mxu0  ;;  %v766_v44 = vadd.f32 %v2188_v23, %v2148_v3 }
  0xfc   : > { %v757_v49 = vpop.f32.mrf.mxu1 }
  0xfd   : > { %v2710_v47 = vpop.f32.mrf.mxu0  ;;  %v758_v59 = vadd.f32 %v757_v49, %v506_v6 }
  0xfe   : > { %v2191_v52 = vpop.f32.mrf.mxu1 }
  0xff   : > { %v2227_v50 = vpop.f32.mrf.mxu0  ;;  %v779_v62 = vadd.f32 %v2191_v52, %v2151_v9 }
 0x100   : > { %v1314_v51 = vadd.f32 %v2227_v50, %v763_v48  ;;  %v770_v56 = vpop.f32.mrf.mxu1 }
 0x101   : > { %v1169_v53 = vpop.f32.mrf.mxu0  ;;  %v771_v20 = vadd.f32 %v770_v56, %v519_v13 }
 0x102   : > { %v1357_v55 = vadd.f32 %v2715_v29, %v1314_v51  ;;  %v1312_v42 = vadd.f32 %v1169_v53, %v755_v35  ;;  %v2192_v54 = vpop.f32.mrf.mxu1 }
 0x103   : > { %v2228_v58 = vpop.f32.mrf.mxu0  ;;  %v782_v9 = vadd.f32 %v2192_v54, %v2664_v16 }
 0x104   : > { %v1355_v60 = vadd.f32 %v2715_v29, %v1312_v42  ;;  %v1315_v57 = vadd.f32 %v2228_v58, %v766_v44  ;;  %v1429_v63 = vmul.f32 0.2, %v1357_v55  ;;  %vm1393_vm4 = vcmp.gt.f32.partialorder %v1357_v55, 0.0  ;;  %v773_v1 = vpop.f32.mrf.mxu1 }
 0x105   : > { %v1172_v61 = vpop.f32.mrf.mxu0  ;;  %v774_v53 = vadd.f32 %v773_v1, %v2668_v18 }
 0x106   : > { %v1358_v0 = vadd.f32 %v2715_v29, %v1315_v57  ;;  %v1313_v10 = vadd.f32 %v1172_v61, %v758_v59  ;;  %v1427_v2 = vmul.f32 0.2, %v1355_v60  ;;  %v2195_v41 = vpop.f32.mrf.mxu1  ;;  %v1465_v23 = vsel %vm1393_vm4, %v1357_v55, %v1429_v63 }
 0x107   : > { %v2231_v11 = vpop.f32.mrf.mxu0  ;;  %vm1391_vm6 = vcmp.gt.f32.partialorder %v1355_v60, 0.0  ;;  %v795_v54 = vadd.f32 %v2195_v41, %v2672_v21 }
 0x108   : > { %v1318_v27 = vadd.f32 %v2231_v11, %v779_v62  ;;  %vm1394_vm5 = vcmp.gt.f32.partialorder %v1358_v0, 0.0  ;;  %v1430_v3 = vmul.f32 0.2, %v1358_v0  ;;  %v1356_v6 = vadd.f32 %v2715_v29, %v1313_v10  ;;  %v786_v35 = vpop.f32.mrf.mxu1 }
 0x109   : > { %v1185_v45 = vpop.f32.mrf.mxu0  ;;  %v1463_v55 = vsel %vm1391_vm6, %v1355_v60, %v1427_v2  ;;  %v787_v10 = vadd.f32 %v786_v35, %v2676_v24 }
 0x10a   : > { %v1316_v48 = vadd.f32 %v1185_v45, %v771_v20  ;;  %v1466_v13 = vsel %vm1394_vm5, %v1358_v0, %v1430_v3  ;;  %vm1392_vm7 = vcmp.gt.f32.partialorder %v1356_v6, 0.0  ;;  %v1428_v49 = vmul.f32 0.2, %v1356_v6  ;;  %v2196_v44 = vpop.f32.mrf.mxu1 }
 0x10b   : > { %v1361_v50 = vadd.f32 %v2715_v29, %v1318_v27  ;;  %v2232_v51 = vpop.f32.mrf.mxu0  ;;  %v1982_v52 = vpack.c.bf16 %v1466_v13, %v1465_v23 }
 0x10c   : > { %v1464_v16 = vsel %vm1392_vm7, %v1356_v6, %v1428_v49  ;;  %v1359_v42 = vadd.f32 %v2715_v29, %v1316_v48  ;;  %v1319_v56 = vadd.f32 %v2232_v51, %v782_v9  ;;  %v789_v63 = vpop.f32.mrf.mxu1  ;;  %v798_v6 = vadd.f32 %v2196_v44, %v2680_v26 }
 0x10d   : > { %v1188_v58 = vpop.f32.mrf.mxu0  ;;  %2064 = vst [vmem:[%s2726_s10 + $0x8] sm:$0xff] %v1982_v52   ;;  %v1977_v59 = vpack.c.bf16 %v1464_v16, %v1463_v55  ;;  %v1433_v61 = vmul.f32 0.2, %v1361_v50  ;;  %vm1397_vm8 = vcmp.gt.f32.partialorder %v1361_v50, 0.0  ;;  %v790_v13 = vadd.f32 %v789_v63, %v2684_v15 }
 0x10e   : > { %v1317_v57 = vadd.f32 %v1188_v58, %v774_v53  ;;  %v1362_v62 = vadd.f32 %v2715_v29, %v1319_v56  ;;  %v1431_v18 = vmul.f32 0.2, %v1359_v42  ;;  %vm1395_vm9 = vcmp.gt.f32.partialorder %v1359_v42, 0.0  ;;  %v2199_v20 = vpop.f32.mrf.mxu1 }
 0x10f   : > { %v2235_v0 = vpop.f32.mrf.mxu0  ;;  %1978 = vst [vmem:[%s2726_s10] sm:$0xff] %v1977_v59   ;;  %v1469_v3 = vsel %vm1397_vm8, %v1361_v50, %v1433_v61  ;;  %v811_v50 = vadd.f32 %v2199_v20, %v2688_v30 }
 0x110   : > { %v1360_v60 = vadd.f32 %v2715_v29, %v1317_v57  ;;  %v1322_v1 = vadd.f32 %v2235_v0, %v795_v54  ;;  %vm1398_vm10 = vcmp.gt.f32.partialorder %v1362_v62, 0.0  ;;  %v1434_v11 = vmul.f32 0.2, %v1362_v62  ;;  %v802_v45 = vpop.f32.mrf.mxu1 }
 0x111   : > { %v1201_v27 = vpop.f32.mrf.mxu0  ;;  %v1467_v48 = vsel %vm1395_vm9, %v1359_v42, %v1431_v18  ;;  %v803_v54 = vadd.f32 %v802_v45, %v2692_v33 }
 0x112   : > { %vm1396_vm11 = vcmp.gt.f32.partialorder %v1360_v60, 0.0  ;;  %v1432_v21 = vmul.f32 0.2, %v1360_v60  ;;  %v1365_v2 = vadd.f32 %v2715_v29, %v1322_v1  ;;  %v1470_v41 = vsel %vm1398_vm10, %v1362_v62, %v1434_v11  ;;  %v2200_v52 = vpop.f32.mrf.mxu1 }
 0x113   : > { %v1320_v23 = vadd.f32 %v1201_v27, %v787_v10  ;;  %v2236_v9 = vpop.f32.mrf.mxu0  ;;  %v1992_v24 = vpack.c.bf16 %v1470_v41, %v1469_v3  ;;  %v814_v0 = vadd.f32 %v2200_v52, %v2696_v36 }
 0x114   : > { %v1468_v49 = vsel %vm1396_vm11, %v1360_v60, %v1432_v21  ;;  %v1323_v53 = vadd.f32 %v2236_v9, %v798_v6  ;;  %v1437_v26 = vmul.f32 0.2, %v1365_v2  ;;  %vm1401_vm12 = vcmp.gt.f32.partialorder %v1365_v2, 0.0  ;;  %v805_v42 = vpop.f32.mrf.mxu1 }
 0x115   : > { %v1987_v35 = vpack.c.bf16 %v1468_v49, %v1467_v48  ;;  %v1363_v51 = vadd.f32 %v2715_v29, %v1320_v23  ;;  %v1204_v55 = vpop.f32.mrf.mxu0  ;;  %2066 = vst [vmem:[%s2726_s10 + $0x18] sm:$0xff] %v1992_v24   ;;  %v806_v27 = vadd.f32 %v805_v42, %v2700_v39 }
 0x116   : > { %v1321_v16 = vadd.f32 %v1204_v55, %v790_v13  ;;  %v1366_v44 = vadd.f32 %v2715_v29, %v1323_v53  ;;  %v2203_v61 = vpop.f32.mrf.mxu1  ;;  %v1473_v30 = vsel %vm1401_vm12, %v1365_v2, %v1437_v26 }
 0x117   : > { %2065 = vst [vmem:[%s2726_s10 + $0x10] sm:$0xff] %v1987_v35   ;;  %v2239_v56 = vpop.f32.mrf.mxu0  ;;  %v1435_v58 = vmul.f32 0.2, %v1363_v51  ;;  %vm1399_vm13 = vcmp.gt.f32.partialorder %v1363_v51, 0.0  ;;  %v827_v36 = vadd.f32 %v2203_v61, %v2704_v40 }
 0x118   : > { %v1364_v15 = vadd.f32 %v2715_v29, %v1321_v16  ;;  %v1326_v59 = vadd.f32 %v2239_v56, %v811_v50  ;;  %vm1402_vm14 = vcmp.gt.f32.partialorder %v1366_v44, 0.0  ;;  %v1438_v57 = vmul.f32 0.2, %v1366_v44  ;;  %v818_v1 = vpop.f32.mrf.mxu1 }
 0x119   : > { %v1217_v62 = vpop.f32.mrf.mxu0  ;;  %v1471_v20 = vsel %vm1399_vm13, %v1363_v51, %v1435_v58  ;;  %v819_v51 = vadd.f32 %v818_v1, %v2706_v43 }
 0x11a   : > { %vm1400_vm15 = vcmp.gt.f32.partialorder %v1364_v15, 0.0  ;;  %v1436_v63 = vmul.f32 0.2, %v1364_v15  ;;  %v1474_v18 = vsel %vm1402_vm14, %v1366_v44, %v1438_v57  ;;  %v1369_v60 = vadd.f32 %v2715_v29, %v1326_v59  ;;  %v2204_v6 = vpop.f32.mrf.mxu1 }
 0x11b   : > { %v1324_v10 = vadd.f32 %v1217_v62, %v803_v54  ;;  %v2240_v11 = vpop.f32.mrf.mxu0  ;;  %v2002_v33 = vpack.c.bf16 %v1474_v18, %v1473_v30  ;;  %v830_v16 = vadd.f32 %v2204_v6, %v2708_v14 }
 0x11c   : > { %v1472_v21 = vsel %vm1400_vm15, %v1364_v15, %v1436_v63  ;;  %v1327_v41 = vadd.f32 %v2240_v11, %v814_v0  ;;  %v1441_v9 = vmul.f32 0.2, %v1369_v60  ;;  %v821_v24 = vpop.f32.mrf.mxu1  ;;  %vm1405_vm0 = vcmp.gt.f32.partialorder %v1369_v60, 0.0 }
 0x11d   : > { %v1997_v3 = vpack.c.bf16 %v1472_v21, %v1471_v20  ;;  %v1367_v2 = vadd.f32 %v2715_v29, %v1324_v10  ;;  %v1220_v45 = vpop.f32.mrf.mxu0  ;;  %2068 = vst [vmem:[%s2726_s10 + $0x28] sm:$0xff] %v2002_v33   ;;  %v822_v59 = vadd.f32 %v821_v24, %v2710_v47 }
 0x11e   : > { %v1325_v23 = vadd.f32 %v1220_v45, %v806_v27  ;;  %v1370_v48 = vadd.f32 %v2715_v29, %v1327_v41  ;;  %v2207_v53 = vpop.f32.mrf.mxu1  ;;  %v1477_v26 = vsel %vm1405_vm0, %v1369_v60, %v1441_v9 }
 0x11f   : > { %2067 = vst [vmem:[%s2726_s10 + $0x20] sm:$0xff] %v1997_v3   ;;  %v2243_v13 = vpop.f32.mrf.mxu0  ;;  %v1439_v49 = vmul.f32 0.2, %v1367_v2  ;;  %vm1403_vm1 = vcmp.gt.f32.partialorder %v1367_v2, 0.0  ;;  %v843_v0 = vadd.f32 %v2207_v53, %v2652_v32 }
 0x120   : > { %v1368_v39 = vadd.f32 %v2715_v29, %v1325_v23  ;;  %v1330_v35 = vadd.f32 %v2243_v13, %v827_v36  ;;  %vm1406_vm2 = vcmp.gt.f32.partialorder %v1370_v48, 0.0  ;;  %v1442_v52 = vmul.f32 0.2, %v1370_v48  ;;  %v834_v42 = vpop.f32.mrf.mxu1 }
 0x121   : > { %v1233_v55 = vpop.f32.mrf.mxu0  ;;  %v1475_v15 = vsel %vm1403_vm1, %v1367_v2, %v1439_v49  ;;  %v835_v33 = vadd.f32 %v834_v42, %v2654_v38 }
 0x122   : > { %vm1404_vm3 = vcmp.gt.f32.partialorder %v1368_v39, 0.0  ;;  %v1440_v40 = vmul.f32 0.2, %v1368_v39  ;;  %v1373_v50 = vadd.f32 %v2715_v29, %v1330_v35  ;;  %v1478_v44 = vsel %vm1406_vm2, %v1370_v48, %v1442_v52  ;;  %v2208_v62 = vpop.f32.mrf.mxu1 }
 0x123   : > { %v1328_v56 = vadd.f32 %v1233_v55, %v819_v51  ;;  %v2244_v58 = vpop.f32.mrf.mxu0  ;;  %v2012_v43 = vpack.c.bf16 %v1478_v44, %v1477_v26  ;;  %v846_v6 = vadd.f32 %v2208_v62, %v2656_v4 }
 0x124   : > { %v1476_v54 = vsel %vm1404_vm3, %v1368_v39, %v1440_v40  ;;  %v1331_v30 = vadd.f32 %v2244_v58, %v830_v16  ;;  %v1445_v14 = vmul.f32 0.2, %v1373_v50  ;;  %vm1409_vm4 = vcmp.gt.f32.partialorder %v1373_v50, 0.0  ;;  %v837_v1 = vpop.f32.mrf.mxu1 }
 0x125   : > { %v2007_v57 = vpack.c.bf16 %v1476_v54, %v1475_v15  ;;  %v1371_v61 = vadd.f32 %v2715_v29, %v1328_v56  ;;  %v1236_v63 = vpop.f32.mrf.mxu0  ;;  %2070 = vst [vmem:[%s2726_s10 + $0x38] sm:$0xff] %v2012_v43   ;;  %v838_v24 = vadd.f32 %v837_v1, %v2658_v8 }
 0x126   : > { %v1329_v18 = vadd.f32 %v1236_v63, %v822_v59  ;;  %v1374_v60 = vadd.f32 %v2715_v29, %v1331_v30  ;;  %v2211_v21 = vpop.f32.mrf.mxu1  ;;  %v1481_v32 = vsel %vm1409_vm4, %v1373_v50, %v1445_v14 }
 0x127   : > { %2069 = vst [vmem:[%s2726_s10 + $0x30] sm:$0xff] %v2007_v57   ;;  %v2247_v10 = vpop.f32.mrf.mxu0  ;;  %v1443_v11 = vmul.f32 0.2, %v1371_v61  ;;  %vm1407_vm5 = vcmp.gt.f32.partialorder %v1371_v61, 0.0  ;;  %v859_v4 = vadd.f32 %v2211_v21, %v2660_v12 }
 0x128   : > { %v1372_v47 = vadd.f32 %v2715_v29, %v1329_v18  ;;  %v1334_v20 = vadd.f32 %v2247_v10, %v843_v0  ;;  %vm1410_vm6 = vcmp.gt.f32.partialorder %v1374_v60, 0.0  ;;  %v1446_v27 = vmul.f32 0.2, %v1374_v60  ;;  %v850_v36 = vpop.f32.mrf.mxu1 }
 0x129   : > { %v1249_v3 = vpop.f32.mrf.mxu0  ;;  %v1479_v48 = vsel %vm1407_vm5, %v1371_v61, %v1443_v11  ;;  %v851_v42 = vadd.f32 %v850_v36, %v2662_v46 }
 0x12a   : > { %vm1408_vm7 = vcmp.gt.f32.partialorder %v1372_v47, 0.0  ;;  %v1444_v2 = vmul.f32 0.2, %v1372_v47  ;;  %v1482_v41 = vsel %vm1410_vm6, %v1374_v60, %v1446_v27  ;;  %v1377_v45 = vadd.f32 %v2715_v29, %v1334_v20  ;;  %v2212_v35 = vpop.f32.mrf.mxu1 }
 0x12b   : > { %v1332_v23 = vadd.f32 %v1249_v3, %v835_v33  ;;  %v2248_v9 = vpop.f32.mrf.mxu0  ;;  %v2022_v38 = vpack.c.bf16 %v1482_v41, %v1481_v32  ;;  %v862_v54 = vadd.f32 %v2212_v35, %v2666_v17 }
 0x12c   : > { %v1480_v13 = vsel %vm1408_vm7, %v1372_v47, %v1444_v2  ;;  %v1335_v51 = vadd.f32 %v2248_v9, %v846_v6  ;;  %v1449_v55 = vmul.f32 0.2, %v1377_v45  ;;  %v853_v50 = vpop.f32.mrf.mxu1  ;;  %vm1413_vm8 = vcmp.gt.f32.partialorder %v1377_v45, 0.0 }
 0x12d   : > { %v2017_v49 = vpack.c.bf16 %v1480_v13, %v1479_v48  ;;  %v1375_v39 = vadd.f32 %v2715_v29, %v1332_v23  ;;  %v1252_v52 = vpop.f32.mrf.mxu0  ;;  %2072 = vst [vmem:[%s2726_s10 + $0x48] sm:$0xff] %v2022_v38   ;;  %v854_v0 = vadd.f32 %v853_v50, %v2670_v19 }
 0x12e   : > { %v1333_v53 = vadd.f32 %v1252_v52, %v838_v24  ;;  %v1378_v40 = vadd.f32 %v2715_v29, %v1335_v51  ;;  %v2215_v58 = vpop.f32.mrf.mxu1  ;;  %v1485_v59 = vsel %vm1413_vm8, %v1377_v45, %v1449_v55 }
 0x12f   : > { %2071 = vst [vmem:[%s2726_s10 + $0x40] sm:$0xff] %v2017_v49   ;;  %v2251_v26 = vpop.f32.mrf.mxu0  ;;  %v1447_v16 = vmul.f32 0.2, %v1375_v39  ;;  %vm1411_vm9 = vcmp.gt.f32.partialorder %v1375_v39, 0.0  ;;  %v875_v47 = vadd.f32 %v2215_v58, %v2674_v22 }
 0x130   : > { %v1376_v8 = vadd.f32 %v2715_v29, %v1333_v53  ;;  %v1338_v44 = vadd.f32 %v2251_v26, %v859_v4  ;;  %vm1414_vm10 = vcmp.gt.f32.partialorder %v1378_v40, 0.0  ;;  %v1450_v56 = vmul.f32 0.2, %v1378_v40  ;;  %v866_v61 = vpop.f32.mrf.mxu1 }
 0x131   : > { %v1265_v15 = vpop.f32.mrf.mxu0  ;;  %v1483_v63 = vsel %vm1411_vm9, %v1375_v39, %v1447_v16  ;;  %v867_v2 = vadd.f32 %v866_v61, %v2678_v25 }
 0x132   : > { %vm1412_vm11 = vcmp.gt.f32.partialorder %v1376_v8, 0.0  ;;  %v1448_v12 = vmul.f32 0.2, %v1376_v8  ;;  %v1381_v43 = vadd.f32 %v2715_v29, %v1338_v44  ;;  %v1486_v57 = vsel %vm1414_vm10, %v1378_v40, %v1450_v56  ;;  %v2216_v1 = vpop.f32.mrf.mxu1 }
 0x133   : > { %v1336_v62 = vadd.f32 %v1265_v15, %v851_v42  ;;  %v2252_v30 = vpop.f32.mrf.mxu0  ;;  %v2032_v46 = vpack.c.bf16 %v1486_v57, %v1485_v59  ;;  %v878_v23 = vadd.f32 %v2216_v1, %v2682_v28 }
 0x134   : > { %v1484_v14 = vsel %vm1412_vm11, %v1376_v8, %v1448_v12  ;;  %v1339_v10 = vadd.f32 %v2252_v30, %v862_v54  ;;  %v1453_v17 = vmul.f32 0.2, %v1381_v43  ;;  %vm1417_vm12 = vcmp.gt.f32.partialorder %v1381_v43, 0.0  ;;  %v869_v27 = vpop.f32.mrf.mxu1 }
 0x135   : > { %v2027_v18 = vpack.c.bf16 %v1484_v14, %v1483_v63  ;;  %v1379_v60 = vadd.f32 %v2715_v29, %v1336_v62  ;;  %v1268_v11 = vpop.f32.mrf.mxu0  ;;  %2074 = vst [vmem:[%s2726_s10 + $0x58] sm:$0xff] %v2032_v46   ;;  %v870_v39 = vadd.f32 %v869_v27, %v2686_v5 }
 0x136   : > { %v1337_v20 = vadd.f32 %v1268_v11, %v854_v0  ;;  %v1382_v33 = vadd.f32 %v2715_v29, %v1339_v10  ;;  %v2219_v41 = vpop.f32.mrf.mxu1  ;;  %v1489_v22 = vsel %vm1417_vm12, %v1381_v43, %v1453_v17 }
 0x137   : > { %2073 = vst [vmem:[%s2726_s10 + $0x50] sm:$0xff] %v2027_v18   ;;  %v2255_v21 = vpop.f32.mrf.mxu0  ;;  %v1451_v3 = vmul.f32 0.2, %v1379_v60  ;;  %vm1415_vm13 = vcmp.gt.f32.partialorder %v1379_v60, 0.0  ;;  %v891_v28 = vadd.f32 %v2219_v41, %v2690_v31 }
 0x138   : > { %v1380_v19 = vadd.f32 %v2715_v29, %v1337_v20  ;;  %v1342_v32 = vadd.f32 %v2255_v21, %v875_v47  ;;  %vm1418_vm14 = vcmp.gt.f32.partialorder %v1382_v33, 0.0  ;;  %v1454_v6 = vmul.f32 0.2, %v1382_v33  ;;  %v882_v38 = vpop.f32.mrf.mxu1 }
 0x139   : > { %v1281_v45 = vpop.f32.mrf.mxu0  ;;  %v1487_v49 = vsel %vm1415_vm13, %v1379_v60, %v1451_v3  ;;  %v883_v8 = vadd.f32 %v882_v38, %v2694_v34 }
 0x13a   : > { %vm1416_vm15 = vcmp.gt.f32.partialorder %v1380_v19, 0.0  ;;  %v1452_v36 = vmul.f32 0.2, %v1380_v19  ;;  %v1490_v9 = vsel %vm1418_vm14, %v1382_v33, %v1454_v6  ;;  %v1385_v48 = vadd.f32 %v2715_v29, %v1342_v32  ;;  %v2220_v4 = vpop.f32.mrf.mxu1 }
 0x13b   : > { %v1340_v24 = vadd.f32 %v1281_v45, %v867_v2  ;;  %v2256_v13 = vpop.f32.mrf.mxu0  ;;  %v2042_v25 = vpack.c.bf16 %v1490_v9, %v1489_v22  ;;  %v894_v59 = vadd.f32 %v2220_v4, %v2698_v37 }
 0x13c   : > { %v1488_v35 = vsel %vm1416_vm15, %v1380_v19, %v1452_v36  ;;  %v1343_v53 = vadd.f32 %v2256_v13, %v878_v23  ;;  %vm1421_vm0 = vcmp.gt.f32.partialorder %v1385_v48, 0.0  ;;  %v1457_v50 = vmul.f32 0.2, %v1385_v48  ;;  %v885_v58 = vpop.f32.mrf.mxu1 }
 0x13d   : > { %v2037_v51 = vpack.c.bf16 %v1488_v35, %v1487_v49  ;;  %v1383_v52 = vadd.f32 %v2715_v29, %v1340_v24  ;;  %v1284_v55 = vpop.f32.mrf.mxu0  ;;  %2076 = vst [vmem:[%s2726_s10 + $0x68] sm:$0xff] %v2042_v25   ;;  %v886_v30 = vadd.f32 %v885_v58, %v2702_v7 }
 0x13e   : > { %v1341_v40 = vadd.f32 %v1284_v55, %v870_v39  ;;  %v1386_v26 = vadd.f32 %v2715_v29, %v1343_v53  ;;  %v1493_v43 = vsel %vm1421_vm0, %v1385_v48, %v1457_v50 }
 0x13f   : > { %2075 = vst [vmem:[%s2726_s10 + $0x60] sm:$0xff] %v2037_v51   ;;  %v2259_v16 = vpop.f32.mrf.mxu0  ;;  %v1455_v5 = vmul.f32 0.2, %v1383_v52  ;;  %vm1419_vm1 = vcmp.gt.f32.partialorder %v1383_v52, 0.0 }
 0x140   : > { %v1384_v44 = vadd.f32 %v2715_v29, %v1341_v40  ;;  %v1346_v42 = vadd.f32 %v2259_v16, %v891_v28  ;;  %vm1422_vm2 = vcmp.gt.f32.partialorder %v1386_v26, 0.0  ;;  %v1458_v56 = vmul.f32 0.2, %v1386_v26 }
 0x141   : > { %v1297_v15 = vpop.f32.mrf.mxu0  ;;  %v1491_v61 = vsel %vm1419_vm1, %v1383_v52, %v1455_v5 }
 0x142   : > { %vm1420_vm3 = vcmp.gt.f32.partialorder %v1384_v44, 0.0  ;;  %v1456_v31 = vmul.f32 0.2, %v1384_v44  ;;  %v1344_v12 = vadd.f32 %v1297_v15, %v883_v8  ;;  %v1494_v54 = vsel %vm1422_vm2, %v1386_v26, %v1458_v56 }
 0x143   : > { %v1389_v34 = vadd.f32 %v2715_v29, %v1346_v42  ;;  %v2260_v57 = vpop.f32.mrf.mxu0  ;;  %v2052_v62 = vpack.c.bf16 %v1494_v54, %v1493_v43 }
 0x144   : > { %v1492_v63 = vsel %vm1420_vm3, %v1384_v44, %v1456_v31  ;;  %v1387_v0 = vadd.f32 %v2715_v29, %v1344_v12  ;;  %v1347_v14 = vadd.f32 %v2260_v57, %v894_v59 }
 0x145   : > { %v2047_v46 = vpack.c.bf16 %v1492_v63, %v1491_v61  ;;  %v1300_v18 = vpop.f32.mrf.mxu0  ;;  %2078 = vst [vmem:[%s2726_s10 + $0x78] sm:$0xff] %v2052_v62   ;;  %v1461_v1 = vmul.f32 0.2, %v1389_v34  ;;  %vm1425_vm4 = vcmp.gt.f32.partialorder %v1389_v34, 0.0 }
 0x146   : > { %v1345_v60 = vadd.f32 %v1300_v18, %v886_v30  ;;  %v1390_v37 = vadd.f32 %v2715_v29, %v1347_v14  ;;  %v1459_v10 = vmul.f32 0.2, %v1387_v0  ;;  %vm1423_vm5 = vcmp.gt.f32.partialorder %v1387_v0, 0.0 }
 0x147   : > { %2077 = vst [vmem:[%s2726_s10 + $0x70] sm:$0xff] %v2047_v46   ;;  %v1497_v17 = vsel %vm1425_vm4, %v1389_v34, %v1461_v1 }
 0x148   : > { %v1388_v11 = vadd.f32 %v2715_v29, %v1345_v60  ;;  %vm1426_vm6 = vcmp.gt.f32.partialorder %v1390_v37, 0.0  ;;  %v1462_v7 = vmul.f32 0.2, %v1390_v37  ;;  %v1495_v33 = vsel %vm1423_vm5, %v1387_v0, %v1459_v10 }
 0x14a   : > { %vm1424_vm7 = vcmp.gt.f32.partialorder %v1388_v11, 0.0  ;;  %v1460_v47 = vmul.f32 0.2, %v1388_v11  ;;  %v1498_v20 = vsel %vm1426_vm6, %v1390_v37, %v1462_v7 }
 0x14b   : > { %v2062_v27 = vpack.c.bf16 %v1498_v20, %v1497_v17 }
 0x14c   : > { %v1496_v21 = vsel %vm1424_vm7, %v1388_v11, %v1460_v47 }
 0x14d   : > { %v2057_v3 = vpack.c.bf16 %v1496_v21, %v1495_v33  ;;  %2080 = vst [vmem:[%s2726_s10 + $0x88] sm:$0xff] %v2062_v27  }
 0x14f   : > { %2079 = vst [vmem:[%s2726_s10 + $0x80] sm:$0xff] %v2057_v3  }
 0x150 PF: > { %s13_s14 = sadd.s32 1, %s2363_s14   ;;  %s2821_s12 = smov %s2359_s13 }
 0x151   : > { %p10_p5 = scmp.ge.s32.totalorder %s13_s14, 4   ;;  %s2822_s13 = smov %s2824_s15 }
 0x153   :  { %12 = sbr.rel (!%p10_p5) target bundleno = 2 (0x2), region = 70 }

// kernel: _lambda_.6
= control target key start
LH: loop header
LB: loop body
LE: loop exit
PB: predicated region body
PF: predicated region fallthrough
CT: control target
= control target key end

     0   :  { %s1544_s21 = smov 0   ;;  %s1546_s22 = smov 0   ;;  %s1763_s0 = inlined_call_operand.vmem [shape: bf16[2,2,96,48], index: 0, kind: input, shape index: {}]   ;;  %s1764_s1 = inlined_call_operand.vmem [shape: bf16[3,48,128], index: 1, kind: input, shape index: {}]   ;;  %s1765_s2 = inlined_call_operand.vmem [shape: f32[1,128], index: 2, kind: input, shape index: {}]   ;;  %s1766_s3 = inlined_call_operand.vmem [shape: f32[80,1], index: 3, kind: input, shape index: {}]   ;;  %s1767_s4 = inlined_call_operand.vmem [shape: bf16[2,80,128], index: 4, kind: output, shape index: {0}]   ;;  %s1768_s5 = inlined_call_operand.vmem [shape: f32[2,1,128], index: 5, kind: output, shape index: {1}]   ;;  %s1769_s6 = inlined_call_operand.vmem [shape: f32[2,1,128], index: 6, kind: output, shape index: {2}]  }
   0x1   :  { %s1548_s23 = smov 0  }
   0x2 LB: > { %s29_s24 = sadd.s32 1, %s1500_s22  ;;  %p1201_p0 = scmp.ge.s32.totalorder %s1504_s23, 1  ;;  %s1504_s23 = sphi %s1548_s23, %s17_s23   ;;  %s1500_s22 = sphi %s1546_s22, %s1771_s22   ;;  %s1496_s21 = sphi %s1544_s21, %s1770_s21  }
   0x3   : > { %p31_p1 = scmp.ge.s32.totalorder %s29_s24, 2  ;;  %p252_p2 = scmp.lt.s32.totalorder %s1504_s23, 3 }
   0x5   : > { %s1773_s24 = smov (%p31_p1, %s29_s24), 0  ;;  %p253_p3 = pnand %p1201_p0, %p252_p2 }
   0x6   : > { %p304_p4 = scmp.lt.s32.totalorder (!%p253_p3), %s1496_s21, 1 }
   0x7   : > { %256 = sbr.rel (%p253_p3) target bundleno = 303 (0x12f), region = 36 }
   0xc   : > { %v1457_v0 = vld [vmem:[%s1764_s1 + $0x28] sm:$0xff]   ;;  %v1506_v1 = vmov 0.0   ;;  %v1458_v2 = vld [vmem:[%s1764_s1 + $0x20] sm:$0xff]   ;;  %vm1507_vm0 = vmmov 0   ;;  %s1775_s21 = smov (!%p304_p4, %s1496_s21), 1  ;;  %v1459_v3 = vld [vmem:[%s1764_s1 + $0x18] sm:$0xff]  }
   0xd   : > { %1420 = vmatprep.subr.bf16.mxu1 %v1506_v1  ;;  %1342 = vmatprep.subr.bf16.mxu0 %v1506_v1  ;;  %s1426_s7 = smul.u32 96, %s1775_s21  ;;  %v1461_v4 = vld [vmem:[%s1764_s1 + $0x10] sm:$0xff]   ;;  %v1508_v5 = vmov 0   ;;  %vm414_vm1 = vcmask 392192   ;;  %v1465_v8 = vld [vmem:[%s1764_s1 + $0x40] sm:$0xff]   ;;  %v1464_v9 = vld [vmem:[%s1764_s1 + $0x8] sm:$0xff]   ;;  %s329_s12 = scalar_lea.vmem %s1768_s5, %s1775_s21 }
   0xe   : > { %1423 = vmatpush3.bf16.msra.mxu1 %v1457_v0  ;;  %1343 = vmatpush3.bf16.msra.mxu0 %v1457_v0  ;;  %v1467_v10 = vld [vmem:[%s1764_s1 + $0x38] sm:$0xff]   ;;  %v1469_v13 = vld [vmem:[%s1764_s1] sm:$0xff]   ;;  %v1470_v19 = vld [vmem:[%s1764_s1 + $0x30] sm:$0xff]   ;;  %vm680_vm2 = vsmask.f32 7424  ;;  %s1427_s29 = smul.u32 40, %s1775_s21  ;;  %s335_s15 = scalar_lea.vmem %s1769_s6, %s1775_s21 }
   0xf   : > { %1421 = vmatprep.subr.bf16.mxu1 %v1506_v1  ;;  %1344 = vmatprep.subr.bf16.mxu0 %v1506_v1  ;;  %s1587_s10 = scalar_lea.vmem %s1763_s0, %s1426_s7  ;;  %v908_v28 = vld [vmem:[%s1766_s3] sm:$0xff]  ;;  %v910_v29 = vld [vmem:[%s1766_s3 + $0x10] sm:$0xff]  ;;  %v909_v30 = vld [vmem:[%s1766_s3 + $0x8] sm:$0xff] }
  0x10   : > { %1356 = vmatprep.mubr.msk.bf16.mxu1 %vm1507_vm0, %v1506_v1  ;;  %1348 = vmatprep.mubr.msk.bf16.mxu0 %vm1507_vm0, %v1506_v1  ;;  %v1460_v6 = vld [vmem:[%s1587_s10 + $0x40] sm:$0xff]   ;;  %v1462_v7 = vld [vmem:[%s1587_s10 + $0x30] sm:$0xff]   ;;  %v1463_v14 = vld [vmem:[%s1587_s10 + $0x48] sm:$0xff]   ;;  %s1726_s8 = scalar_lea.vmem %s1767_s4, %s1427_s29 }
  0x11   : > { %1455 = vset.pattern.permute.xlu0 %v1508_v5  ;;  %1456 = vset.pattern.permute.xlu1 %v1508_v5  ;;  %v1471_v11 = vld [vmem:[%s1587_s10 + $0x4] sm:$0xff]   ;;  %v1472_v12 = vld [vmem:[%s1587_s10 + $0xc] sm:$0xff]   ;;  %v1466_v15 = vld [vmem:[%s1587_s10 + $0x38] sm:$0xff]  }
  0x12   : > { %1424 = vmatpush3.bf16.msra.mxu1 %v1458_v2  ;;  %1345 = vmatpush3.bf16.msra.mxu0 %v1458_v2  ;;  %v684_v16 = vshll.u32 %v1471_v11, 16  ;;  %v682_v17 = vshrl.u32 %v1471_v11, 16  ;;  %v689_v18 = vshll.u32 %v1472_v12, 16  ;;  %v1474_v23 = vld [vmem:[%s1587_s10 + $0x14] sm:$0xff]   ;;  %v693_v26 = vshrl.u32 %v1472_v12, 16  ;;  %v1476_v34 = vld [vmem:[%s1587_s10 + $0x1c] sm:$0xff]  }
  0x13   : > { %1422 = vmatprep.subr.bf16.mxu1 %v1506_v1  ;;  %1346 = vmatprep.subr.bf16.mxu0 %v1506_v1  ;;  %v1468_v24 = vld [vmem:[%s1587_s10 + $0x50] sm:$0xff]   ;;  %v697_v27 = vshll.u32 %v1474_v23, 16  ;;  %v911_v31 = vld [vmem:[%s1766_s3 + $0x18] sm:$0xff]  ;;  %v912_v35 = vld [vmem:[%s1766_s3 + $0x20] sm:$0xff]  ;;  %v701_v39 = vshrl.u32 %v1474_v23, 16  ;;  %v705_v40 = vshll.u32 %v1476_v34, 16 }
  0x14   : > { %v686_v20 = vrot.slane %v684_v16, 1  ;;  %v691_v22 = vrot.slane %v689_v18, 1  ;;  %920 = vperm.xlu0 %1455, %v908_v28   ;;  %930 = vperm.xlu1 %1456, %v910_v29   ;;  %v913_v36 = vld [vmem:[%s1766_s3 + $0x28] sm:$0xff]  ;;  %v1473_v37 = vld [vmem:[%s1587_s10] sm:$0xff]   ;;  %v914_v41 = vld [vmem:[%s1766_s3 + $0x30] sm:$0xff]  ;;  %v709_v50 = vshrl.u32 %v1476_v34, 16 }
  0x15   : > { %v699_v33 = vrot.slane %v697_v27, 1  ;;  %v915_v42 = vld [vmem:[%s1766_s3 + $0x38] sm:$0xff]  ;;  %v707_v44 = vrot.slane %v705_v40, 1  ;;  %v1478_v45 = vld [vmem:[%s1587_s10 + $0x24] sm:$0xff]   ;;  %v1477_v55 = vld [vmem:[%s1587_s10 + $0x10] sm:$0xff]  }
  0x16   : > { %1425 = vmatpush3.bf16.msra.mxu1 %v1459_v3  ;;  %1347 = vmatpush3.bf16.msra.mxu0 %v1459_v3  ;;  %v687_v21 = vor.u32 %v686_v20, %v682_v17  ;;  %v695_v32 = vor.u32 %v693_v26, %v691_v22  ;;  %v916_v46 = vld [vmem:[%s1766_s3 + $0x40] sm:$0xff]  ;;  %v917_v47 = vld [vmem:[%s1766_s3 + $0x48] sm:$0xff]  ;;  %v713_v51 = vshll.u32 %v1478_v45, 16  ;;  %v717_v57 = vshrl.u32 %v1478_v45, 16  ;;  %v1479_v61 = vld [vmem:[%s1587_s10 + $0x18] sm:$0xff]  }
  0x17   : > { %1368 = vmatprep.subr.bf16.mxu1 %v1506_v1  ;;  %1394 = vmatprep.subr.bf16.mxu0 %v1506_v1  ;;  %v703_v43 = vor.u32 %v701_v39, %v699_v33  ;;  %v1475_v48 = vld [vmem:[%s1587_s10 + $0x8] sm:$0xff]   ;;  %v711_v52 = vor.u32 %v709_v50, %v707_v44  ;;  %v1481_v63 = vld [vmem:[%s1587_s10 + $0x20] sm:$0xff]  }
  0x18   : > { %v692_v25 = vsel %vm680_vm2, %v687_v21, %v691_v22  ;;  %925 = vperm.xlu0 %1455, %v909_v30   ;;  %935 = vperm.xlu1 %1456, %v911_v31   ;;  %v700_v38 = vsel %vm680_vm2, %v695_v32, %v699_v33  ;;  %v715_v53 = vrot.slane %v713_v51, 1  ;;  %v1480_v54 = vld [vmem:[%s1587_s10 + $0x2c] ss:$0 sps:$4 sm:$0x11]   ;;  %v1718_v33 = vld [vmem:[%s1765_s2] ss:$0 sm:$0xff] }
  0x19   : > { %1357 = vmatmul.mubr.msk.bf16.vlgmr.msra.gmra.mxu1 %vm414_vm1, %v1460_v6  ;;  %1349 = vmatmul.mubr.msk.bf16.vlgmr.msra.gmra.mxu0 %vm414_vm1, %v1462_v7  ;;  %v708_v49 = vsel %vm680_vm2, %v703_v43, %v707_v44  ;;  %v721_v58 = vshll.u32 %v1480_v54, 16 }
  0x1a   : > { %1369 = vmatpush3.bf16.msra.mxu1 %v1461_v4  ;;  %1360 = vmatprep.mubr.msk.bf16.mxu1 %vm1507_vm0, %v1506_v1  ;;  %v716_v56 = vsel %vm680_vm2, %v711_v52, %v715_v53  ;;  %v719_v59 = vor.u32 %v717_v57, %v715_v53 }
  0x1b   : > { %1370 = vmatprep.subr.bf16.mxu1 %v1506_v1  ;;  %1395 = vmatpush3.bf16.msra.mxu0 %v1465_v8  ;;  %v723_v60 = vrot.slane %v721_v58, 1 }
  0x1c   : > { %1352 = vmatprep.mubr.msk.bf16.mxu0 %vm1507_vm0, %v1506_v1  ;;  %1396 = vmatprep.subr.bf16.mxu0 %v1506_v1 }
  0x1d   : > { %940 = vperm.xlu0 %1455, %v912_v35   ;;  %945 = vperm.xlu1 %1456, %v913_v36   ;;  %v724_v62 = vsel %vm680_vm2, %v719_v59, %v723_v60 }
  0x1e   : > { %1371 = vmatpush3.bf16.msra.mxu1 %v1464_v9 }
  0x1f   : > { %1397 = vmatpush3.bf16.msra.mxu0 %v1467_v10  ;;  %1372 = vmatprep.subr.bf16.mxu1 %v1506_v1 }
  0x20   : > { %1398 = vmatprep.subr.bf16.mxu0 %v1506_v1 }
  0x21   : > { %1361 = vmatmul.mubr.msk.bf16.gmra.mxu1 %vm414_vm1, %v1463_v14  ;;  %1353 = vmatmul.mubr.msk.bf16.gmra.mxu0 %vm414_vm1, %v1466_v15 }
  0x22   : > { %1364 = vmatprep.mubr.msk.bf16.mxu1 %vm1507_vm0, %v1506_v1  ;;  %1373 = vmatpush3.bf16.msra.mxu1 %v1469_v13 }
  0x23   : > { %1399 = vmatpush3.bf16.msra.mxu0 %v1470_v19  ;;  %1400 = vmatprep.mubr.msk.bf16.mxu0 %vm1507_vm0, %v1506_v1 }
  0x24   : > { %950 = vperm.xlu0 %1455, %v914_v41   ;;  %955 = vperm.xlu1 %1456, %v915_v42  }
  0x28   : > { %960 = vperm.xlu0 %1455, %v916_v46   ;;  %965 = vperm.xlu1 %1456, %v917_v47  }
  0x29   : > { %1365 = vmatmul.mubr.msk.bf16.gmra.mxu1 %vm414_vm1, %v1468_v24  ;;  %1401 = vmatmul.mubr.msk.bf16.vlgmr.msra.gmra.mxu0 %vm414_vm1, %v692_v25 }
  0x2a   : > { %1374 = vmatprep.mubr.msk.bf16.mxu1 %vm1507_vm0, %v1506_v1  ;;  %1404 = vmatprep.mubr.msk.bf16.mxu0 %vm1507_vm0, %v1506_v1 }
  0x31   : > { %1375 = vmatmul.mubr.msk.bf16.vlgmr.msra.gmra.mxu1 %vm414_vm1, %v1473_v37  ;;  %1405 = vmatmul.mubr.msk.bf16.gmra.mxu0 %vm414_vm1, %v700_v38 }
  0x32   : > { %1378 = vmatprep.mubr.msk.bf16.mxu1 %vm1507_vm0, %v1506_v1  ;;  %1408 = vmatprep.mubr.msk.bf16.mxu0 %vm1507_vm0, %v1506_v1 }
  0x39   : > { %1379 = vmatmul.mubr.msk.bf16.gmra.mxu1 %vm414_vm1, %v1475_v48  ;;  %1409 = vmatmul.mubr.msk.bf16.gmra.mxu0 %vm414_vm1, %v708_v49 }
  0x3a   : > { %1382 = vmatprep.mubr.msk.bf16.mxu1 %vm1507_vm0, %v1506_v1  ;;  %1412 = vmatprep.mubr.msk.bf16.mxu0 %vm1507_vm0, %v1506_v1 }
  0x41   : > { %1383 = vmatmul.mubr.msk.bf16.gmra.mxu1 %vm414_vm1, %v1477_v55  ;;  %1413 = vmatmul.mubr.msk.bf16.gmra.mxu0 %vm414_vm1, %v716_v56 }
  0x42   : > { %1386 = vmatprep.mubr.msk.bf16.mxu1 %vm1507_vm0, %v1506_v1  ;;  %1416 = vmatprep.mubr.msk.bf16.mxu0 %vm1507_vm0, %v1506_v1 }
  0x49   : > { %1387 = vmatmul.mubr.msk.bf16.gmra.mxu1 %vm414_vm1, %v1479_v61  ;;  %1417 = vmatmul.mubr.msk.bf16.gmra.mxu0 %vm414_vm1, %v724_v62 }
  0x4a   : > { %1390 = vmatprep.mubr.msk.bf16.mxu1 %vm1507_vm0, %v1506_v1 }
  0x51   : > { %1391 = vmatmul.mubr.msk.bf16.gmra.mxu1 %vm414_vm1, %v1481_v63 }
  0x8f   : > { %v921_v47 = vpop.permute.xlu0 %920  ;;  %v931_v52 = vpop.permute.xlu1 %930 }
  0x93   : > { %v926_v61 = vpop.permute.xlu0 %925 }
  0xd9   : > { %v480_v0 = vpop.f32.mrf.mxu1  ;;  %v464_v2 = vpop.f32.mrf.mxu0 }
  0xdb   : > { %v1358_v3 = vpop.f32.mrf.mxu1  ;;  %v1350_v4 = vpop.f32.mrf.mxu0 }
  0xdc   : > { %v936_v4 = vpop.permute.xlu1 %935 }
  0xdd   : > { %v1705_v5 = vpop.f32.mrf.mxu1  ;;  %v467_v6 = vpop.f32.mrf.mxu0 }
  0xdf   : > { %v1359_v7 = vpop.f32.mrf.mxu1  ;;  %v1351_v8 = vpop.f32.mrf.mxu0 }
  0xe1   : > { %v1707_v9 = vpop.f32.mrf.mxu1  ;;  %v472_v10 = vpop.f32.mrf.mxu0 }
  0xe3   : > { %v1362_v11 = vpop.f32.mrf.mxu1  ;;  %v1354_v12 = vpop.f32.mrf.mxu0 }
  0xe5   : > { %v1709_v13 = vpop.f32.mrf.mxu1  ;;  %v475_v1 = vpop.f32.mrf.mxu0 }
  0xe7   : > { %v1363_v14 = vpop.f32.mrf.mxu1  ;;  %v1355_v15 = vpop.f32.mrf.mxu0 }
  0xe9   : > { %v1711_v16 = vpop.f32.mrf.mxu1  ;;  %v792_v17 = vpop.f32.mrf.mxu0 }
  0xeb   : > { %v1366_v18 = vpop.f32.mrf.mxu1  ;;  %v1402_v19 = vpop.f32.mrf.mxu0 }
  0xed   : > { %v1713_v20 = vpop.f32.mrf.mxu1  ;;  %v795_v21 = vpop.f32.mrf.mxu0 }
  0xef   : > { %v1367_v22 = vpop.f32.mrf.mxu1  ;;  %v1403_v23 = vpop.f32.mrf.mxu0 }
  0xf1   : > { %v595_v24 = vpop.f32.mrf.mxu1  ;;  %v800_v25 = vpop.f32.mrf.mxu0 }
  0xf2   : > { %v596_v26 = vadd.f32 %v595_v24, %v464_v2  ;;  %v946_v24 = vpop.permute.xlu1 %945 }
  0xf3   : > { %v1376_v27 = vpop.f32.mrf.mxu1  ;;  %v1406_v28 = vpop.f32.mrf.mxu0 }
  0xf4   : > { %v831_v31 = vadd.f32 %v792_v17, %v596_v26  ;;  %v941_v17 = vpop.permute.xlu0 %940 }
  0xf5   : > { %v598_v29 = vpop.f32.mrf.mxu1  ;;  %v803_v30 = vpop.f32.mrf.mxu0 }
  0xf6   : > { %v599_v32 = vadd.f32 %v598_v29, %v467_v6  ;;  %v848_v39 = vadd.f32 %v1718_v33, %v831_v31 }
  0xf7   : > { %v1377_v34 = vpop.f32.mrf.mxu1  ;;  %v1407_v35 = vpop.f32.mrf.mxu0 }
  0xf8   : > { %v832_v36 = vadd.f32 %v795_v21, %v599_v32  ;;  %v968_v12 = vmul.f32 %v921_v47, %v848_v39 }
  0xf9   : > { %v603_v37 = vpop.f32.mrf.mxu1  ;;  %v808_v38 = vpop.f32.mrf.mxu0 }
  0xfa   : > { %v849_v40 = vadd.f32 %v1718_v33, %v832_v36  ;;  %v604_v41 = vadd.f32 %v603_v37, %v472_v10  ;;  %v994_v27 = vmul.f32 %v968_v12, %v848_v39 }
  0xfb   : > { %v1380_v42 = vpop.f32.mrf.mxu1  ;;  %v1410_v43 = vpop.f32.mrf.mxu0 }
  0xfc   : > { %v1292_v44 = vpack.c.bf16 %v849_v40, %v848_v39  ;;  %v833_v48 = vadd.f32 %v800_v25, %v604_v41  ;;  %v969_v7 = vmul.f32 %v926_v61, %v849_v40  ;;  %v951_v39 = vpop.permute.xlu0 %950 }
  0xfd   : > { %v606_v45 = vpop.f32.mrf.mxu1  ;;  %v811_v46 = vpop.f32.mrf.mxu0 }
  0xfe   : > { %1293 = vst [vmem:[%s1726_s8] sm:$0xff] %v1292_v44   ;;  %v607_v49 = vadd.f32 %v606_v45, %v475_v1  ;;  %v850_v56 = vadd.f32 %v1718_v33, %v833_v48  ;;  %v995_v21 = vmul.f32 %v969_v7, %v849_v40  ;;  %v978_v32 = vadd.f32 %v969_v7, %v968_v12 }
  0xff   : > { %v1381_v50 = vpop.f32.mrf.mxu1  ;;  %v1411_v51 = vpop.f32.mrf.mxu0 }
 0x100   : > { %v834_v53 = vadd.f32 %v803_v30, %v607_v49  ;;  %v970_v1 = vmul.f32 %v931_v52, %v850_v56  ;;  %v1004_v36 = vadd.f32 %v995_v21, %v994_v27  ;;  %v956_v51 = vpop.permute.xlu1 %955 }
 0x101   : > { %v611_v54 = vpop.f32.mrf.mxu1  ;;  %v816_v55 = vpop.f32.mrf.mxu0 }
 0x102   : > { %v851_v57 = vadd.f32 %v1718_v33, %v834_v53  ;;  %v612_v58 = vadd.f32 %v611_v54, %v480_v0  ;;  %v996_v28 = vmul.f32 %v970_v1, %v850_v56  ;;  %v979_v41 = vadd.f32 %v978_v32, %v970_v1 }
 0x103   : > { %v1384_v59 = vpop.f32.mrf.mxu1  ;;  %v1414_v60 = vpop.f32.mrf.mxu0 }
 0x104   : > { %v1297_v62 = vpack.c.bf16 %v851_v57, %v850_v56  ;;  %v835_v63 = vadd.f32 %v808_v38, %v612_v58  ;;  %v971_v22 = vmul.f32 %v936_v4, %v851_v57  ;;  %v1005_v43 = vadd.f32 %v1004_v36, %v996_v28  ;;  %v966_v1 = vpop.permute.xlu1 %965 }
 0x105   : > { %v614_v2 = vpop.f32.mrf.mxu1  ;;  %v819_v3 = vpop.f32.mrf.mxu0 }
 0x106   : > { %1314 = vst [vmem:[%s1726_s8 + $0x8] sm:$0xff] %v1297_v62   ;;  %v615_v6 = vadd.f32 %v614_v2, %v1705_v5  ;;  %v852_v14 = vadd.f32 %v1718_v33, %v835_v63  ;;  %v961_v2 = vpop.permute.xlu0 %960 }
 0x107   : > { %v1385_v8 = vpop.f32.mrf.mxu1  ;;  %v1415_v10 = vpop.f32.mrf.mxu0 }
 0x108   : > { %v836_v11 = vadd.f32 %v811_v46, %v615_v6  ;;  %v972_v29 = vmul.f32 %v941_v17, %v852_v14  ;;  %v980_v46 = vadd.f32 %v979_v41, %v971_v22 }
 0x109   : > { %v619_v0 = vpop.f32.mrf.mxu1  ;;  %v824_v15 = vpop.f32.mrf.mxu0 }
 0x10a   : > { %v853_v18 = vadd.f32 %v1718_v33, %v836_v11  ;;  %v620_v19 = vadd.f32 %v619_v0, %v1707_v9  ;;  %v997_v9 = vmul.f32 %v971_v22, %v851_v57  ;;  %v998_v44 = vmul.f32 %v972_v29, %v852_v14 }
 0x10b   : > { %v1388_v23 = vpop.f32.mrf.mxu1  ;;  %v1418_v5 = vpop.f32.mrf.mxu0  ;;  %v981_v53 = vadd.f32 %v980_v46, %v972_v29 }
 0x10c   : > { %v1302_v25 = vpack.c.bf16 %v853_v18, %v852_v14  ;;  %v837_v26 = vadd.f32 %v816_v55, %v620_v19  ;;  %v973_v37 = vmul.f32 %v946_v24, %v853_v18  ;;  %v1006_v50 = vadd.f32 %v1005_v43, %v997_v9 }
 0x10d   : > { %v622_v30 = vpop.f32.mrf.mxu1  ;;  %v827_v31 = vpop.f32.mrf.mxu0 }
 0x10e   : > { %1315 = vst [vmem:[%s1726_s8 + $0x10] sm:$0xff] %v1302_v25   ;;  %v854_v34 = vadd.f32 %v1718_v33, %v837_v26  ;;  %v623_v35 = vadd.f32 %v622_v30, %v1709_v13  ;;  %v999_v13 = vmul.f32 %v973_v37, %v853_v18  ;;  %v1007_v57 = vadd.f32 %v1006_v50, %v998_v44 }
 0x10f   : > { %v1389_v38 = vpop.f32.mrf.mxu1  ;;  %v1419_v40 = vpop.f32.mrf.mxu0  ;;  %v982_v59 = vadd.f32 %v981_v53, %v973_v37 }
 0x110   : > { %v838_v42 = vadd.f32 %v819_v3, %v623_v35  ;;  %v974_v47 = vmul.f32 %v951_v39, %v854_v34  ;;  %v1008_v63 = vadd.f32 %v1007_v57, %v999_v13 }
 0x111   : > { %v627_v45 = vpop.f32.mrf.mxu1 }
 0x112   : > { %v855_v48 = vadd.f32 %v1718_v33, %v838_v42  ;;  %v628_v49 = vadd.f32 %v627_v45, %v1711_v16  ;;  %v1000_v60 = vmul.f32 %v974_v47, %v854_v34  ;;  %v983_v3 = vadd.f32 %v982_v59, %v974_v47 }
 0x113   : > { %v1392_v52 = vpop.f32.mrf.mxu1 }
 0x114   : > { %v1307_v54 = vpack.c.bf16 %v855_v48, %v854_v34  ;;  %v975_v55 = vmul.f32 %v956_v51, %v855_v48  ;;  %v839_v56 = vadd.f32 %v824_v15, %v628_v49  ;;  %v1009_v8 = vadd.f32 %v1008_v63, %v1000_v60 }
 0x115   : > { %v630_v58 = vpop.f32.mrf.mxu1 }
 0x116   : > { %1316 = vst [vmem:[%s1726_s8 + $0x18] sm:$0xff] %v1307_v54   ;;  %v856_v61 = vadd.f32 %v1718_v33, %v839_v56  ;;  %v631_v62 = vadd.f32 %v630_v58, %v1713_v20  ;;  %v1001_v4 = vmul.f32 %v975_v55, %v855_v48  ;;  %v984_v10 = vadd.f32 %v983_v3, %v975_v55 }
 0x117   : > { %v1393_v16 = vpop.f32.mrf.mxu1 }
 0x118   : > { %v976_v6 = vmul.f32 %v961_v2, %v856_v61  ;;  %v840_v7 = vadd.f32 %v827_v31, %v631_v62  ;;  %v1010_v14 = vadd.f32 %v1009_v8, %v1001_v4 }
 0x11a   : > { %v1002_v11 = vmul.f32 %v976_v6, %v856_v61  ;;  %v857_v12 = vadd.f32 %v1718_v33, %v840_v7  ;;  %v985_v0 = vadd.f32 %v984_v10, %v976_v6 }
 0x11c   : > { %v1312_v15 = vpack.c.bf16 %v857_v12, %v856_v61  ;;  %v977_v17 = vmul.f32 %v966_v1, %v857_v12  ;;  %v1011_v20 = vadd.f32 %v1010_v14, %v1002_v11 }
 0x11e   : > { %1317 = vst [vmem:[%s1726_s8 + $0x20] sm:$0xff] %v1312_v15   ;;  %v986_v18 = vadd.f32 %v985_v0, %v977_v17  ;;  %v1003_v19 = vmul.f32 %v977_v17, %v857_v12 }
 0x120   : > { %v987_v21 = vrot.slane %v986_v18, 4  ;;  %v1012_v22 = vadd.f32 %v1011_v20, %v1003_v19 }
 0x122   : > { %v988_v23 = vadd.f32 %v987_v21, %v986_v18  ;;  %v1013_v5 = vrot.slane %v1012_v22, 4 }
 0x124   : > { %v989_v24 = vrot.slane %v988_v23, 2  ;;  %v1014_v25 = vadd.f32 %v1013_v5, %v1012_v22 }
 0x126   : > { %v990_v26 = vadd.f32 %v989_v24, %v988_v23  ;;  %v1015_v27 = vrot.slane %v1014_v25, 2 }
 0x128   : > { %v991_v33 = vrot.slane %v990_v26, 1  ;;  %v1016_v28 = vadd.f32 %v1015_v27, %v1014_v25 }
 0x12a   : > { %v992_v29 = vadd.f32 %v991_v33, %v990_v26  ;;  %v1017_v30 = vrot.slane %v1016_v28, 1 }
 0x12c   : > { %993 = vst [vmem:[%s329_s12] sm:$0x1] %v992_v29  ;;  %v1018_v31 = vadd.f32 %v1017_v30, %v1016_v28 }
 0x12e   : > { %1019 = vst [vmem:[%s335_s15] sm:$0x1] %v1018_v31 }
 0x12f PF: > { %s17_s23 = sadd.s32 1, %s1504_s23   ;;  %s1770_s21 = smov %s1500_s22 }
 0x130   : > { %p14_p5 = scmp.ge.s32.totalorder %s17_s23, 4   ;;  %s1771_s22 = smov %s1773_s24 }
 0x132   :  { %16 = sbr.rel (!%p14_p5) target bundleno = 2 (0x2), region = 99 }

// kernel: _lambda_.7
= control target key start
LH: loop header
LB: loop body
LE: loop exit
PB: predicated region body
PF: predicated region fallthrough
CT: control target
= control target key end

     0   :  { %s1494_s21 = smov 0   ;;  %s1496_s22 = smov 0   ;;  %s1752_s0 = inlined_call_operand.vmem [shape: bf16[2,1,112,48], index: 0, kind: input, shape index: {}]   ;;  %s1753_s1 = inlined_call_operand.vmem [shape: bf16[3,48,128], index: 1, kind: input, shape index: {}]   ;;  %s1754_s2 = inlined_call_operand.vmem [shape: f32[1,128], index: 2, kind: input, shape index: {}]   ;;  %s1755_s3 = inlined_call_operand.vmem [shape: f32[80,1], index: 3, kind: input, shape index: {}]   ;;  %s1756_s4 = inlined_call_operand.vmem [shape: bf16[2,80,128], index: 4, kind: output, shape index: {0}]   ;;  %s1757_s5 = inlined_call_operand.vmem [shape: f32[2,1,128], index: 5, kind: output, shape index: {1}]   ;;  %s1758_s6 = inlined_call_operand.vmem [shape: f32[2,1,128], index: 6, kind: output, shape index: {2}]  }
   0x1   :  { %s1498_s23 = smov 0  }
   0x2 LB: > { %s29_s24 = sadd.s32 1, %s1450_s22  ;;  %p1159_p0 = scmp.ge.s32.totalorder %s1454_s23, 1  ;;  %s1454_s23 = sphi %s1498_s23, %s17_s23   ;;  %s1450_s22 = sphi %s1496_s22, %s1760_s22   ;;  %s1446_s21 = sphi %s1494_s21, %s1759_s21  }
   0x3   : > { %p31_p1 = scmp.ge.s32.totalorder %s29_s24, 2  ;;  %p252_p2 = scmp.lt.s32.totalorder %s1454_s23, 3 }
   0x5   : > { %s1762_s24 = smov (%p31_p1, %s29_s24), 0  ;;  %p253_p3 = pnand %p1159_p0, %p252_p2 }
   0x6   : > { %p304_p4 = scmp.lt.s32.totalorder (!%p253_p3), %s1446_s21, 1 }
   0x7   : > { %256 = sbr.rel (%p253_p3) target bundleno = 303 (0x12f), region = 36 }
   0xc   : > { %v1406_v0 = vld [vmem:[%s1753_s1 + $0x28] sm:$0xff]   ;;  %v1456_v1 = vmov 0.0   ;;  %v1407_v2 = vld [vmem:[%s1753_s1 + $0x20] sm:$0xff]   ;;  %vm1457_vm0 = vmmov 0   ;;  %s1764_s21 = smov (!%p304_p4, %s1446_s21), 1  ;;  %v1408_v3 = vld [vmem:[%s1753_s1 + $0x18] sm:$0xff]  }
   0xd   : > { %1369 = vmatprep.subr.bf16.mxu1 %v1456_v1  ;;  %1291 = vmatprep.subr.bf16.mxu0 %v1456_v1  ;;  %s1375_s7 = smul.u32 56, %s1764_s21  ;;  %v1458_v4 = vmov 0   ;;  %vm391_vm1 = vcmask 1046528   ;;  %vm421_vm2 = vcmask 392192   ;;  %v1411_v21 = vld [vmem:[%s1753_s1 + $0x10] sm:$0xff]   ;;  %v1416_v26 = vld [vmem:[%s1753_s1 + $0x40] sm:$0xff]   ;;  %s329_s12 = scalar_lea.vmem %s1757_s5, %s1764_s21 }
   0xe   : > { %1372 = vmatpush3.bf16.msra.mxu1 %v1406_v0  ;;  %1292 = vmatpush3.bf16.msra.mxu0 %v1406_v0  ;;  %v1415_v29 = vld [vmem:[%s1753_s1 + $0x8] sm:$0xff]   ;;  %v1417_v30 = vld [vmem:[%s1753_s1 + $0x38] sm:$0xff]   ;;  %v866_v31 = vld [vmem:[%s1755_s3] sm:$0xff]  ;;  %vm671_vm3 = vcmask 1045504   ;;  %s1376_s29 = smul.u32 40, %s1764_s21  ;;  %s335_s15 = scalar_lea.vmem %s1758_s6, %s1764_s21 }
   0xf   : > { %1370 = vmatprep.subr.bf16.mxu1 %v1456_v1  ;;  %1293 = vmatprep.subr.bf16.mxu0 %v1456_v1  ;;  %s1537_s10 = scalar_lea.vmem %s1752_s0, %s1375_s7  ;;  %v868_v34 = vld [vmem:[%s1755_s3 + $0x10] sm:$0xff]  ;;  %v1419_v36 = vld [vmem:[%s1753_s1] sm:$0xff]   ;;  %v867_v40 = vld [vmem:[%s1755_s3 + $0x8] sm:$0xff] }
  0x10   : > { %1305 = vmatprep.mubr.msk.bf16.mxu1 %vm1457_vm0, %v1456_v1  ;;  %1297 = vmatprep.mubr.msk.bf16.mxu0 %vm1457_vm0, %v1456_v1  ;;  %v1540_v5 = vld [vmem:[%s1537_s10 + $0x14] sm:$0xf]  ;;  %v1543_v6 = vld [vmem:[%s1537_s10 + $0x18] sm:$0xf]  ;;  %v1546_v7 = vld [vmem:[%s1537_s10 + $0x1c] sm:$0xf]  ;;  %s1715_s8 = scalar_lea.vmem %s1756_s4, %s1376_s29 }
  0x11   : > { %1404 = vset.pattern.permute.xlu0 %v1458_v4  ;;  %1405 = vset.pattern.permute.xlu1 %v1458_v4  ;;  %v1549_v8 = vld [vmem:[%s1537_s10 + $0x20] sm:$0xf]  ;;  %v1170_v9 = vcombine.low %v1540_v5, %v1543_v6  ;;  %v1554_v10 = vld [vmem:[%s1537_s10 + $0x8] sm:$0xf]  ;;  %v1557_v11 = vld [vmem:[%s1537_s10 + $0xc] sm:$0xf]  ;;  %v1185_v4 = vcombine.low %v1543_v6, %v1546_v7 }
  0x12   : > { %1373 = vmatpush3.bf16.msra.mxu1 %v1407_v2  ;;  %1294 = vmatpush3.bf16.msra.mxu0 %v1407_v2  ;;  %v1171_v12 = vcombine.low %v1546_v7, %v1549_v8  ;;  %v1563_v13 = vld [vmem:[%s1537_s10 + $0x10] sm:$0xf]  ;;  %v353_v14 = vld [vmem:[%s1537_s10 + $0x4] sm:$0xe]  ;;  %v354_v19 = vld [vmem:[%s1537_s10 + $0x28] sm:$0xf]  ;;  %v1183_v59 = vcombine.low %v1554_v10, %v1557_v11 }
  0x13   : > { %1371 = vmatprep.subr.bf16.mxu1 %v1456_v1  ;;  %1295 = vmatprep.subr.bf16.mxu0 %v1456_v1  ;;  %v1567_v15 = vld [vmem:[%s1537_s10 + $0x24] sm:$0xf]  ;;  %v395_v16 = vrot.slane %v1170_v9, 1  ;;  %v1168_v17 = vcombine.low %v353_v14, %v1554_v10  ;;  %v1169_v18 = vcombine.low %v1557_v11, %v1563_v13  ;;  %v1418_v33 = vld [vmem:[%s1537_s10 + $0x2c] ss:$0 sps:$4 sm:$0x11]   ;;  %v1184_v63 = vcombine.low %v1563_v13, %v1540_v5 }
  0x14   : > { %v397_v20 = vrot.slane %v1171_v12, 1  ;;  %v1172_v22 = vcombine.low %v1567_v15, %v354_v19  ;;  %878 = vperm.xlu0 %1404, %v866_v31   ;;  %v1421_v37 = vld [vmem:[%s1537_s10 + $0x8] sm:$0xfc]   ;;  %v1422_v38 = vld [vmem:[%s1537_s10 + $0x10] sm:$0xff]   ;;  %888 = vperm.xlu1 %1405, %v868_v34   ;;  %v401_v41 = vrot.slane %v1418_v33, 1  ;;  %v869_v42 = vld [vmem:[%s1755_s3 + $0x18] sm:$0xff]  ;;  %v1186_v5 = vcombine.low %v1549_v8, %v1567_v15 }
  0x15   : > { %v392_v23 = vrot.slane %v1168_v17, 1  ;;  %v393_v24 = vrot.slane %v1169_v18, 1  ;;  %v1420_v39 = vld [vmem:[%s1753_s1 + $0x30] sm:$0xff]   ;;  %v672_v43 = vrot.slane %v1421_v37, 2  ;;  %v673_v44 = vrot.slane %v1422_v38, 2  ;;  %v870_v45 = vld [vmem:[%s1755_s3 + $0x20] sm:$0xff] }
  0x16   : > { %1374 = vmatpush3.bf16.msra.mxu1 %v1408_v3  ;;  %1296 = vmatpush3.bf16.msra.mxu0 %v1408_v3  ;;  %v398_v25 = vsel %vm391_vm1, %v395_v16, %v397_v20  ;;  %v399_v28 = vrot.slane %v1172_v22, 1  ;;  %v871_v47 = vld [vmem:[%s1755_s3 + $0x28] sm:$0xff]  ;;  %v1424_v49 = vld [vmem:[%s1537_s10 + $0x18] sm:$0xff]   ;;  %v872_v50 = vld [vmem:[%s1755_s3 + $0x30] sm:$0xff] }
  0x17   : > { %1317 = vmatprep.subr.bf16.mxu1 %v1456_v1  ;;  %1343 = vmatprep.subr.bf16.mxu0 %v1456_v1  ;;  %v394_v27 = vsel %vm391_vm1, %v392_v23, %v393_v24  ;;  %v396_v35 = vsel %vm391_vm1, %v393_v24, %v395_v16  ;;  %v674_v48 = vsel %vm671_vm3, %v672_v43, %v673_v44  ;;  %v873_v51 = vld [vmem:[%s1755_s3 + $0x38] sm:$0xff]  ;;  %v675_v52 = vrot.slane %v1424_v49, 2  ;;  %v1423_v53 = vld [vmem:[%s1537_s10] sm:$0xff]   ;;  %v875_v55 = vld [vmem:[%s1755_s3 + $0x48] sm:$0xff] }
  0x18   : > { %v400_v32 = vsel %vm391_vm1, %v397_v20, %v399_v28  ;;  %883 = vperm.xlu0 %1404, %v867_v40   ;;  %893 = vperm.xlu1 %1405, %v869_v42   ;;  %v402_v46 = vsel %vm391_vm1, %v399_v28, %v401_v41  ;;  %v874_v54 = vld [vmem:[%s1755_s3 + $0x40] sm:$0xff]  ;;  %v1428_v61 = vld [vmem:[%s1537_s10 + $0x28] sm:$0xff]   ;;  %v1430_v2 = vld [vmem:[%s1537_s10 + $0x30] ss:$0 sps:$4 sm:$0x33]  }
  0x19   : > { %1306 = vmatmul.mubr.msk.bf16.vlgmr.msra.gmra.mxu1 %vm421_vm2, %v398_v25  ;;  %1298 = vmatmul.mubr.msk.bf16.vlgmr.msra.gmra.mxu0 %vm421_vm2, %v394_v27  ;;  %v676_v56 = vsel %vm671_vm3, %v673_v44, %v675_v52  ;;  %v1426_v57 = vld [vmem:[%s1537_s10 + $0x20] sm:$0xff]   ;;  %v679_v62 = vrot.slane %v1428_v61, 2  ;;  %v681_v3 = vrot.slane %v1430_v2, 2 }
  0x1a   : > { %1318 = vmatpush3.bf16.msra.mxu1 %v1411_v21  ;;  %1309 = vmatprep.mubr.msk.bf16.mxu1 %vm1457_vm0, %v1456_v1  ;;  %v677_v58 = vrot.slane %v1426_v57, 2 }
  0x1b   : > { %1319 = vmatprep.subr.bf16.mxu1 %v1456_v1  ;;  %1344 = vmatpush3.bf16.msra.mxu0 %v1416_v26  ;;  %v682_v9 = vsel %vm671_vm3, %v679_v62, %v681_v3 }
  0x1c   : > { %1301 = vmatprep.mubr.msk.bf16.mxu0 %vm1457_vm0, %v1456_v1  ;;  %1345 = vmatprep.subr.bf16.mxu0 %v1456_v1  ;;  %v678_v60 = vsel %vm671_vm3, %v675_v52, %v677_v58  ;;  %v680_v0 = vsel %vm671_vm3, %v677_v58, %v679_v62 }
  0x1d   : > { %898 = vperm.xlu0 %1404, %v870_v45   ;;  %903 = vperm.xlu1 %1405, %v871_v47  }
  0x1e   : > { %1320 = vmatpush3.bf16.msra.mxu1 %v1415_v29 }
  0x1f   : > { %1321 = vmatprep.subr.bf16.mxu1 %v1456_v1  ;;  %1346 = vmatpush3.bf16.msra.mxu0 %v1417_v30 }
  0x20   : > { %1347 = vmatprep.subr.bf16.mxu0 %v1456_v1 }
  0x21   : > { %1310 = vmatmul.mubr.msk.bf16.gmra.mxu1 %vm421_vm2, %v400_v32  ;;  %1302 = vmatmul.mubr.msk.bf16.gmra.mxu0 %vm421_vm2, %v396_v35 }
  0x22   : > { %1313 = vmatprep.mubr.msk.bf16.mxu1 %vm1457_vm0, %v1456_v1  ;;  %1322 = vmatpush3.bf16.msra.mxu1 %v1419_v36 }
  0x23   : > { %1349 = vmatprep.mubr.msk.bf16.mxu0 %vm1457_vm0, %v1456_v1  ;;  %1348 = vmatpush3.bf16.msra.mxu0 %v1420_v39  ;;  %v1707_v39 = vld [vmem:[%s1754_s2] ss:$0 sm:$0xff] }
  0x24   : > { %908 = vperm.xlu0 %1404, %v872_v50   ;;  %913 = vperm.xlu1 %1405, %v873_v51  }
  0x28   : > { %918 = vperm.xlu0 %1404, %v874_v54   ;;  %923 = vperm.xlu1 %1405, %v875_v55  }
  0x29   : > { %1314 = vmatmul.mubr.msk.bf16.gmra.mxu1 %vm421_vm2, %v402_v46  ;;  %1350 = vmatmul.mubr.msk.bf16.vlgmr.msra.gmra.mxu0 %vm421_vm2, %v674_v48 }
  0x2a   : > { %1323 = vmatprep.mubr.msk.bf16.mxu1 %vm1457_vm0, %v1456_v1  ;;  %1353 = vmatprep.mubr.msk.bf16.mxu0 %vm1457_vm0, %v1456_v1 }
  0x31   : > { %1324 = vmatmul.mubr.msk.bf16.vlgmr.msra.gmra.mxu1 %vm421_vm2, %v1423_v53  ;;  %1354 = vmatmul.mubr.msk.bf16.gmra.mxu0 %vm421_vm2, %v676_v56 }
  0x32   : > { %1327 = vmatprep.mubr.msk.bf16.mxu1 %vm1457_vm0, %v1456_v1  ;;  %1357 = vmatprep.mubr.msk.bf16.mxu0 %vm1457_vm0, %v1456_v1 }
  0x39   : > { %1328 = vmatmul.mubr.msk.bf16.gmra.mxu1 %vm421_vm2, %v1183_v59  ;;  %1358 = vmatmul.mubr.msk.bf16.gmra.mxu0 %vm421_vm2, %v678_v60 }
  0x3a   : > { %1331 = vmatprep.mubr.msk.bf16.mxu1 %vm1457_vm0, %v1456_v1  ;;  %1361 = vmatprep.mubr.msk.bf16.mxu0 %vm1457_vm0, %v1456_v1 }
  0x41   : > { %1332 = vmatmul.mubr.msk.bf16.gmra.mxu1 %vm421_vm2, %v1184_v63  ;;  %1362 = vmatmul.mubr.msk.bf16.gmra.mxu0 %vm421_vm2, %v680_v0 }
  0x42   : > { %1335 = vmatprep.mubr.msk.bf16.mxu1 %vm1457_vm0, %v1456_v1  ;;  %1365 = vmatprep.mubr.msk.bf16.mxu0 %vm1457_vm0, %v1456_v1 }
  0x49   : > { %1336 = vmatmul.mubr.msk.bf16.gmra.mxu1 %vm421_vm2, %v1185_v4  ;;  %1366 = vmatmul.mubr.msk.bf16.gmra.mxu0 %vm421_vm2, %v682_v9 }
  0x4a   : > { %1339 = vmatprep.mubr.msk.bf16.mxu1 %vm1457_vm0, %v1456_v1 }
  0x51   : > { %1340 = vmatmul.mubr.msk.bf16.gmra.mxu1 %vm421_vm2, %v1186_v5 }
  0x8f   : > { %v879_v52 = vpop.permute.xlu0 %878  ;;  %v889_v59 = vpop.permute.xlu1 %888 }
  0x93   : > { %v884_v3 = vpop.permute.xlu0 %883 }
  0xd9   : > { %v487_v10 = vpop.f32.mrf.mxu1  ;;  %v471_v11 = vpop.f32.mrf.mxu0 }
  0xdb   : > { %v1307_v12 = vpop.f32.mrf.mxu1  ;;  %v1299_v13 = vpop.f32.mrf.mxu0 }
  0xdd   : > { %v1694_v14 = vpop.f32.mrf.mxu1  ;;  %v474_v6 = vpop.f32.mrf.mxu0 }
  0xdf   : > { %v1308_v7 = vpop.f32.mrf.mxu1  ;;  %v1300_v16 = vpop.f32.mrf.mxu0 }
  0xe0   : > { %v894_v7 = vpop.permute.xlu1 %893 }
  0xe1   : > { %v1696_v17 = vpop.f32.mrf.mxu1  ;;  %v479_v18 = vpop.f32.mrf.mxu0 }
  0xe3   : > { %v1311_v19 = vpop.f32.mrf.mxu1  ;;  %v1303_v20 = vpop.f32.mrf.mxu0 }
  0xe5   : > { %v1698_v1 = vpop.f32.mrf.mxu1  ;;  %v482_v21 = vpop.f32.mrf.mxu0 }
  0xe7   : > { %v1312_v8 = vpop.f32.mrf.mxu1  ;;  %v1304_v15 = vpop.f32.mrf.mxu0 }
  0xe9   : > { %v1700_v22 = vpop.f32.mrf.mxu1  ;;  %v750_v23 = vpop.f32.mrf.mxu0 }
  0xeb   : > { %v1315_v24 = vpop.f32.mrf.mxu1  ;;  %v1351_v25 = vpop.f32.mrf.mxu0 }
  0xed   : > { %v1702_v26 = vpop.f32.mrf.mxu1  ;;  %v753_v27 = vpop.f32.mrf.mxu0 }
  0xef   : > { %v1316_v28 = vpop.f32.mrf.mxu1  ;;  %v1352_v29 = vpop.f32.mrf.mxu0 }
  0xf1   : > { %v586_v30 = vpop.f32.mrf.mxu1  ;;  %v758_v32 = vpop.f32.mrf.mxu0 }
  0xf2   : > { %v587_v31 = vadd.f32 %v586_v30, %v471_v11 }
  0xf3   : > { %v1325_v33 = vpop.f32.mrf.mxu1  ;;  %v1355_v34 = vpop.f32.mrf.mxu0 }
  0xf4   : > { %v789_v36 = vadd.f32 %v750_v23, %v587_v31 }
  0xf5   : > { %v589_v35 = vpop.f32.mrf.mxu1  ;;  %v761_v38 = vpop.f32.mrf.mxu0 }
  0xf6   : > { %v590_v37 = vadd.f32 %v589_v35, %v474_v6  ;;  %v806_v44 = vadd.f32 %v1707_v39, %v789_v36  ;;  %v904_v35 = vpop.permute.xlu1 %903 }
  0xf7   : > { %v1326_v40 = vpop.f32.mrf.mxu1  ;;  %v1356_v42 = vpop.f32.mrf.mxu0 }
  0xf8   : > { %v790_v41 = vadd.f32 %v753_v27, %v590_v37  ;;  %v926_v20 = vmul.f32 %v879_v52, %v806_v44 }
  0xf9   : > { %v594_v43 = vpop.f32.mrf.mxu1  ;;  %v766_v47 = vpop.f32.mrf.mxu0 }
  0xfa   : > { %v807_v45 = vadd.f32 %v1707_v39, %v790_v41  ;;  %v595_v46 = vadd.f32 %v594_v43, %v479_v18 }
  0xfb   : > { %v1329_v48 = vpop.f32.mrf.mxu1  ;;  %v1359_v50 = vpop.f32.mrf.mxu0 }
  0xfc   : > { %v1241_v49 = vpack.c.bf16 %v807_v45, %v806_v44  ;;  %v791_v53 = vadd.f32 %v758_v32, %v595_v46  ;;  %v927_v6 = vmul.f32 %v884_v3, %v807_v45  ;;  %v952_v32 = vmul.f32 %v926_v20, %v806_v44 }
  0xfd   : > { %v597_v51 = vpop.f32.mrf.mxu1  ;;  %v769_v55 = vpop.f32.mrf.mxu0 }
  0xfe   : > { %1242 = vst [vmem:[%s1715_s8] sm:$0xff] %v1241_v49   ;;  %v598_v54 = vadd.f32 %v597_v51, %v482_v21  ;;  %v808_v61 = vadd.f32 %v1707_v39, %v791_v53  ;;  %v953_v25 = vmul.f32 %v927_v6, %v807_v45  ;;  %v936_v37 = vadd.f32 %v927_v6, %v926_v20 }
  0xff   : > { %v1330_v56 = vpop.f32.mrf.mxu1  ;;  %v1360_v58 = vpop.f32.mrf.mxu0 }
 0x100   : > { %v792_v57 = vadd.f32 %v761_v38, %v598_v54  ;;  %v928_v21 = vmul.f32 %v889_v59, %v808_v61  ;;  %v962_v41 = vadd.f32 %v953_v25, %v952_v32 }
 0x101   : > { %v602_v60 = vpop.f32.mrf.mxu1  ;;  %v774_v0 = vpop.f32.mrf.mxu0 }
 0x102   : > { %v809_v62 = vadd.f32 %v1707_v39, %v792_v57  ;;  %v603_v63 = vadd.f32 %v602_v60, %v487_v10  ;;  %v954_v33 = vmul.f32 %v928_v21, %v808_v61  ;;  %v937_v46 = vadd.f32 %v936_v37, %v928_v21  ;;  %v914_v57 = vpop.permute.xlu1 %913 }
 0x103   : > { %v1333_v2 = vpop.f32.mrf.mxu1  ;;  %v1363_v9 = vpop.f32.mrf.mxu0 }
 0x104   : > { %v1246_v4 = vpack.c.bf16 %v809_v62, %v808_v61  ;;  %v793_v5 = vadd.f32 %v766_v47, %v603_v63  ;;  %v929_v27 = vmul.f32 %v894_v7, %v809_v62  ;;  %v963_v49 = vadd.f32 %v962_v41, %v954_v33 }
 0x105   : > { %v605_v11 = vpop.f32.mrf.mxu1  ;;  %v777_v13 = vpop.f32.mrf.mxu0 }
 0x106   : > { %1263 = vst [vmem:[%s1715_s8 + $0x8] sm:$0xff] %v1246_v4   ;;  %v606_v12 = vadd.f32 %v605_v11, %v1694_v14  ;;  %v810_v10 = vadd.f32 %v1707_v39, %v793_v5  ;;  %v899_v14 = vpop.permute.xlu0 %898  ;;  %v955_v42 = vmul.f32 %v929_v27, %v809_v62  ;;  %v938_v52 = vadd.f32 %v937_v46, %v929_v27  ;;  %v924_v21 = vpop.permute.xlu1 %923 }
 0x107   : > { %v1334_v16 = vpop.f32.mrf.mxu1  ;;  %v1364_v19 = vpop.f32.mrf.mxu0 }
 0x108   : > { %v794_v18 = vadd.f32 %v769_v55, %v606_v12  ;;  %v930_v34 = vmul.f32 %v899_v14, %v810_v10 }
 0x109   : > { %v610_v8 = vpop.f32.mrf.mxu1  ;;  %v782_v24 = vpop.f32.mrf.mxu0 }
 0x10a   : > { %v811_v15 = vadd.f32 %v1707_v39, %v794_v18  ;;  %v611_v23 = vadd.f32 %v610_v8, %v1696_v17  ;;  %v956_v44 = vmul.f32 %v930_v34, %v810_v10  ;;  %v909_v50 = vpop.permute.xlu0 %908  ;;  %v939_v59 = vadd.f32 %v938_v52, %v930_v34 }
 0x10b   : > { %v1337_v28 = vpop.f32.mrf.mxu1  ;;  %v1367_v31 = vpop.f32.mrf.mxu0 }
 0x10c   : > { %v1251_v29 = vpack.c.bf16 %v811_v15, %v810_v10  ;;  %v795_v30 = vadd.f32 %v774_v0, %v611_v23  ;;  %v931_v43 = vmul.f32 %v904_v35, %v811_v15 }
 0x10d   : > { %v613_v36 = vpop.f32.mrf.mxu1  ;;  %v785_v17 = vpop.f32.mrf.mxu0 }
 0x10e   : > { %1264 = vst [vmem:[%s1715_s8 + $0x10] sm:$0xff] %v1251_v29   ;;  %v812_v38 = vadd.f32 %v1707_v39, %v795_v30  ;;  %v614_v40 = vadd.f32 %v613_v36, %v1698_v1  ;;  %v964_v1 = vadd.f32 %v963_v49, %v955_v42  ;;  %v957_v56 = vmul.f32 %v931_v43, %v811_v15  ;;  %v919_v11 = vpop.permute.xlu0 %918 }
 0x10f   : > { %v1338_v45 = vpop.f32.mrf.mxu1  ;;  %v1368_v48 = vpop.f32.mrf.mxu0  ;;  %v940_v2 = vadd.f32 %v939_v59, %v931_v43 }
 0x110   : > { %v796_v47 = vadd.f32 %v777_v13, %v614_v40  ;;  %v932_v53 = vmul.f32 %v909_v50, %v812_v38  ;;  %v965_v63 = vadd.f32 %v964_v1, %v956_v44 }
 0x111   : > { %v618_v51 = vpop.f32.mrf.mxu1 }
 0x112   : > { %v813_v54 = vadd.f32 %v1707_v39, %v796_v47  ;;  %v619_v55 = vadd.f32 %v618_v51, %v1700_v22  ;;  %v958_v3 = vmul.f32 %v932_v53, %v812_v38  ;;  %v966_v5 = vadd.f32 %v965_v63, %v957_v56 }
 0x113   : > { %v1341_v58 = vpop.f32.mrf.mxu1  ;;  %v941_v12 = vadd.f32 %v940_v2, %v932_v53 }
 0x114   : > { %v1256_v60 = vpack.c.bf16 %v813_v54, %v812_v38  ;;  %v933_v61 = vmul.f32 %v914_v57, %v813_v54  ;;  %v797_v62 = vadd.f32 %v782_v24, %v619_v55  ;;  %v967_v16 = vadd.f32 %v966_v5, %v958_v3 }
 0x115   : > { %v621_v0 = vpop.f32.mrf.mxu1 }
 0x116   : > { %1265 = vst [vmem:[%s1715_s8 + $0x18] sm:$0xff] %v1256_v60   ;;  %v814_v4 = vadd.f32 %v1707_v39, %v797_v62  ;;  %v622_v9 = vadd.f32 %v621_v0, %v1702_v26  ;;  %v959_v13 = vmul.f32 %v933_v61, %v813_v54  ;;  %v942_v18 = vadd.f32 %v941_v12, %v933_v61 }
 0x117   : > { %v1342_v22 = vpop.f32.mrf.mxu1 }
 0x118   : > { %v934_v6 = vmul.f32 %v919_v11, %v814_v4  ;;  %v798_v7 = vadd.f32 %v785_v17, %v622_v9  ;;  %v968_v10 = vadd.f32 %v967_v16, %v959_v13 }
 0x11a   : > { %v960_v19 = vmul.f32 %v934_v6, %v814_v4  ;;  %v815_v20 = vadd.f32 %v1707_v39, %v798_v7  ;;  %v943_v8 = vadd.f32 %v942_v18, %v934_v6 }
 0x11c   : > { %v1261_v15 = vpack.c.bf16 %v815_v20, %v814_v4  ;;  %v935_v23 = vmul.f32 %v924_v21, %v815_v20  ;;  %v969_v26 = vadd.f32 %v968_v10, %v960_v19 }
 0x11e   : > { %1266 = vst [vmem:[%s1715_s8 + $0x20] sm:$0xff] %v1261_v15   ;;  %v944_v24 = vadd.f32 %v943_v8, %v935_v23  ;;  %v961_v25 = vmul.f32 %v935_v23, %v815_v20 }
 0x120   : > { %v945_v27 = vrot.slane %v944_v24, 4  ;;  %v970_v14 = vadd.f32 %v969_v26, %v961_v25 }
 0x122   : > { %v946_v28 = vadd.f32 %v945_v27, %v944_v24  ;;  %v971_v29 = vrot.slane %v970_v14, 4 }
 0x124   : > { %v947_v30 = vrot.slane %v946_v28, 2  ;;  %v972_v31 = vadd.f32 %v971_v29, %v970_v14 }
 0x126   : > { %v948_v32 = vadd.f32 %v947_v30, %v946_v28  ;;  %v973_v33 = vrot.slane %v972_v31, 2 }
 0x128   : > { %v949_v39 = vrot.slane %v948_v32, 1  ;;  %v974_v34 = vadd.f32 %v973_v33, %v972_v31 }
 0x12a   : > { %v950_v35 = vadd.f32 %v949_v39, %v948_v32  ;;  %v975_v36 = vrot.slane %v974_v34, 1 }
 0x12c   : > { %951 = vst [vmem:[%s329_s12] sm:$0x1] %v950_v35  ;;  %v976_v37 = vadd.f32 %v975_v36, %v974_v34 }
 0x12e   : > { %977 = vst [vmem:[%s335_s15] sm:$0x1] %v976_v37 }
 0x12f PF: > { %s17_s23 = sadd.s32 1, %s1454_s23   ;;  %s1759_s21 = smov %s1450_s22 }
 0x130   : > { %p14_p5 = scmp.ge.s32.totalorder %s17_s23, 4   ;;  %s1760_s22 = smov %s1762_s24 }
 0x132   :  { %16 = sbr.rel (!%p14_p5) target bundleno = 2 (0x2), region = 98 }

// kernel: _lambda_.9
= control target key start
LH: loop header
LB: loop body
LE: loop exit
PB: predicated region body
PF: predicated region fallthrough
CT: control target
= control target key end

     0   :  { %v356_v0 = vmov 0.0   ;;  %vm357_vm0 = vmmov 0   ;;  %s448_s1 = inlined_call_operand.vmem [shape: bf16[128,128], index: 1, kind: input, shape index: {}]   ;;  %s449_s3 = inlined_call_operand.vmem [shape: bf16[128,128], index: 3, kind: input, shape index: {}]   ;;  %s450_s0 = inlined_call_operand.vmem [shape: bf16[8,128], index: 0, kind: input, shape index: {}]   ;;  %s451_s2 = inlined_call_operand.vmem [shape: f32[1,128], index: 2, kind: input, shape index: {}]   ;;  %s452_s4 = inlined_call_operand.vmem [shape: f32[1,128], index: 4, kind: input, shape index: {}]   ;;  %s453_s5 = inlined_call_operand.vmem [shape: f32[8,128], index: 5, kind: output, shape index: {}]  }
   0x1   :  { %294 = vmatprep.subr.bf16.mxu0 %v356_v0  ;;  %v336_v1 = vld [vmem:[%s448_s1 + $0x38] sm:$0xff]   ;;  %310 = vmatprep.mubr.msk.bf16.mxu0 %vm357_vm0, %v356_v0  ;;  %v337_v2 = vld [vmem:[%s448_s1 + $0x30] sm:$0xff]   ;;  %v338_v3 = vld [vmem:[%s448_s1 + $0x28] sm:$0xff]  }
   0x2   :  { %314 = vmatprep.subr.bf16.mxu1 %v356_v0  ;;  %330 = vmatprep.mubr.msk.bf16.mxu1 %vm357_vm0, %v356_v0  ;;  %v344_v4 = vld [vmem:[%s449_s3 + $0x38] sm:$0xff]   ;;  %v339_v5 = vld [vmem:[%s448_s1 + $0x20] sm:$0xff]   ;;  %v345_v6 = vld [vmem:[%s449_s3 + $0x30] sm:$0xff]  }
   0x3   :  { %295 = vmatpush3.bf16.msra.mxu0 %v336_v1  ;;  %315 = vmatpush3.bf16.msra.mxu1 %v344_v4  ;;  %v340_v7 = vld [vmem:[%s448_s1 + $0x18] sm:$0xff]   ;;  %v346_v8 = vld [vmem:[%s449_s3 + $0x28] sm:$0xff]   ;;  %v341_v9 = vld [vmem:[%s448_s1 + $0x10] sm:$0xff]  }
   0x4   :  { %296 = vmatprep.subr.bf16.mxu0 %v356_v0  ;;  %316 = vmatprep.subr.bf16.mxu1 %v356_v0  ;;  %v347_v10 = vld [vmem:[%s449_s3 + $0x20] sm:$0xff]   ;;  %v342_v11 = vld [vmem:[%s448_s1 + $0x8] sm:$0xff]   ;;  %v348_v12 = vld [vmem:[%s449_s3 + $0x18] sm:$0xff]  }
   0x5   :  { %v343_v13 = vld [vmem:[%s448_s1] sm:$0xff]   ;;  %v349_v14 = vld [vmem:[%s449_s3 + $0x10] sm:$0xff]   ;;  %v350_v16 = vld [vmem:[%s449_s3 + $0x8] sm:$0xff]  }
   0x6   :  { %v21_v15 = vld [vmem:[%s450_s0] sm:$0xf] }
   0x7   :  { %297 = vmatpush3.bf16.msra.mxu0 %v337_v2  ;;  %317 = vmatpush3.bf16.msra.mxu1 %v345_v6  ;;  %v351_v17 = vld [vmem:[%s449_s3] sm:$0xff]  }
   0x8   :  { %298 = vmatprep.subr.bf16.mxu0 %v356_v0  ;;  %318 = vmatprep.subr.bf16.mxu1 %v356_v0  ;;  %v258_v18 = vld [vmem:[%s451_s2] ss:$0 sm:$0xff] }
   0x9   :  { %v267_v27 = vld [vmem:[%s452_s4] ss:$0 sm:$0xff] }
   0xb   :  { %299 = vmatpush3.bf16.msra.mxu0 %v338_v3  ;;  %319 = vmatpush3.bf16.msra.mxu1 %v346_v8 }
   0xc   :  { %300 = vmatprep.subr.bf16.mxu0 %v356_v0  ;;  %320 = vmatprep.subr.bf16.mxu1 %v356_v0 }
   0xf   :  { %301 = vmatpush3.bf16.msra.mxu0 %v339_v5  ;;  %321 = vmatpush3.bf16.msra.mxu1 %v347_v10 }
  0x10   :  { %302 = vmatprep.subr.bf16.mxu0 %v356_v0  ;;  %322 = vmatprep.subr.bf16.mxu1 %v356_v0 }
  0x13   :  { %303 = vmatpush3.bf16.msra.mxu0 %v340_v7  ;;  %323 = vmatpush3.bf16.msra.mxu1 %v348_v12 }
  0x14   :  { %304 = vmatprep.subr.bf16.mxu0 %v356_v0  ;;  %324 = vmatprep.subr.bf16.mxu1 %v356_v0 }
  0x17   :  { %305 = vmatpush3.bf16.msra.mxu0 %v341_v9  ;;  %325 = vmatpush3.bf16.msra.mxu1 %v349_v14 }
  0x18   :  { %306 = vmatprep.subr.bf16.mxu0 %v356_v0  ;;  %326 = vmatprep.subr.bf16.mxu1 %v356_v0 }
  0x1b   :  { %307 = vmatpush3.bf16.msra.mxu0 %v342_v11  ;;  %327 = vmatpush3.bf16.msra.mxu1 %v350_v16 }
  0x1c   :  { %308 = vmatprep.subr.bf16.mxu0 %v356_v0  ;;  %328 = vmatprep.subr.bf16.mxu1 %v356_v0 }
  0x1f   :  { %309 = vmatpush3.bf16.msra.mxu0 %v343_v13  ;;  %329 = vmatpush3.bf16.msra.mxu1 %v351_v17 }
  0x22   :  { %311 = vmatmul.mubr.bf16.vlgmr.msra.gmra.mxu0 %v21_v15 }
  0xe2   :  { %v127_v19 = vpop.f32.mrf.mxu0 }
  0xe3   :  { %v128_v20 = vadd.f32 %v258_v18, %v127_v19 }
  0xe4   :  { %v312_v21 = vpop.f32.mrf.mxu0 }
  0xe5   :  { %vm133_vm1 = vcmp.gt.f32.partialorder %v128_v20, 0.0  ;;  %v134_v22 = vmul.f32 0.2, %v128_v20 }
  0xe6   :  { %v130_v23 = vpop.f32.mrf.mxu0 }
  0xe7   :  { %v135_v24 = vsel %vm133_vm1, %v128_v20, %v134_v22 }
  0xe8   :  { %v313_v25 = vpop.f32.mrf.mxu0  ;;  %v136_v26 = vpack.c.bf16 %v135_v24, %v135_v24 }
  0xea   :  { %331 = vmatmul.mubr.bf16.vlgmr.msra.gmra.mxu1 %v136_v26 }
 0x1aa   :  { %v242_v28 = vpop.f32.mrf.mxu1 }
 0x1ab   :  { %v243_v29 = vadd.f32 %v267_v27, %v242_v28 }
 0x1ac   :  { %v332_v30 = vpop.f32.mrf.mxu1 }
 0x1ad   :  { %v248_v31 = vsub.f32 0.0, %v243_v29 }
 0x1ae   :  { %v245_v32 = vpop.f32.mrf.mxu1 }
 0x1af   :  { %v249_v33 = vmul.f32 1.442695, %v248_v31 }
 0x1b0   :  { %v333_v34 = vpop.f32.mrf.mxu1 }
 0x1b1   :  { %352 = vpow2.f32 %v249_v33 }
 0x1be   :  { %v353_v35 = vpop.eup %352 }
 0x1bf   :  { %v251_v36 = vadd.f32 1.0, %v353_v35 }
 0x1c1   :  { %354 = vrcp.f32 %v251_v36 }
 0x1ce   :  { %v355_v37 = vpop.eup %354 }
 0x1cf   :  { %253 = vst [vmem:[%s453_s5] sm:$0xff] %v355_v37 }

// kernel: _lambda_.8
= control target key start
LH: loop header
LB: loop body
LE: loop exit
PB: predicated region body
PF: predicated region fallthrough
CT: control target
= control target key end

     0   :  { %s1262_s21 = smov 0   ;;  %s1264_s22 = smov 0   ;;  %s1393_s0 = inlined_call_operand.vmem [shape: bf16[2,2,48,96], index: 0, kind: input, shape index: {}]   ;;  %s1394_s1 = inlined_call_operand.vmem [shape: bf16[3,96,128], index: 1, kind: input, shape index: {}]   ;;  %s1395_s2 = inlined_call_operand.vmem [shape: f32[1,128], index: 2, kind: input, shape index: {}]   ;;  %s1396_s3 = inlined_call_operand.vmem [shape: f32[32,1], index: 3, kind: input, shape index: {}]   ;;  %s1397_s4 = inlined_call_operand.vmem [shape: bf16[2,32,128], index: 4, kind: output, shape index: {0}]   ;;  %s1398_s5 = inlined_call_operand.vmem [shape: f32[2,1,128], index: 5, kind: output, shape index: {1}]   ;;  %s1399_s6 = inlined_call_operand.vmem [shape: f32[2,1,128], index: 6, kind: output, shape index: {2}]  }
   0x1   :  { %s1266_s23 = smov 0  }
   0x2 LB: > { %s29_s24 = sadd.s32 1, %s1220_s22  ;;  %p991_p0 = scmp.ge.s32.totalorder %s1224_s23, 1  ;;  %s1224_s23 = sphi %s1266_s23, %s17_s23   ;;  %s1220_s22 = sphi %s1264_s22, %s1401_s22   ;;  %s1216_s21 = sphi %s1262_s21, %s1400_s21  }
   0x3   : > { %p31_p1 = scmp.ge.s32.totalorder %s29_s24, 2  ;;  %p252_p2 = scmp.lt.s32.totalorder %s1224_s23, 3 }
   0x5   : > { %s1403_s24 = smov (%p31_p1, %s29_s24), 0  ;;  %p253_p3 = pnand %p991_p0, %p252_p2 }
   0x6   : > { %p304_p4 = scmp.lt.s32.totalorder (!%p253_p3), %s1216_s21, 1 }
   0x7   : > { %256 = sbr.rel (%p253_p3) target bundleno = 287 (0x11f), region = 36 }
   0xc   : > { %v1177_v0 = vld [vmem:[%s1394_s1 + $0x58] sm:$0xff]   ;;  %v1178_v1 = vld [vmem:[%s1394_s1 + $0x28] sm:$0xff]   ;;  %v1179_v2 = vld [vmem:[%s1394_s1 + $0x50] sm:$0xff]   ;;  %s1405_s21 = smov (!%p304_p4, %s1216_s21), 1  ;;  %v1226_v6 = vmov 0   ;;  %vm417_vm0 = vcmask 785408  }
   0xd   : > { %1101 = vmatprep.subr.bf16.mxu0 %v1177_v0  ;;  %1117 = vmatprep.subr.bf16.mxu1 %v1178_v1  ;;  %v1180_v3 = vld [vmem:[%s1394_s1 + $0x20] sm:$0xff]   ;;  %v1181_v4 = vld [vmem:[%s1394_s1 + $0x48] sm:$0xff]   ;;  %v1182_v5 = vld [vmem:[%s1394_s1 + $0x18] sm:$0xff]   ;;  %s1149_s13 = smul.u32 48, %s1405_s21  ;;  %vm605_vm1 = vsmask.f32 5376  ;;  %s329_s17 = scalar_lea.vmem %s1398_s5, %s1405_s21 }
   0xe   : > { %1102 = vmatpush3.bf16.msra.mxu0 %v1177_v0  ;;  %1118 = vmatpush3.bf16.msra.mxu1 %v1178_v1  ;;  %v1183_v7 = vld [vmem:[%s1394_s1 + $0x40] sm:$0xff]   ;;  %v1184_v8 = vld [vmem:[%s1394_s1 + $0x10] sm:$0xff]   ;;  %v1185_v9 = vld [vmem:[%s1394_s1 + $0x38] sm:$0xff]   ;;  %s1061_s11 = sshll.u32 %s1405_s21, 4  ;;  %s335_s25 = scalar_lea.vmem %s1399_s6, %s1405_s21 }
   0xf   : > { %1103 = vmatprep.subr.bf16.mxu0 %v1179_v2  ;;  %1119 = vmatprep.subr.bf16.mxu1 %v1180_v3  ;;  %s1310_s20 = scalar_lea.vmem %s1393_s0, %s1149_s13  ;;  %v1186_v10 = vld [vmem:[%s1394_s1 + $0x8] sm:$0xff]   ;;  %v1187_v13 = vld [vmem:[%s1394_s1 + $0x30] sm:$0xff]   ;;  %v1188_v14 = vld [vmem:[%s1394_s1] sm:$0xff]   ;;  %s323_s14 = scalar_lea.vmem %s1397_s4, %s1061_s11 }
  0x10   : > { %1175 = vset.pattern.permute.xlu0 %v1226_v6  ;;  %1176 = vset.pattern.permute.xlu1 %v1226_v6  ;;  %v1189_v11 = vld [vmem:[%s1310_s20 + $0x18] sm:$0xff]   ;;  %v1190_v12 = vld [vmem:[%s1310_s20] sm:$0xff]   ;;  %v1193_v16 = vld [vmem:[%s1394_s1 + $0x88] sm:$0xff]  }
  0x11   : > { %1113 = vmatprep.mubr.msk.bf16.mxu0 %vm417_vm0, %v1189_v11  ;;  %1129 = vmatprep.mubr.msk.bf16.mxu1 %vm417_vm0, %v1190_v12  ;;  %v1191_v15 = vld [vmem:[%s1310_s20 + $0x20] sm:$0xff]   ;;  %v1192_v17 = vld [vmem:[%s1310_s20 + $0x8] sm:$0xff]   ;;  %v760_v22 = vld [vmem:[%s1396_s3 + $0x10] sm:$0xff] }
  0x12   : > { %1104 = vmatpush3.bf16.msra.mxu0 %v1179_v2  ;;  %1120 = vmatpush3.bf16.msra.mxu1 %v1180_v3  ;;  %v1194_v18 = vld [vmem:[%s1394_s1 + $0x80] sm:$0xff]   ;;  %v1200_v20 = vld [vmem:[%s1310_s20 + $0x8] sm:$0xff]   ;;  %v761_v28 = vld [vmem:[%s1396_s3 + $0x18] sm:$0xff] }
  0x13   : > { %1105 = vmatprep.subr.bf16.mxu0 %v1181_v4  ;;  %1121 = vmatprep.subr.bf16.mxu1 %v1182_v5  ;;  %v1199_v19 = vld [vmem:[%s1310_s20] sm:$0xfc]   ;;  %v615_v25 = vshrl.u32 %v1200_v20, 16  ;;  %v618_v26 = vshll.u32 %v1200_v20, 16  ;;  %v759_v27 = vld [vmem:[%s1396_s3 + $0x8] sm:$0xff]  ;;  %v1195_v33 = vld [vmem:[%s1394_s1 + $0x78] sm:$0xff]  }
  0x14   : > { %v758_v21 = vld [vmem:[%s1396_s3] sm:$0xff]  ;;  %v607_v23 = vshrl.u32 %v1199_v19, 16  ;;  %v610_v24 = vshll.u32 %v1199_v19, 16  ;;  %774 = vperm.xlu1 %1176, %v760_v22   ;;  %v1201_v37 = vld [vmem:[%s1310_s20 + $0x10] ss:$0 sps:$4 sm:$0x77]  }
  0x15   : > { %764 = vperm.xlu0 %1175, %v758_v21   ;;  %v617_v31 = vrot.slane %v615_v25, 2  ;;  %v620_v32 = vrot.slane %v618_v26, 3  ;;  %v1196_v38 = vld [vmem:[%s1394_s1 + $0x70] sm:$0xff]   ;;  %v624_v39 = vshrl.u32 %v1201_v37, 16  ;;  %v627_v40 = vshll.u32 %v1201_v37, 16  ;;  %v1197_v41 = vld [vmem:[%s1394_s1 + $0x68] sm:$0xff]  }
  0x16   : > { %1106 = vmatpush3.bf16.msra.mxu0 %v1181_v4  ;;  %1122 = vmatpush3.bf16.msra.mxu1 %v1182_v5  ;;  %v609_v29 = vrot.slane %v607_v23, 2  ;;  %v612_v30 = vrot.slane %v610_v24, 3  ;;  %v1198_v44 = vld [vmem:[%s1394_s1 + $0x60] sm:$0xff]  }
  0x17   : > { %1107 = vmatprep.subr.bf16.mxu0 %v1183_v7  ;;  %1123 = vmatprep.subr.bf16.mxu1 %v1184_v8  ;;  %v621_v35 = vor.u32 %v620_v32, %v617_v31  ;;  %v626_v42 = vrot.slane %v624_v39, 2  ;;  %v629_v43 = vrot.slane %v627_v40, 3  ;;  %v1054_v63 = vld [vmem:[%s1395_s2] ss:$0 sm:$0xff] }
  0x18   : > { %v613_v34 = vor.u32 %v612_v30, %v609_v29  ;;  %779 = vperm.xlu1 %1176, %v761_v28  }
  0x19   : > { %769 = vperm.xlu0 %1175, %v759_v27   ;;  %v630_v45 = vor.u32 %v629_v43, %v626_v42 }
  0x1a   : > { %1108 = vmatpush3.bf16.msra.mxu0 %v1183_v7  ;;  %1124 = vmatpush3.bf16.msra.mxu1 %v1184_v8  ;;  %v622_v36 = vsel %vm605_vm1, %v613_v34, %v621_v35 }
  0x1b   : > { %1109 = vmatprep.subr.bf16.mxu0 %v1185_v9  ;;  %1125 = vmatprep.subr.bf16.mxu1 %v1186_v10  ;;  %v631_v46 = vsel %vm605_vm1, %v621_v35, %v630_v45 }
  0x1e   : > { %1110 = vmatpush3.bf16.msra.mxu0 %v1185_v9  ;;  %1126 = vmatpush3.bf16.msra.mxu1 %v1186_v10 }
  0x1f   : > { %1111 = vmatprep.subr.bf16.mxu0 %v1187_v13  ;;  %1127 = vmatprep.subr.bf16.mxu1 %v1188_v14 }
  0x22   : > { %1112 = vmatpush3.bf16.msra.mxu0 %v1187_v13  ;;  %1128 = vmatpush3.bf16.msra.mxu1 %v1188_v14 }
  0x23   : > { %1133 = vmatprep.subr.bf16.mxu0 %v1193_v16 }
  0x25   : > { %1114 = vmatmul.mubr.msk.bf16.vlgmr.msra.gmra.mxu0 %vm417_vm0, %v1191_v15  ;;  %1130 = vmatmul.mubr.msk.bf16.vlgmr.msra.gmra.mxu1 %vm417_vm0, %v1192_v17 }
  0x26   : > { %1134 = vmatpush3.bf16.msra.mxu0 %v1193_v16  ;;  %1145 = vmatprep.mubr.msk.bf16.mxu0 %vm417_vm0, %v622_v36 }
  0x27   : > { %1135 = vmatprep.subr.bf16.mxu0 %v1194_v18 }
  0x2a   : > { %1136 = vmatpush3.bf16.msra.mxu0 %v1194_v18 }
  0x2b   : > { %1137 = vmatprep.subr.bf16.mxu0 %v1195_v33 }
  0x2e   : > { %1138 = vmatpush3.bf16.msra.mxu0 %v1195_v33 }
  0x2f   : > { %1139 = vmatprep.subr.bf16.mxu0 %v1196_v38 }
  0x32   : > { %1140 = vmatpush3.bf16.msra.mxu0 %v1196_v38 }
  0x33   : > { %1141 = vmatprep.subr.bf16.mxu0 %v1197_v41 }
  0x36   : > { %1142 = vmatpush3.bf16.msra.mxu0 %v1197_v41 }
  0x37   : > { %1143 = vmatprep.subr.bf16.mxu0 %v1198_v44 }
  0x3a   : > { %1144 = vmatpush3.bf16.msra.mxu0 %v1198_v44 }
  0x3d   : > { %1146 = vmatmul.mubr.msk.bf16.vlgmr.msra.gmra.mxu0 %vm417_vm0, %v631_v46 }
  0x8f   : > { %v775_v0 = vpop.permute.xlu1 %774 }
  0x90   : > { %v765_v61 = vpop.permute.xlu0 %764 }
  0x93   : > { %v780_v13 = vpop.permute.xlu1 %779 }
  0x94   : > { %v770_v12 = vpop.permute.xlu0 %769 }
  0xe5   : > { %v1115_v47 = vpop.f32.mrf.mxu0  ;;  %v1131_v48 = vpop.f32.mrf.mxu1 }
  0xe6   : > { %v568_v55 = vadd.f32 %v1131_v48, %v1115_v47 }
  0xe7   : > { %v458_v49 = vpop.f32.mrf.mxu0  ;;  %v559_v50 = vpop.f32.mrf.mxu1 }
  0xe8   : > { %v560_v56 = vadd.f32 %v559_v50, %v458_v49 }
  0xe9   : > { %v1116_v51 = vpop.f32.mrf.mxu0  ;;  %v1132_v52 = vpop.f32.mrf.mxu1 }
  0xea   : > { %v571_v59 = vadd.f32 %v1132_v52, %v1116_v51 }
  0xeb   : > { %v461_v53 = vpop.f32.mrf.mxu0  ;;  %v562_v57 = vpop.f32.mrf.mxu1 }
  0xec   : > { %v563_v2 = vadd.f32 %v562_v57, %v461_v53 }
  0xfd   : > { %v1147_v54 = vpop.f32.mrf.mxu0 }
  0xfe   : > { %v725_v60 = vadd.f32 %v1147_v54, %v568_v55 }
  0xff   : > { %v708_v58 = vpop.f32.mrf.mxu0 }
 0x100   : > { %v723_v62 = vadd.f32 %v708_v58, %v560_v56  ;;  %v736_v6 = vadd.f32 %v1054_v63, %v725_v60 }
 0x101   : > { %v1148_v1 = vpop.f32.mrf.mxu0 }
 0x102   : > { %v734_v3 = vadd.f32 %v1054_v63, %v723_v62  ;;  %v726_v4 = vadd.f32 %v1148_v1, %v571_v59  ;;  %v784_v14 = vmul.f32 %v775_v0, %v736_v6 }
 0x103   : > { %v711_v5 = vpop.f32.mrf.mxu0 }
 0x104   : > { %v737_v7 = vadd.f32 %v1054_v63, %v726_v4  ;;  %v724_v8 = vadd.f32 %v711_v5, %v563_v2  ;;  %v782_v9 = vmul.f32 %v765_v61, %v734_v3  ;;  %v798_v21 = vmul.f32 %v784_v14, %v736_v6 }
 0x106   : > { %v1074_v10 = vpack.c.bf16 %v737_v7, %v736_v6  ;;  %v735_v11 = vadd.f32 %v1054_v63, %v724_v8  ;;  %v796_v17 = vmul.f32 %v782_v9, %v734_v3  ;;  %v785_v19 = vmul.f32 %v780_v13, %v737_v7 }
 0x108   : > { %1076 = vst [vmem:[%s323_s14 + $0x8] sm:$0xff] %v1074_v10   ;;  %v1069_v15 = vpack.c.bf16 %v735_v11, %v734_v3  ;;  %v783_v16 = vmul.f32 %v770_v12, %v735_v11  ;;  %v799_v25 = vmul.f32 %v785_v19, %v737_v7 }
 0x10a   : > { %1070 = vst [vmem:[%s323_s14] sm:$0xff] %v1069_v15   ;;  %v797_v18 = vmul.f32 %v783_v16, %v735_v11  ;;  %v786_v20 = vadd.f32 %v783_v16, %v782_v9 }
 0x10c   : > { %v787_v22 = vadd.f32 %v786_v20, %v784_v14  ;;  %v800_v23 = vadd.f32 %v797_v18, %v796_v17 }
 0x10e   : > { %v788_v24 = vadd.f32 %v787_v22, %v785_v19  ;;  %v801_v26 = vadd.f32 %v800_v23, %v798_v21 }
 0x110   : > { %v789_v27 = vrot.slane %v788_v24, 4  ;;  %v802_v28 = vadd.f32 %v801_v26, %v799_v25 }
 0x112   : > { %v790_v29 = vadd.f32 %v789_v27, %v788_v24  ;;  %v803_v30 = vrot.slane %v802_v28, 4 }
 0x114   : > { %v791_v31 = vrot.slane %v790_v29, 2  ;;  %v804_v32 = vadd.f32 %v803_v30, %v802_v28 }
 0x116   : > { %v792_v33 = vadd.f32 %v791_v31, %v790_v29  ;;  %v805_v34 = vrot.slane %v804_v32, 2 }
 0x118   : > { %v793_v35 = vrot.slane %v792_v33, 1  ;;  %v806_v36 = vadd.f32 %v805_v34, %v804_v32 }
 0x11a   : > { %v794_v37 = vadd.f32 %v793_v35, %v792_v33  ;;  %v807_v38 = vrot.slane %v806_v36, 1 }
 0x11c   : > { %795 = vst [vmem:[%s329_s17] sm:$0x1] %v794_v37  ;;  %v808_v39 = vadd.f32 %v807_v38, %v806_v36 }
 0x11e   : > { %809 = vst [vmem:[%s335_s25] sm:$0x1] %v808_v39 }
 0x11f PF: > { %s17_s23 = sadd.s32 1, %s1224_s23   ;;  %s1400_s21 = smov %s1220_s22 }
 0x120   : > { %p14_p5 = scmp.ge.s32.totalorder %s17_s23, 4   ;;  %s1401_s22 = smov %s1403_s24 }
 0x122   :  { %16 = sbr.rel (!%p14_p5) target bundleno = 2 (0x2), region = 99 }

</bundles_post_ra>
